<compile_context>
chip_gen: v5e
topology: v5e:2x2
jax: 0.10.0
libtpu: 0.0.40
codegen_flags: <defaults>
</compile_context>

<pallas_src>
import functools

import jax
import jax.numpy as jnp
from jax.experimental import pallas as pl
from jax.experimental.pallas import tpu as pltpu


def _pick_tile(dim, preferred):
    for t in preferred:
        if dim % t == 0:
            return t
    return dim


# ----------------------------------------------------------------------------
# Kernel 1: tiled matmul + bias (+ReLU).  Used for the stem conv (im2col form).
# ----------------------------------------------------------------------------
def _matmul_bias_kernel(x_ref, w_ref, b_ref, o_ref, acc_ref, *, relu):
    @pl.when(pl.program_id(2) == 0)
    def _init():
        acc_ref[...] = jnp.zeros_like(acc_ref)

    acc_ref[...] += jnp.dot(x_ref[...], w_ref[...],
                            preferred_element_type=jnp.float32)

    @pl.when(pl.program_id(2) == pl.num_programs(2) - 1)
    def _finalize():
        out = acc_ref[...] + b_ref[...]        # bias/ReLU only on last K step
        if relu:
            out = jnp.maximum(out, 0.0)
        o_ref[...] = out.astype(o_ref.dtype)


def matmul_bias(x, w, b, *, relu=False, out_dtype=jnp.bfloat16):
    M, K = x.shape
    K2, N = w.shape
    assert K == K2
    tm = _pick_tile(M, (256, 128, 64, 32, 16, 8))
    tn = _pick_tile(N, (256, 128))
    tk = _pick_tile(K, (512, 256, 128))
    b2 = b.reshape(1, N).astype(jnp.float32)
    return pl.pallas_call(
        functools.partial(_matmul_bias_kernel, relu=relu),
        out_shape=jax.ShapeDtypeStruct((M, N), out_dtype),
        grid=(M // tm, N // tn, K // tk),
        in_specs=[
            pl.BlockSpec((tm, tk), lambda i, j, k: (i, k)),
            pl.BlockSpec((tk, tn), lambda i, j, k: (k, j)),  # resident over M
            pl.BlockSpec((1, tn), lambda i, j, k: (0, j)),
        ],
        out_specs=pl.BlockSpec((tm, tn), lambda i, j, k: (i, j)),
        scratch_shapes=[pltpu.VMEM((tm, tn), jnp.float32)],
        compiler_params=pltpu.CompilerParams(
            dimension_semantics=("parallel", "parallel", "arbitrary")),
    )(x, w, b2)


# ----------------------------------------------------------------------------
# Kernel 2: direct 3x3 stride-1 SAME conv, folded-BN bias + ReLU (+ residual).
# No im2col materialization: 9 shifted tap matmuls accumulated in VMEM.
# ----------------------------------------------------------------------------
def _conv_accumulate(x_ref, w_ref, x32_ref, acc_ref, H, W):
    cin = x_ref.shape[-1]
    # Upcast the halo tile once; keeps HBM traffic bf16 while all spatial
    # slicing happens on an f32 scratch (no packed-dtype relayout surprises).
    x32_ref[...] = x_ref[0].astype(jnp.float32)
    acc_ref[...] = jnp.zeros_like(acc_ref)
    for t in range(9):                          # unrolled 9-tap reduction
        dh, dw = t // 3, t % 3
        patch = x32_ref[dh:dh + H, dw:dw + W, :].reshape(H * W, cin)
        acc_ref[...] += jnp.dot(patch.astype(jnp.bfloat16), w_ref[t],
                                preferred_element_type=jnp.float32)


def _conv3x3_kernel(x_ref, w_ref, b_ref, o_ref, x32_ref, acc_ref, *,
                    H, W, relu):
    _conv_accumulate(x_ref, w_ref, x32_ref, acc_ref, H, W)
    out = acc_ref[...] + b_ref[...]
    if relu:
        out = jnp.maximum(out, 0.0)
    o_ref[...] = out.reshape(o_ref.shape).astype(o_ref.dtype)


def _conv3x3_res_kernel(x_ref, w_ref, b_ref, r_ref, o_ref, x32_ref, acc_ref,
                        *, H, W, relu):
    _conv_accumulate(x_ref, w_ref, x32_ref, acc_ref, H, W)
    out = acc_ref[...] + b_ref[...]
    out = out.reshape(o_ref.shape) + r_ref[...].astype(jnp.float32)
    if relu:
        out = jnp.maximum(out, 0.0)
    o_ref[...] = out.astype(o_ref.dtype)


def conv3x3_bn_act(x_img, w_taps, b, *, residual=None, relu=False,
                   out_dtype=jnp.bfloat16):
    """x_img [B,H,W,Cin] bf16, w_taps [9,Cin,Cout] bf16, b [Cout] f32."""
    B, H, W, Cin = x_img.shape
    taps, Cin2, Cout = w_taps.shape
    assert taps == 9 and Cin == Cin2
    tn = _pick_tile(Cout, (256, 128))
    xp = jnp.pad(x_img, ((0, 0), (1, 1), (1, 1), (0, 0)))   # bf16 halo pad
    b2 = b.reshape(1, Cout).astype(jnp.float32)

    in_specs = [
        pl.BlockSpec((1, H + 2, W + 2, Cin), lambda bi, j: (bi, 0, 0, 0)),
        pl.BlockSpec((9, Cin, tn), lambda bi, j: (0, 0, j)),  # resident over B
        pl.BlockSpec((1, tn), lambda bi, j: (0, j)),
    ]
    args = [xp, w_taps, b2]
    if residual is None:
        kernel = functools.partial(_conv3x3_kernel, H=H, W=W, relu=relu)
    else:
        kernel = functools.partial(_conv3x3_res_kernel, H=H, W=W, relu=relu)
        in_specs.append(
            pl.BlockSpec((1, H, W, tn), lambda bi, j: (bi, 0, 0, j)))
        args.append(residual)

    return pl.pallas_call(
        kernel,
        out_shape=jax.ShapeDtypeStruct((B, H, W, Cout), out_dtype),
        grid=(B, Cout // tn),
        in_specs=in_specs,
        out_specs=pl.BlockSpec((1, H, W, tn), lambda bi, j: (bi, 0, 0, j)),
        scratch_shapes=[pltpu.VMEM((H + 2, W + 2, Cin), jnp.float32),
                        pltpu.VMEM((H * W, tn), jnp.float32)],
        compiler_params=pltpu.CompilerParams(
            dimension_semantics=("parallel", "parallel")),
    )(*args)


# ----------------------------------------------------------------------------
# Kernel 3: fused global-avg-pool + FC + softmax cross-entropy (mean).
# target arrives as int32 (B,1); one-hot built in-kernel via broadcasted_iota.
# Logits are lane-dense (padded to a multiple of 128 classes).
# ----------------------------------------------------------------------------
def _head_kernel(x_ref, w_ref, b_ref, t_ref, logits_ref, loss_ref, *,
                 num_classes):
    B = x_ref.shape[0]
    pooled = jnp.mean(x_ref[...].astype(jnp.float32), axis=1)       # [B, C]
    logits = jnp.dot(pooled, w_ref[...],
                     preferred_element_type=jnp.float32) + b_ref[...]
    logits_ref[...] = logits
    npad = logits.shape[-1]
    cls = jax.lax.broadcasted_iota(jnp.int32, (B, npad), 1)
    masked = jnp.where(cls < num_classes, logits, -1e30)            # pad mask
    m = jnp.max(masked, axis=-1, keepdims=True)
    lse = m + jnp.log(jnp.sum(jnp.exp(masked - m), axis=-1, keepdims=True))
    onehot = (cls == t_ref[...]).astype(jnp.float32)                # [B, Np]
    tgt = jnp.sum(logits * onehot, axis=-1, keepdims=True)          # [B, 1]
    loss_ref[...] = jnp.sum(lse - tgt, axis=0, keepdims=True) / B


def pool_fc_ce(x_flat, wfc_pad, bfc_pad, target, num_classes):
    B, HW, C = x_flat.shape
    C2, Npad = wfc_pad.shape
    assert C == C2
    t2 = target.reshape(B, 1).astype(jnp.int32)
    b2 = bfc_pad.reshape(1, Npad).astype(jnp.float32)
    logits, loss = pl.pallas_call(
        functools.partial(_head_kernel, num_classes=num_classes),
        out_shape=(jax.ShapeDtypeStruct((B, Npad), jnp.float32),
                   jax.ShapeDtypeStruct((1, 1), jnp.float32)),
        grid=(1,),
        in_specs=[
            pl.BlockSpec((B, HW, C), lambda i: (0, 0, 0)),
            pl.BlockSpec((C, Npad), lambda i: (0, 0)),
            pl.BlockSpec((1, Npad), lambda i: (0, 0)),
            pl.BlockSpec((B, 1), lambda i: (0, 0)),
        ],
        out_specs=(pl.BlockSpec((B, Npad), lambda i: (0, 0)),
                   pl.BlockSpec((1, 1), lambda i: (0, 0))),
        compiler_params=pltpu.CompilerParams(
            dimension_semantics=("arbitrary",)),
    )(x_flat, wfc_pad, b2, t2)
    return loss, logits


# ----------------------------------------------------------------------------
# Glue: im2col (stem only), conv-weight layout transforms, eval-mode BN fold.
# ----------------------------------------------------------------------------
def im2col_3x3(x_nhwc):
    B, H, W, C = x_nhwc.shape
    xp = jnp.pad(x_nhwc, ((0, 0), (1, 1), (1, 1), (0, 0)))
    patches = [xp[:, di:di + H, dj:dj + W, :]
               for di in range(3) for dj in range(3)]
    return jnp.concatenate(patches, axis=-1).reshape(B * H * W, 9 * C)


def conv_weight_to_mat(w_oihw):
    cout, cin, kh, kw = w_oihw.shape
    return jnp.transpose(w_oihw, (2, 3, 1, 0)).reshape(kh * kw * cin, cout)


def conv_weight_to_taps(w_oihw):
    cout, cin, kh, kw = w_oihw.shape
    return jnp.transpose(w_oihw, (2, 3, 1, 0)).reshape(kh * kw, cin, cout)


def fold_bn(w_oihw, b, gamma, beta, mean, var, eps=1e-5):
    scale = gamma / jnp.sqrt(var + eps)
    w_f = w_oihw * scale[:, None, None, None]
    b_f = beta + (b - mean) * scale
    return w_f, b_f


# ----------------------------------------------------------------------------
# ModelAndLoss forward: (loss, output)
# ----------------------------------------------------------------------------
def init_params(key, cin, chid, num_classes):
    ks = jax.random.split(key, 12)
    p = {}
    p["w1"] = 0.1 * jax.random.normal(ks[0], (chid, cin, 3, 3), jnp.float32)
    p["w2"] = 0.1 * jax.random.normal(ks[1], (chid, chid, 3, 3), jnp.float32)
    p["w3"] = 0.1 * jax.random.normal(ks[2], (chid, chid, 3, 3), jnp.float32)
    for i, name in enumerate(("1", "2", "3")):
        p[f"b{name}"] = jnp.zeros((chid,), jnp.float32)
        p[f"gamma{name}"] = 1.0 + 0.05 * jax.random.normal(ks[3 + i], (chid,))
        p[f"beta{name}"] = 0.05 * jax.random.normal(ks[6 + i], (chid,))
        p[f"mean{name}"] = 0.05 * jax.random.normal(ks[9 + i], (chid,))
        p[f"var{name}"] = jnp.ones((chid,), jnp.float32)
    p["wfc"] = 0.1 * jax.random.normal(ks[11], (chid, num_classes), jnp.float32)
    p["bfc"] = jnp.zeros((num_classes,), jnp.float32)
    return p


def model_and_loss_forward(params, data_nchw, target, num_classes):
    B, Cin, H, W = data_nchw.shape
    x = jnp.transpose(data_nchw, (0, 2, 3, 1)).astype(jnp.bfloat16)  # NHWC

    # stem: conv1 + bn1 + relu  (tiny Cin -> im2col + tiled matmul kernel)
    w1, b1 = fold_bn(params["w1"], params["b1"], params["gamma1"],
                     params["beta1"], params["mean1"], params["var1"])
    y1 = matmul_bias(im2col_3x3(x),
                     conv_weight_to_mat(w1).astype(jnp.bfloat16),
                     b1, relu=True)                      # bf16 [B*H*W, chid]
    chid = w1.shape[0]
    y1_img = y1.reshape(B, H, W, chid)

    # residual basic block: conv2+bn2+relu, conv3+bn3 (+skip, relu fused)
    w2, b2 = fold_bn(params["w2"], params["b2"], params["gamma2"],
                     params["beta2"], params["mean2"], params["var2"])
    y2_img = conv3x3_bn_act(
        y1_img, conv_weight_to_taps(w2).astype(jnp.bfloat16), b2, relu=True)

    w3, b3 = fold_bn(params["w3"], params["b3"], params["gamma3"],
                     params["beta3"], params["mean3"], params["var3"])
    y3_img = conv3x3_bn_act(
        y2_img, conv_weight_to_taps(w3).astype(jnp.bfloat16), b3,
        residual=y1_img, relu=True)

    # fused head: global-avg-pool + FC + cross-entropy (mean reduction)
    npad = ((num_classes + 127) // 128) * 128            # lane-dense classes
    wfc = jnp.zeros((chid, npad), jnp.float32).at[:, :num_classes].set(
        params["wfc"])
    bfc = jnp.zeros((npad,), jnp.float32).at[:num_classes].set(params["bfc"])
    loss, logits_pad = pool_fc_ce(y3_img.reshape(B, H * W, chid),
                                  wfc, bfc, target, num_classes)
    return loss[0, 0], logits_pad[:, :num_classes]


if __name__ == "__main__":
    B, Cin, H, W = 2, 4, 16, 16
    C_HID, NUM_CLASSES = 128, 10     # lane-dense hidden width (>=128)

    key = jax.random.PRNGKey(0)
    k_data, k_tgt, k_param = jax.random.split(key, 3)
    data = jax.random.normal(k_data, (B, Cin, H, W), jnp.float32)   # NCHW
    target = jax.random.randint(k_tgt, (B,), 0, NUM_CLASSES)
    params = init_params(k_param, Cin, C_HID, NUM_CLASSES)

    fwd = jax.jit(functools.partial(model_and_loss_forward,
                                    num_classes=NUM_CLASSES))
    loss, output = fwd(params, data, target)
    jax.block_until_ready((loss, output))

    assert output.shape == (B, NUM_CLASSES)
    assert loss.shape == ()
    assert bool(jnp.isfinite(loss))
    print("KERNEL_OK")
</pallas_src>

<mosaic_0001>
module attributes {stable_mosaic.version = 11 : i64} {
  func.func @_matmul_bias_kernel(%arg0: i32, %arg1: i32, %arg2: i32, %arg3: memref<256x36xbf16, #tpu.memory_space<vmem>>, %arg4: memref<36x128xbf16, #tpu.memory_space<vmem>>, %arg5: memref<1x128xf32, #tpu.memory_space<vmem>>, %arg6: memref<256x128xbf16, #tpu.memory_space<vmem>>, %arg7: memref<256x128xf32, #tpu.memory_space<vmem>>) attributes {dimension_semantics = [#tpu.dimension_semantics<parallel>, #tpu.dimension_semantics<parallel>, #tpu.dimension_semantics<arbitrary>], iteration_bounds = array<i64: 2, 1, 1>, scalar_prefetch = 0 : i64, scratch_operands = 1 : i64, tpu.core_type = #tpu.core_type<tc>, window_params = [{transform_indices = @transform_0, window_bounds = array<i64: 256, 36>}, {transform_indices = @transform_1, window_bounds = array<i64: 36, 128>}, {transform_indices = @transform_2, window_bounds = array<i64: 1, 128>}, {transform_indices = @transform_3, window_bounds = array<i64: 256, 128>}]} {
    %c0_i32 = arith.constant 0 : i32
    %0 = arith.cmpi eq, %arg2, %c0_i32 : i32
    %1 = arith.extui %0 : i1 to i32
    %c0_i32_0 = arith.constant 0 : i32
    %2 = arith.cmpi ne, %1, %c0_i32_0 : i32
    scf.if %2 {
      %cst_10 = arith.constant 0.000000e+00 : f32
      %12 = vector.broadcast %cst_10 : f32 to vector<256x128xf32>
      %c0_11 = arith.constant 0 : index
      %c0_12 = arith.constant 0 : index
      %13 = vector.load %arg7[%c0_11, %c0_12] : memref<256x128xf32, #tpu.memory_space<vmem>>, vector<256x128xf32>
      tpu.vector_store %arg7[%c0_11, %c0_12], %12 {strides = array<i32>} : memref<256x128xf32, #tpu.memory_space<vmem>>, vector<256x128xf32>,
    } else {
    }
    %c0 = arith.constant 0 : index
    %c0_1 = arith.constant 0 : index
    %3 = vector.load %arg7[%c0, %c0_1] : memref<256x128xf32, #tpu.memory_space<vmem>>, vector<256x128xf32>
    %c0_2 = arith.constant 0 : index
    %c0_3 = arith.constant 0 : index
    %4 = vector.load %arg3[%c0_2, %c0_3] : memref<256x36xbf16, #tpu.memory_space<vmem>>, vector<256x36xbf16>
    %c0_4 = arith.constant 0 : index
    %c0_5 = arith.constant 0 : index
    %5 = vector.load %arg4[%c0_4, %c0_5] : memref<36x128xbf16, #tpu.memory_space<vmem>>, vector<36x128xbf16>
    %cst = arith.constant dense<0.000000e+00> : vector<256x128xf32>
    %6 = tpu.matmul %4, %5, %cst {dimension_numbers = #tpu.dot_dimension_numbers<[1], [0], [0], [1], [0, 0, 1, 1], [], []>} : vector<256x36xbf16>, vector<36x128xbf16>, vector<256x128xf32> -> vector<256x128xf32>
    %7 = arith.addf %3, %6 : vector<256x128xf32>
    %c0_6 = arith.constant 0 : index
    %c0_7 = arith.constant 0 : index
    %8 = vector.load %arg7[%c0_6, %c0_7] : memref<256x128xf32, #tpu.memory_space<vmem>>, vector<256x128xf32>
    tpu.vector_store %arg7[%c0_6, %c0_7], %7 {strides = array<i32>} : memref<256x128xf32, #tpu.memory_space<vmem>>, vector<256x128xf32>,
    %c0_i32_8 = arith.constant 0 : i32
    %9 = arith.cmpi eq, %arg2, %c0_i32_8 : i32
    %10 = arith.extui %9 : i1 to i32
    %c0_i32_9 = arith.constant 0 : i32
    %11 = arith.cmpi ne, %10, %c0_i32_9 : i32
    scf.if %11 {
      %c0_10 = arith.constant 0 : index
      %c0_11 = arith.constant 0 : index
      %12 = vector.load %arg7[%c0_10, %c0_11] : memref<256x128xf32, #tpu.memory_space<vmem>>, vector<256x128xf32>
      %c0_12 = arith.constant 0 : index
      %c0_13 = arith.constant 0 : index
      %13 = vector.load %arg5[%c0_12, %c0_13] : memref<1x128xf32, #tpu.memory_space<vmem>>, vector<1x128xf32>
      %14 = vector.broadcast %13 : vector<1x128xf32> to vector<256x128xf32>
      %15 = arith.addf %12, %14 : vector<256x128xf32>
      %cst_14 = arith.constant 0.000000e+00 : f32
      %16 = vector.broadcast %cst_14 : f32 to vector<256x128xf32>
      %17 = arith.maximumf %15, %16 : vector<256x128xf32>
      %18 = arith.truncf %17 : vector<256x128xf32> to vector<256x128xbf16>
      %c0_15 = arith.constant 0 : index
      %c0_16 = arith.constant 0 : index
      %19 = vector.load %arg6[%c0_15, %c0_16] : memref<256x128xbf16, #tpu.memory_space<vmem>>, vector<256x128xbf16>
      tpu.vector_store %arg6[%c0_15, %c0_16], %18 {strides = array<i32>} : memref<256x128xbf16, #tpu.memory_space<vmem>>, vector<256x128xbf16>,
    } else {
    }
    return
  }
  func.func @transform_0(%arg0: i32, %arg1: i32, %arg2: i32) -> (i32, i32) {
    %c0_i32 = arith.constant 0 : i32
    return %arg0, %arg2 : i32, i32
  }
  func.func @transform_1(%arg0: i32, %arg1: i32, %arg2: i32) -> (i32, i32) {
    %c0_i32 = arith.constant 0 : i32
    return %arg2, %arg1 : i32, i32
  }
  func.func @transform_2(%arg0: i32, %arg1: i32, %arg2: i32) -> (i32, i32) {
    %c0_i32 = arith.constant 0 : i32
    %c0_i32_0 = arith.constant 0 : i32
    return %c0_i32, %arg1 : i32, i32
  }
  func.func @transform_3(%arg0: i32, %arg1: i32, %arg2: i32) -> (i32, i32) {
    %c0_i32 = arith.constant 0 : i32
    return %arg0, %arg1 : i32, i32
  }
}

module attributes {stable_mosaic.version = 11 : i64} {
  func.func @_conv3x3_kernel(%arg0: i32, %arg1: i32, %arg2: memref<1x18x18x128xbf16, #tpu.memory_space<vmem>>, %arg3: memref<9x128x128xbf16, #tpu.memory_space<vmem>>, %arg4: memref<1x128xf32, #tpu.memory_space<vmem>>, %arg5: memref<1x16x16x128xbf16, #tpu.memory_space<vmem>>, %arg6: memref<18x18x128xf32, #tpu.memory_space<vmem>>, %arg7: memref<256x128xf32, #tpu.memory_space<vmem>>) attributes {dimension_semantics = [#tpu.dimension_semantics<parallel>, #tpu.dimension_semantics<parallel>], iteration_bounds = array<i64: 2, 1>, scalar_prefetch = 0 : i64, scratch_operands = 2 : i64, tpu.core_type = #tpu.core_type<tc>, window_params = [{transform_indices = @transform_0, window_bounds = array<i64: 1, 18, 18, 128>}, {transform_indices = @transform_1, window_bounds = array<i64: 9, 128, 128>}, {transform_indices = @transform_2, window_bounds = array<i64: 1, 128>}, {transform_indices = @transform_3, window_bounds = array<i64: 1, 16, 16, 128>}]} {
    %c0 = arith.constant 0 : index
    %c0_0 = arith.constant 0 : index
    %c0_1 = arith.constant 0 : index
    %c0_2 = arith.constant 0 : index
    %0 = vector.load %arg2[%c0, %c0_0, %c0_1, %c0_2] : memref<1x18x18x128xbf16, #tpu.memory_space<vmem>>, vector<1x18x18x128xbf16>
    %1 = vector.shape_cast %0 : vector<1x18x18x128xbf16> to vector<18x18x128xbf16>
    %2 = arith.extf %1 : vector<18x18x128xbf16> to vector<18x18x128xf32>
    %c0_3 = arith.constant 0 : index
    %c0_4 = arith.constant 0 : index
    %c0_5 = arith.constant 0 : index
    %3 = vector.load %arg6[%c0_3, %c0_4, %c0_5] : memref<18x18x128xf32, #tpu.memory_space<vmem>>, vector<18x18x128xf32>
    tpu.vector_store %arg6[%c0_3, %c0_4, %c0_5], %2 {strides = array<i32>} : memref<18x18x128xf32, #tpu.memory_space<vmem>>, vector<18x18x128xf32>,
    %cst = arith.constant 0.000000e+00 : f32
    %4 = vector.broadcast %cst : f32 to vector<256x128xf32>
    %c0_6 = arith.constant 0 : index
    %c0_7 = arith.constant 0 : index
    %5 = vector.load %arg7[%c0_6, %c0_7] : memref<256x128xf32, #tpu.memory_space<vmem>>, vector<256x128xf32>
    tpu.vector_store %arg7[%c0_6, %c0_7], %4 {strides = array<i32>} : memref<256x128xf32, #tpu.memory_space<vmem>>, vector<256x128xf32>,
    %c0_8 = arith.constant 0 : index
    %c0_9 = arith.constant 0 : index
    %c0_10 = arith.constant 0 : index
    %6 = vector.load %arg6[%c0_8, %c0_9, %c0_10] : memref<18x18x128xf32, #tpu.memory_space<vmem>>, vector<16x16x128xf32>
    %7 = vector.shape_cast %6 : vector<16x16x128xf32> to vector<256x128xf32>
    %c0_11 = arith.constant 0 : index
    %c0_12 = arith.constant 0 : index
    %8 = vector.load %arg7[%c0_11, %c0_12] : memref<256x128xf32, #tpu.memory_space<vmem>>, vector<256x128xf32>
    %9 = arith.truncf %7 : vector<256x128xf32> to vector<256x128xbf16>
    %c0_13 = arith.constant 0 : index
    %c0_14 = arith.constant 0 : index
    %c0_15 = arith.constant 0 : index
    %10 = vector.load %arg3[%c0_13, %c0_14, %c0_15] : memref<9x128x128xbf16, #tpu.memory_space<vmem>>, vector<1x128x128xbf16>
    %11 = vector.shape_cast %10 : vector<1x128x128xbf16> to vector<128x128xbf16>
    %cst_16 = arith.constant dense<0.000000e+00> : vector<256x128xf32>
    %12 = tpu.matmul %9, %11, %cst_16 {dimension_numbers = #tpu.dot_dimension_numbers<[1], [0], [0], [1], [0, 0, 1, 1], [], []>} : vector<256x128xbf16>, vector<128x128xbf16>, vector<256x128xf32> -> vector<256x128xf32>
    %13 = arith.addf %8, %12 : vector<256x128xf32>
    %c0_17 = arith.constant 0 : index
    %c0_18 = arith.constant 0 : index
    %14 = vector.load %arg7[%c0_17, %c0_18] : memref<256x128xf32, #tpu.memory_space<vmem>>, vector<256x128xf32>
    tpu.vector_store %arg7[%c0_17, %c0_18], %13 {strides = array<i32>} : memref<256x128xf32, #tpu.memory_space<vmem>>, vector<256x128xf32>,
    %c0_19 = arith.constant 0 : index
    %c1 = arith.constant 1 : index
    %c0_20 = arith.constant 0 : index
    %15 = vector.load %arg6[%c0_19, %c1, %c0_20] : memref<18x18x128xf32, #tpu.memory_space<vmem>>, vector<16x16x128xf32>
    %16 = vector.shape_cast %15 : vector<16x16x128xf32> to vector<256x128xf32>
    %c0_21 = arith.constant 0 : index
    %c0_22 = arith.constant 0 : index
    %17 = vector.load %arg7[%c0_21, %c0_22] : memref<256x128xf32, #tpu.memory_space<vmem>>, vector<256x128xf32>
    %18 = arith.truncf %16 : vector<256x128xf32> to vector<256x128xbf16>
    %c1_23 = arith.constant 1 : index
    %c0_24 = arith.constant 0 : index
    %c0_25 = arith.constant 0 : index
    %19 = vector.load %arg3[%c1_23, %c0_24, %c0_25] : memref<9x128x128xbf16, #tpu.memory_space<vmem>>, vector<1x128x128xbf16>
    %20 = vector.shape_cast %19 : vector<1x128x128xbf16> to vector<128x128xbf16>
    %cst_26 = arith.constant dense<0.000000e+00> : vector<256x128xf32>
    %21 = tpu.matmul %18, %20, %cst_26 {dimension_numbers = #tpu.dot_dimension_numbers<[1], [0], [0], [1], [0, 0, 1, 1], [], []>} : vector<256x128xbf16>, vector<128x128xbf16>, vector<256x128xf32> -> vector<256x128xf32>
    %22 = arith.addf %17, %21 : vector<256x128xf32>
    %c0_27 = arith.constant 0 : index
    %c0_28 = arith.constant 0 : index
    %23 = vector.load %arg7[%c0_27, %c0_28] : memref<256x128xf32, #tpu.memory_space<vmem>>, vector<256x128xf32>
    tpu.vector_store %arg7[%c0_27, %c0_28], %22 {strides = array<i32>} : memref<256x128xf32, #tpu.memory_space<vmem>>, vector<256x128xf32>,
    %c0_29 = arith.constant 0 : index
    %c2 = arith.constant 2 : index
    %c0_30 = arith.constant 0 : index
    %24 = vector.load %arg6[%c0_29, %c2, %c0_30] : memref<18x18x128xf32, #tpu.memory_space<vmem>>, vector<16x16x128xf32>
    %25 = vector.shape_cast %24 : vector<16x16x128xf32> to vector<256x128xf32>
    %c0_31 = arith.constant 0 : index
    %c0_32 = arith.constant 0 : index
    %26 = vector.load %arg7[%c0_31, %c0_32] : memref<256x128xf32, #tpu.memory_space<vmem>>, vector<256x128xf32>
    %27 = arith.truncf %25 : vector<256x128xf32> to vector<256x128xbf16>
    %c2_33 = arith.constant 2 : index
    %c0_34 = arith.constant 0 : index
    %c0_35 = arith.constant 0 : index
    %28 = vector.load %arg3[%c2_33, %c0_34, %c0_35] : memref<9x128x128xbf16, #tpu.memory_space<vmem>>, vector<1x128x128xbf16>
    %29 = vector.shape_cast %28 : vector<1x128x128xbf16> to vector<128x128xbf16>
    %cst_36 = arith.constant dense<0.000000e+00> : vector<256x128xf32>
    %30 = tpu.matmul %27, %29, %cst_36 {dimension_numbers = #tpu.dot_dimension_numbers<[1], [0], [0], [1], [0, 0, 1, 1], [], []>} : vector<256x128xbf16>, vector<128x128xbf16>, vector<256x128xf32> -> vector<256x128xf32>
    %31 = arith.addf %26, %30 : vector<256x128xf32>
    %c0_37 = arith.constant 0 : index
    %c0_38 = arith.constant 0 : index
    %32 = vector.load %arg7[%c0_37, %c0_38] : memref<256x128xf32, #tpu.memory_space<vmem>>, vector<256x128xf32>
    tpu.vector_store %arg7[%c0_37, %c0_38], %31 {strides = array<i32>} : memref<256x128xf32, #tpu.memory_space<vmem>>, vector<256x128xf32>,
    %c1_39 = arith.constant 1 : index
    %c0_40 = arith.constant 0 : index
    %c0_41 = arith.constant 0 : index
    %33 = vector.load %arg6[%c1_39, %c0_40, %c0_41] : memref<18x18x128xf32, #tpu.memory_space<vmem>>, vector<16x16x128xf32>
    %34 = vector.shape_cast %33 : vector<16x16x128xf32> to vector<256x128xf32>
    %c0_42 = arith.constant 0 : index
    %c0_43 = arith.constant 0 : index
    %35 = vector.load %arg7[%c0_42, %c0_43] : memref<256x128xf32, #tpu.memory_space<vmem>>, vector<256x128xf32>
    %36 = arith.truncf %34 : vector<256x128xf32> to vector<256x128xbf16>
    %c3 = arith.constant 3 : index
    %c0_44 = arith.constant 0 : index
    %c0_45 = arith.constant 0 : index
    %37 = vector.load %arg3[%c3, %c0_44, %c0_45] : memref<9x128x128xbf16, #tpu.memory_space<vmem>>, vector<1x128x128xbf16>
    %38 = vector.shape_cast %37 : vector<1x128x128xbf16> to vector<128x128xbf16>
    %cst_46 = arith.constant dense<0.000000e+00> : vector<256x128xf32>
    %39 = tpu.matmul %36, %38, %cst_46 {dimension_numbers = #tpu.dot_dimension_numbers<[1], [0], [0], [1], [0, 0, 1, 1], [], []>} : vector<256x128xbf16>, vector<128x128xbf16>, vector<256x128xf32> -> vector<256x128xf32>
    %40 = arith.addf %35, %39 : vector<256x128xf32>
    %c0_47 = arith.constant 0 : index
    %c0_48 = arith.constant 0 : index
    %41 = vector.load %arg7[%c0_47, %c0_48] : memref<256x128xf32, #tpu.memory_space<vmem>>, vector<256x128xf32>
    tpu.vector_store %arg7[%c0_47, %c0_48], %40 {strides = array<i32>} : memref<256x128xf32, #tpu.memory_space<vmem>>, vector<256x128xf32>,
    %c1_49 = arith.constant 1 : index
    %c1_50 = arith.constant 1 : index
    %c0_51 = arith.constant 0 : index
    %42 = vector.load %arg6[%c1_49, %c1_50, %c0_51] : memref<18x18x128xf32, #tpu.memory_space<vmem>>, vector<16x16x128xf32>
    %43 = vector.shape_cast %42 : vector<16x16x128xf32> to vector<256x128xf32>
    %c0_52 = arith.constant 0 : index
    %c0_53 = arith.constant 0 : index
    %44 = vector.load %arg7[%c0_52, %c0_53] : memref<256x128xf32, #tpu.memory_space<vmem>>, vector<256x128xf32>
    %45 = arith.truncf %43 : vector<256x128xf32> to vector<256x128xbf16>
    %c4 = arith.constant 4 : index
    %c0_54 = arith.constant 0 : index
    %c0_55 = arith.constant 0 : index
    %46 = vector.load %arg3[%c4, %c0_54, %c0_55] : memref<9x128x128xbf16, #tpu.memory_space<vmem>>, vector<1x128x128xbf16>
    %47 = vector.shape_cast %46 : vector<1x128x128xbf16> to vector<128x128xbf16>
    %cst_56 = arith.constant dense<0.000000e+00> : vector<256x128xf32>
    %48 = tpu.matmul %45, %47, %cst_56 {dimension_numbers = #tpu.dot_dimension_numbers<[1], [0], [0], [1], [0, 0, 1, 1], [], []>} : vector<256x128xbf16>, vector<128x128xbf16>, vector<256x128xf32> -> vector<256x128xf32>
    %49 = arith.addf %44, %48 : vector<256x128xf32>
    %c0_57 = arith.constant 0 : index
    %c0_58 = arith.constant 0 : index
    %50 = vector.load %arg7[%c0_57, %c0_58] : memref<256x128xf32, #tpu.memory_space<vmem>>, vector<256x128xf32>
    tpu.vector_store %arg7[%c0_57, %c0_58], %49 {strides = array<i32>} : memref<256x128xf32, #tpu.memory_space<vmem>>, vector<256x128xf32>,
    %c1_59 = arith.constant 1 : index
    %c2_60 = arith.constant 2 : index
    %c0_61 = arith.constant 0 : index
    %51 = vector.load %arg6[%c1_59, %c2_60, %c0_61] : memref<18x18x128xf32, #tpu.memory_space<vmem>>, vector<16x16x128xf32>
    %52 = vector.shape_cast %51 : vector<16x16x128xf32> to vector<256x128xf32>
    %c0_62 = arith.constant 0 : index
    %c0_63 = arith.constant 0 : index
    %53 = vector.load %arg7[%c0_62, %c0_63] : memref<256x128xf32, #tpu.memory_space<vmem>>, vector<256x128xf32>
    %54 = arith.truncf %52 : vector<256x128xf32> to vector<256x128xbf16>
    %c5 = arith.constant 5 : index
    %c0_64 = arith.constant 0 : index
    %c0_65 = arith.constant 0 : index
    %55 = vector.load %arg3[%c5, %c0_64, %c0_65] : memref<9x128x128xbf16, #tpu.memory_space<vmem>>, vector<1x128x128xbf16>
    %56 = vector.shape_cast %55 : vector<1x128x128xbf16> to vector<128x128xbf16>
    %cst_66 = arith.constant dense<0.000000e+00> : vector<256x128xf32>
    %57 = tpu.matmul %54, %56, %cst_66 {dimension_numbers = #tpu.dot_dimension_numbers<[1], [0], [0], [1], [0, 0, 1, 1], [], []>} : vector<256x128xbf16>, vector<128x128xbf16>, vector<256x128xf32> -> vector<256x128xf32>
    %58 = arith.addf %53, %57 : vector<256x128xf32>
    %c0_67 = arith.constant 0 : index
    %c0_68 = arith.constant 0 : index
    %59 = vector.load %arg7[%c0_67, %c0_68] : memref<256x128xf32, #tpu.memory_space<vmem>>, vector<256x128xf32>
    tpu.vector_store %arg7[%c0_67, %c0_68], %58 {strides = array<i32>} : memref<256x128xf32, #tpu.memory_space<vmem>>, vector<256x128xf32>,
    %c2_69 = arith.constant 2 : index
    %c0_70 = arith.constant 0 : index
    %c0_71 = arith.constant 0 : index
    %60 = vector.load %arg6[%c2_69, %c0_70, %c0_71] : memref<18x18x128xf32, #tpu.memory_space<vmem>>, vector<16x16x128xf32>
    %61 = vector.shape_cast %60 : vector<16x16x128xf32> to vector<256x128xf32>
    %c0_72 = arith.constant 0 : index
    %c0_73 = arith.constant 0 : index
    %62 = vector.load %arg7[%c0_72, %c0_73] : memref<256x128xf32, #tpu.memory_space<vmem>>, vector<256x128xf32>
    %63 = arith.truncf %61 : vector<256x128xf32> to vector<256x128xbf16>
    %c6 = arith.constant 6 : index
    %c0_74 = arith.constant 0 : index
    %c0_75 = arith.constant 0 : index
    %64 = vector.load %arg3[%c6, %c0_74, %c0_75] : memref<9x128x128xbf16, #tpu.memory_space<vmem>>, vector<1x128x128xbf16>
    %65 = vector.shape_cast %64 : vector<1x128x128xbf16> to vector<128x128xbf16>
    %cst_76 = arith.constant dense<0.000000e+00> : vector<256x128xf32>
    %66 = tpu.matmul %63, %65, %cst_76 {dimension_numbers = #tpu.dot_dimension_numbers<[1], [0], [0], [1], [0, 0, 1, 1], [], []>} : vector<256x128xbf16>, vector<128x128xbf16>, vector<256x128xf32> -> vector<256x128xf32>
    %67 = arith.addf %62, %66 : vector<256x128xf32>
    %c0_77 = arith.constant 0 : index
    %c0_78 = arith.constant 0 : index
    %68 = vector.load %arg7[%c0_77, %c0_78] : memref<256x128xf32, #tpu.memory_space<vmem>>, vector<256x128xf32>
    tpu.vector_store %arg7[%c0_77, %c0_78], %67 {strides = array<i32>} : memref<256x128xf32, #tpu.memory_space<vmem>>, vector<256x128xf32>,
    %c2_79 = arith.constant 2 : index
    %c1_80 = arith.constant 1 : index
    %c0_81 = arith.constant 0 : index
    %69 = vector.load %arg6[%c2_79, %c1_80, %c0_81] : memref<18x18x128xf32, #tpu.memory_space<vmem>>, vector<16x16x128xf32>
    %70 = vector.shape_cast %69 : vector<16x16x128xf32> to vector<256x128xf32>
    %c0_82 = arith.constant 0 : index
    %c0_83 = arith.constant 0 : index
    %71 = vector.load %arg7[%c0_82, %c0_83] : memref<256x128xf32, #tpu.memory_space<vmem>>, vector<256x128xf32>
    %72 = arith.truncf %70 : vector<256x128xf32> to vector<256x128xbf16>
    %c7 = arith.constant 7 : index
    %c0_84 = arith.constant 0 : index
    %c0_85 = arith.constant 0 : index
    %73 = vector.load %arg3[%c7, %c0_84, %c0_85] : memref<9x128x128xbf16, #tpu.memory_space<vmem>>, vector<1x128x128xbf16>
    %74 = vector.shape_cast %73 : vector<1x128x128xbf16> to vector<128x128xbf16>
    %cst_86 = arith.constant dense<0.000000e+00> : vector<256x128xf32>
    %75 = tpu.matmul %72, %74, %cst_86 {dimension_numbers = #tpu.dot_dimension_numbers<[1], [0], [0], [1], [0, 0, 1, 1], [], []>} : vector<256x128xbf16>, vector<128x128xbf16>, vector<256x128xf32> -> vector<256x128xf32>
    %76 = arith.addf %71, %75 : vector<256x128xf32>
    %c0_87 = arith.constant 0 : index
    %c0_88 = arith.constant 0 : index
    %77 = vector.load %arg7[%c0_87, %c0_88] : memref<256x128xf32, #tpu.memory_space<vmem>>, vector<256x128xf32>
    tpu.vector_store %arg7[%c0_87, %c0_88], %76 {strides = array<i32>} : memref<256x128xf32, #tpu.memory_space<vmem>>, vector<256x128xf32>,
    %c2_89 = arith.constant 2 : index
    %c2_90 = arith.constant 2 : index
    %c0_91 = arith.constant 0 : index
    %78 = vector.load %arg6[%c2_89, %c2_90, %c0_91] : memref<18x18x128xf32, #tpu.memory_space<vmem>>, vector<16x16x128xf32>
    %79 = vector.shape_cast %78 : vector<16x16x128xf32> to vector<256x128xf32>
    %c0_92 = arith.constant 0 : index
    %c0_93 = arith.constant 0 : index
    %80 = vector.load %arg7[%c0_92, %c0_93] : memref<256x128xf32, #tpu.memory_space<vmem>>, vector<256x128xf32>
    %81 = arith.truncf %79 : vector<256x128xf32> to vector<256x128xbf16>
    %c8 = arith.constant 8 : index
    %c0_94 = arith.constant 0 : index
    %c0_95 = arith.constant 0 : index
    %82 = vector.load %arg3[%c8, %c0_94, %c0_95] : memref<9x128x128xbf16, #tpu.memory_space<vmem>>, vector<1x128x128xbf16>
    %83 = vector.shape_cast %82 : vector<1x128x128xbf16> to vector<128x128xbf16>
    %cst_96 = arith.constant dense<0.000000e+00> : vector<256x128xf32>
    %84 = tpu.matmul %81, %83, %cst_96 {dimension_numbers = #tpu.dot_dimension_numbers<[1], [0], [0], [1], [0, 0, 1, 1], [], []>} : vector<256x128xbf16>, vector<128x128xbf16>, vector<256x128xf32> -> vector<256x128xf32>
    %85 = arith.addf %80, %84 : vector<256x128xf32>
    %c0_97 = arith.constant 0 : index
    %c0_98 = arith.constant 0 : index
    %86 = vector.load %arg7[%c0_97, %c0_98] : memref<256x128xf32, #tpu.memory_space<vmem>>, vector<256x128xf32>
    tpu.vector_store %arg7[%c0_97, %c0_98], %85 {strides = array<i32>} : memref<256x128xf32, #tpu.memory_space<vmem>>, vector<256x128xf32>,
    %c0_99 = arith.constant 0 : index
    %c0_100 = arith.constant 0 : index
    %87 = vector.load %arg7[%c0_99, %c0_100] : memref<256x128xf32, #tpu.memory_space<vmem>>, vector<256x128xf32>
    %c0_101 = arith.constant 0 : index
    %c0_102 = arith.constant 0 : index
    %88 = vector.load %arg4[%c0_101, %c0_102] : memref<1x128xf32, #tpu.memory_space<vmem>>, vector<1x128xf32>
    %89 = vector.broadcast %88 : vector<1x128xf32> to vector<256x128xf32>
    %90 = arith.addf %87, %89 : vector<256x128xf32>
    %cst_103 = arith.constant 0.000000e+00 : f32
    %91 = vector.broadcast %cst_103 : f32 to vector<256x128xf32>
    %92 = arith.maximumf %90, %91 : vector<256x128xf32>
    %93 = vector.shape_cast %92 : vector<256x128xf32> to vector<1x16x16x128xf32>
    %94 = arith.truncf %93 : vector<1x16x16x128xf32> to vector<1x16x16x128xbf16>
    %c0_104 = arith.constant 0 : index
    %c0_105 = arith.constant 0 : index
    %c0_106 = arith.constant 0 : index
    %c0_107 = arith.constant 0 : index
    %95 = vector.load %arg5[%c0_104, %c0_105, %c0_106, %c0_107] : memref<1x16x16x128xbf16, #tpu.memory_space<vmem>>, vector<1x16x16x128xbf16>
    tpu.vector_store %arg5[%c0_104, %c0_105, %c0_106, %c0_107], %94 {strides = array<i32>} : memref<1x16x16x128xbf16, #tpu.memory_space<vmem>>, vector<1x16x16x128xbf16>,
    return
  }
  func.func @transform_0(%arg0: i32, %arg1: i32) -> (i32, i32, i32, i32) {
    %c0_i32 = arith.constant 0 : i32
    %c0_i32_0 = arith.constant 0 : i32
    %c0_i32_1 = arith.constant 0 : i32
    %c0_i32_2 = arith.constant 0 : i32
    return %arg0, %c0_i32, %c0_i32_0, %c0_i32_1 : i32, i32, i32, i32
  }
  func.func @transform_1(%arg0: i32, %arg1: i32) -> (i32, i32, i32) {
    %c0_i32 = arith.constant 0 : i32
    %c0_i32_0 = arith.constant 0 : i32
    %c0_i32_1 = arith.constant 0 : i32
    return %c0_i32, %c0_i32_0, %arg1 : i32, i32, i32
  }
  func.func @transform_2(%arg0: i32, %arg1: i32) -> (i32, i32) {
    %c0_i32 = arith.constant 0 : i32
    %c0_i32_0 = arith.constant 0 : i32
    return %c0_i32, %arg1 : i32, i32
  }
  func.func @transform_3(%arg0: i32, %arg1: i32) -> (i32, i32, i32, i32) {
    %c0_i32 = arith.constant 0 : i32
    %c0_i32_0 = arith.constant 0 : i32
    %c0_i32_1 = arith.constant 0 : i32
    return %arg0, %c0_i32, %c0_i32_0, %arg1 : i32, i32, i32, i32
  }
}

module attributes {stable_mosaic.version = 11 : i64} {
  func.func @_conv3x3_res_kernel(%arg0: i32, %arg1: i32, %arg2: memref<1x18x18x128xbf16, #tpu.memory_space<vmem>>, %arg3: memref<9x128x128xbf16, #tpu.memory_space<vmem>>, %arg4: memref<1x128xf32, #tpu.memory_space<vmem>>, %arg5: memref<1x16x16x128xbf16, #tpu.memory_space<vmem>>, %arg6: memref<1x16x16x128xbf16, #tpu.memory_space<vmem>>, %arg7: memref<18x18x128xf32, #tpu.memory_space<vmem>>, %arg8: memref<256x128xf32, #tpu.memory_space<vmem>>) attributes {dimension_semantics = [#tpu.dimension_semantics<parallel>, #tpu.dimension_semantics<parallel>], iteration_bounds = array<i64: 2, 1>, scalar_prefetch = 0 : i64, scratch_operands = 2 : i64, tpu.core_type = #tpu.core_type<tc>, window_params = [{transform_indices = @transform_0, window_bounds = array<i64: 1, 18, 18, 128>}, {transform_indices = @transform_1, window_bounds = array<i64: 9, 128, 128>}, {transform_indices = @transform_2, window_bounds = array<i64: 1, 128>}, {transform_indices = @transform_3, window_bounds = array<i64: 1, 16, 16, 128>}, {transform_indices = @transform_4, window_bounds = array<i64: 1, 16, 16, 128>}]} {
    %c0 = arith.constant 0 : index
    %c0_0 = arith.constant 0 : index
    %c0_1 = arith.constant 0 : index
    %c0_2 = arith.constant 0 : index
    %0 = vector.load %arg2[%c0, %c0_0, %c0_1, %c0_2] : memref<1x18x18x128xbf16, #tpu.memory_space<vmem>>, vector<1x18x18x128xbf16>
    %1 = vector.shape_cast %0 : vector<1x18x18x128xbf16> to vector<18x18x128xbf16>
    %2 = arith.extf %1 : vector<18x18x128xbf16> to vector<18x18x128xf32>
    %c0_3 = arith.constant 0 : index
    %c0_4 = arith.constant 0 : index
    %c0_5 = arith.constant 0 : index
    %3 = vector.load %arg7[%c0_3, %c0_4, %c0_5] : memref<18x18x128xf32, #tpu.memory_space<vmem>>, vector<18x18x128xf32>
    tpu.vector_store %arg7[%c0_3, %c0_4, %c0_5], %2 {strides = array<i32>} : memref<18x18x128xf32, #tpu.memory_space<vmem>>, vector<18x18x128xf32>,
    %cst = arith.constant 0.000000e+00 : f32
    %4 = vector.broadcast %cst : f32 to vector<256x128xf32>
    %c0_6 = arith.constant 0 : index
    %c0_7 = arith.constant 0 : index
    %5 = vector.load %arg8[%c0_6, %c0_7] : memref<256x128xf32, #tpu.memory_space<vmem>>, vector<256x128xf32>
    tpu.vector_store %arg8[%c0_6, %c0_7], %4 {strides = array<i32>} : memref<256x128xf32, #tpu.memory_space<vmem>>, vector<256x128xf32>,
    %c0_8 = arith.constant 0 : index
    %c0_9 = arith.constant 0 : index
    %c0_10 = arith.constant 0 : index
    %6 = vector.load %arg7[%c0_8, %c0_9, %c0_10] : memref<18x18x128xf32, #tpu.memory_space<vmem>>, vector<16x16x128xf32>
    %7 = vector.shape_cast %6 : vector<16x16x128xf32> to vector<256x128xf32>
    %c0_11 = arith.constant 0 : index
    %c0_12 = arith.constant 0 : index
    %8 = vector.load %arg8[%c0_11, %c0_12] : memref<256x128xf32, #tpu.memory_space<vmem>>, vector<256x128xf32>
    %9 = arith.truncf %7 : vector<256x128xf32> to vector<256x128xbf16>
    %c0_13 = arith.constant 0 : index
    %c0_14 = arith.constant 0 : index
    %c0_15 = arith.constant 0 : index
    %10 = vector.load %arg3[%c0_13, %c0_14, %c0_15] : memref<9x128x128xbf16, #tpu.memory_space<vmem>>, vector<1x128x128xbf16>
    %11 = vector.shape_cast %10 : vector<1x128x128xbf16> to vector<128x128xbf16>
    %cst_16 = arith.constant dense<0.000000e+00> : vector<256x128xf32>
    %12 = tpu.matmul %9, %11, %cst_16 {dimension_numbers = #tpu.dot_dimension_numbers<[1], [0], [0], [1], [0, 0, 1, 1], [], []>} : vector<256x128xbf16>, vector<128x128xbf16>, vector<256x128xf32> -> vector<256x128xf32>
    %13 = arith.addf %8, %12 : vector<256x128xf32>
    %c0_17 = arith.constant 0 : index
    %c0_18 = arith.constant 0 : index
    %14 = vector.load %arg8[%c0_17, %c0_18] : memref<256x128xf32, #tpu.memory_space<vmem>>, vector<256x128xf32>
    tpu.vector_store %arg8[%c0_17, %c0_18], %13 {strides = array<i32>} : memref<256x128xf32, #tpu.memory_space<vmem>>, vector<256x128xf32>,
    %c0_19 = arith.constant 0 : index
    %c1 = arith.constant 1 : index
    %c0_20 = arith.constant 0 : index
    %15 = vector.load %arg7[%c0_19, %c1, %c0_20] : memref<18x18x128xf32, #tpu.memory_space<vmem>>, vector<16x16x128xf32>
    %16 = vector.shape_cast %15 : vector<16x16x128xf32> to vector<256x128xf32>
    %c0_21 = arith.constant 0 : index
    %c0_22 = arith.constant 0 : index
    %17 = vector.load %arg8[%c0_21, %c0_22] : memref<256x128xf32, #tpu.memory_space<vmem>>, vector<256x128xf32>
    %18 = arith.truncf %16 : vector<256x128xf32> to vector<256x128xbf16>
    %c1_23 = arith.constant 1 : index
    %c0_24 = arith.constant 0 : index
    %c0_25 = arith.constant 0 : index
    %19 = vector.load %arg3[%c1_23, %c0_24, %c0_25] : memref<9x128x128xbf16, #tpu.memory_space<vmem>>, vector<1x128x128xbf16>
    %20 = vector.shape_cast %19 : vector<1x128x128xbf16> to vector<128x128xbf16>
    %cst_26 = arith.constant dense<0.000000e+00> : vector<256x128xf32>
    %21 = tpu.matmul %18, %20, %cst_26 {dimension_numbers = #tpu.dot_dimension_numbers<[1], [0], [0], [1], [0, 0, 1, 1], [], []>} : vector<256x128xbf16>, vector<128x128xbf16>, vector<256x128xf32> -> vector<256x128xf32>
    %22 = arith.addf %17, %21 : vector<256x128xf32>
    %c0_27 = arith.constant 0 : index
    %c0_28 = arith.constant 0 : index
    %23 = vector.load %arg8[%c0_27, %c0_28] : memref<256x128xf32, #tpu.memory_space<vmem>>, vector<256x128xf32>
    tpu.vector_store %arg8[%c0_27, %c0_28], %22 {strides = array<i32>} : memref<256x128xf32, #tpu.memory_space<vmem>>, vector<256x128xf32>,
    %c0_29 = arith.constant 0 : index
    %c2 = arith.constant 2 : index
    %c0_30 = arith.constant 0 : index
    %24 = vector.load %arg7[%c0_29, %c2, %c0_30] : memref<18x18x128xf32, #tpu.memory_space<vmem>>, vector<16x16x128xf32>
    %25 = vector.shape_cast %24 : vector<16x16x128xf32> to vector<256x128xf32>
    %c0_31 = arith.constant 0 : index
    %c0_32 = arith.constant 0 : index
    %26 = vector.load %arg8[%c0_31, %c0_32] : memref<256x128xf32, #tpu.memory_space<vmem>>, vector<256x128xf32>
    %27 = arith.truncf %25 : vector<256x128xf32> to vector<256x128xbf16>
    %c2_33 = arith.constant 2 : index
    %c0_34 = arith.constant 0 : index
    %c0_35 = arith.constant 0 : index
    %28 = vector.load %arg3[%c2_33, %c0_34, %c0_35] : memref<9x128x128xbf16, #tpu.memory_space<vmem>>, vector<1x128x128xbf16>
    %29 = vector.shape_cast %28 : vector<1x128x128xbf16> to vector<128x128xbf16>
    %cst_36 = arith.constant dense<0.000000e+00> : vector<256x128xf32>
    %30 = tpu.matmul %27, %29, %cst_36 {dimension_numbers = #tpu.dot_dimension_numbers<[1], [0], [0], [1], [0, 0, 1, 1], [], []>} : vector<256x128xbf16>, vector<128x128xbf16>, vector<256x128xf32> -> vector<256x128xf32>
    %31 = arith.addf %26, %30 : vector<256x128xf32>
    %c0_37 = arith.constant 0 : index
    %c0_38 = arith.constant 0 : index
    %32 = vector.load %arg8[%c0_37, %c0_38] : memref<256x128xf32, #tpu.memory_space<vmem>>, vector<256x128xf32>
    tpu.vector_store %arg8[%c0_37, %c0_38], %31 {strides = array<i32>} : memref<256x128xf32, #tpu.memory_space<vmem>>, vector<256x128xf32>,
    %c1_39 = arith.constant 1 : index
    %c0_40 = arith.constant 0 : index
    %c0_41 = arith.constant 0 : index
    %33 = vector.load %arg7[%c1_39, %c0_40, %c0_41] : memref<18x18x128xf32, #tpu.memory_space<vmem>>, vector<16x16x128xf32>
    %34 = vector.shape_cast %33 : vector<16x16x128xf32> to vector<256x128xf32>
    %c0_42 = arith.constant 0 : index
    %c0_43 = arith.constant 0 : index
    %35 = vector.load %arg8[%c0_42, %c0_43] : memref<256x128xf32, #tpu.memory_space<vmem>>, vector<256x128xf32>
    %36 = arith.truncf %34 : vector<256x128xf32> to vector<256x128xbf16>
    %c3 = arith.constant 3 : index
    %c0_44 = arith.constant 0 : index
    %c0_45 = arith.constant 0 : index
    %37 = vector.load %arg3[%c3, %c0_44, %c0_45] : memref<9x128x128xbf16, #tpu.memory_space<vmem>>, vector<1x128x128xbf16>
    %38 = vector.shape_cast %37 : vector<1x128x128xbf16> to vector<128x128xbf16>
    %cst_46 = arith.constant dense<0.000000e+00> : vector<256x128xf32>
    %39 = tpu.matmul %36, %38, %cst_46 {dimension_numbers = #tpu.dot_dimension_numbers<[1], [0], [0], [1], [0, 0, 1, 1], [], []>} : vector<256x128xbf16>, vector<128x128xbf16>, vector<256x128xf32> -> vector<256x128xf32>
    %40 = arith.addf %35, %39 : vector<256x128xf32>
    %c0_47 = arith.constant 0 : index
    %c0_48 = arith.constant 0 : index
    %41 = vector.load %arg8[%c0_47, %c0_48] : memref<256x128xf32, #tpu.memory_space<vmem>>, vector<256x128xf32>
    tpu.vector_store %arg8[%c0_47, %c0_48], %40 {strides = array<i32>} : memref<256x128xf32, #tpu.memory_space<vmem>>, vector<256x128xf32>,
    %c1_49 = arith.constant 1 : index
    %c1_50 = arith.constant 1 : index
    %c0_51 = arith.constant 0 : index
    %42 = vector.load %arg7[%c1_49, %c1_50, %c0_51] : memref<18x18x128xf32, #tpu.memory_space<vmem>>, vector<16x16x128xf32>
    %43 = vector.shape_cast %42 : vector<16x16x128xf32> to vector<256x128xf32>
    %c0_52 = arith.constant 0 : index
    %c0_53 = arith.constant 0 : index
    %44 = vector.load %arg8[%c0_52, %c0_53] : memref<256x128xf32, #tpu.memory_space<vmem>>, vector<256x128xf32>
    %45 = arith.truncf %43 : vector<256x128xf32> to vector<256x128xbf16>
    %c4 = arith.constant 4 : index
    %c0_54 = arith.constant 0 : index
    %c0_55 = arith.constant 0 : index
    %46 = vector.load %arg3[%c4, %c0_54, %c0_55] : memref<9x128x128xbf16, #tpu.memory_space<vmem>>, vector<1x128x128xbf16>
    %47 = vector.shape_cast %46 : vector<1x128x128xbf16> to vector<128x128xbf16>
    %cst_56 = arith.constant dense<0.000000e+00> : vector<256x128xf32>
    %48 = tpu.matmul %45, %47, %cst_56 {dimension_numbers = #tpu.dot_dimension_numbers<[1], [0], [0], [1], [0, 0, 1, 1], [], []>} : vector<256x128xbf16>, vector<128x128xbf16>, vector<256x128xf32> -> vector<256x128xf32>
    %49 = arith.addf %44, %48 : vector<256x128xf32>
    %c0_57 = arith.constant 0 : index
    %c0_58 = arith.constant 0 : index
    %50 = vector.load %arg8[%c0_57, %c0_58] : memref<256x128xf32, #tpu.memory_space<vmem>>, vector<256x128xf32>
    tpu.vector_store %arg8[%c0_57, %c0_58], %49 {strides = array<i32>} : memref<256x128xf32, #tpu.memory_space<vmem>>, vector<256x128xf32>,
    %c1_59 = arith.constant 1 : index
    %c2_60 = arith.constant 2 : index
    %c0_61 = arith.constant 0 : index
    %51 = vector.load %arg7[%c1_59, %c2_60, %c0_61] : memref<18x18x128xf32, #tpu.memory_space<vmem>>, vector<16x16x128xf32>
    %52 = vector.shape_cast %51 : vector<16x16x128xf32> to vector<256x128xf32>
    %c0_62 = arith.constant 0 : index
    %c0_63 = arith.constant 0 : index
    %53 = vector.load %arg8[%c0_62, %c0_63] : memref<256x128xf32, #tpu.memory_space<vmem>>, vector<256x128xf32>
    %54 = arith.truncf %52 : vector<256x128xf32> to vector<256x128xbf16>
    %c5 = arith.constant 5 : index
    %c0_64 = arith.constant 0 : index
    %c0_65 = arith.constant 0 : index
    %55 = vector.load %arg3[%c5, %c0_64, %c0_65] : memref<9x128x128xbf16, #tpu.memory_space<vmem>>, vector<1x128x128xbf16>
    %56 = vector.shape_cast %55 : vector<1x128x128xbf16> to vector<128x128xbf16>
    %cst_66 = arith.constant dense<0.000000e+00> : vector<256x128xf32>
    %57 = tpu.matmul %54, %56, %cst_66 {dimension_numbers = #tpu.dot_dimension_numbers<[1], [0], [0], [1], [0, 0, 1, 1], [], []>} : vector<256x128xbf16>, vector<128x128xbf16>, vector<256x128xf32> -> vector<256x128xf32>
    %58 = arith.addf %53, %57 : vector<256x128xf32>
    %c0_67 = arith.constant 0 : index
    %c0_68 = arith.constant 0 : index
    %59 = vector.load %arg8[%c0_67, %c0_68] : memref<256x128xf32, #tpu.memory_space<vmem>>, vector<256x128xf32>
    tpu.vector_store %arg8[%c0_67, %c0_68], %58 {strides = array<i32>} : memref<256x128xf32, #tpu.memory_space<vmem>>, vector<256x128xf32>,
    %c2_69 = arith.constant 2 : index
    %c0_70 = arith.constant 0 : index
    %c0_71 = arith.constant 0 : index
    %60 = vector.load %arg7[%c2_69, %c0_70, %c0_71] : memref<18x18x128xf32, #tpu.memory_space<vmem>>, vector<16x16x128xf32>
    %61 = vector.shape_cast %60 : vector<16x16x128xf32> to vector<256x128xf32>
    %c0_72 = arith.constant 0 : index
    %c0_73 = arith.constant 0 : index
    %62 = vector.load %arg8[%c0_72, %c0_73] : memref<256x128xf32, #tpu.memory_space<vmem>>, vector<256x128xf32>
    %63 = arith.truncf %61 : vector<256x128xf32> to vector<256x128xbf16>
    %c6 = arith.constant 6 : index
    %c0_74 = arith.constant 0 : index
    %c0_75 = arith.constant 0 : index
    %64 = vector.load %arg3[%c6, %c0_74, %c0_75] : memref<9x128x128xbf16, #tpu.memory_space<vmem>>, vector<1x128x128xbf16>
    %65 = vector.shape_cast %64 : vector<1x128x128xbf16> to vector<128x128xbf16>
    %cst_76 = arith.constant dense<0.000000e+00> : vector<256x128xf32>
    %66 = tpu.matmul %63, %65, %cst_76 {dimension_numbers = #tpu.dot_dimension_numbers<[1], [0], [0], [1], [0, 0, 1, 1], [], []>} : vector<256x128xbf16>, vector<128x128xbf16>, vector<256x128xf32> -> vector<256x128xf32>
    %67 = arith.addf %62, %66 : vector<256x128xf32>
    %c0_77 = arith.constant 0 : index
    %c0_78 = arith.constant 0 : index
    %68 = vector.load %arg8[%c0_77, %c0_78] : memref<256x128xf32, #tpu.memory_space<vmem>>, vector<256x128xf32>
    tpu.vector_store %arg8[%c0_77, %c0_78], %67 {strides = array<i32>} : memref<256x128xf32, #tpu.memory_space<vmem>>, vector<256x128xf32>,
    %c2_79 = arith.constant 2 : index
    %c1_80 = arith.constant 1 : index
    %c0_81 = arith.constant 0 : index
    %69 = vector.load %arg7[%c2_79, %c1_80, %c0_81] : memref<18x18x128xf32, #tpu.memory_space<vmem>>, vector<16x16x128xf32>
    %70 = vector.shape_cast %69 : vector<16x16x128xf32> to vector<256x128xf32>
    %c0_82 = arith.constant 0 : index
    %c0_83 = arith.constant 0 : index
    %71 = vector.load %arg8[%c0_82, %c0_83] : memref<256x128xf32, #tpu.memory_space<vmem>>, vector<256x128xf32>
    %72 = arith.truncf %70 : vector<256x128xf32> to vector<256x128xbf16>
    %c7 = arith.constant 7 : index
    %c0_84 = arith.constant 0 : index
    %c0_85 = arith.constant 0 : index
    %73 = vector.load %arg3[%c7, %c0_84, %c0_85] : memref<9x128x128xbf16, #tpu.memory_space<vmem>>, vector<1x128x128xbf16>
    %74 = vector.shape_cast %73 : vector<1x128x128xbf16> to vector<128x128xbf16>
    %cst_86 = arith.constant dense<0.000000e+00> : vector<256x128xf32>
    %75 = tpu.matmul %72, %74, %cst_86 {dimension_numbers = #tpu.dot_dimension_numbers<[1], [0], [0], [1], [0, 0, 1, 1], [], []>} : vector<256x128xbf16>, vector<128x128xbf16>, vector<256x128xf32> -> vector<256x128xf32>
    %76 = arith.addf %71, %75 : vector<256x128xf32>
    %c0_87 = arith.constant 0 : index
    %c0_88 = arith.constant 0 : index
    %77 = vector.load %arg8[%c0_87, %c0_88] : memref<256x128xf32, #tpu.memory_space<vmem>>, vector<256x128xf32>
    tpu.vector_store %arg8[%c0_87, %c0_88], %76 {strides = array<i32>} : memref<256x128xf32, #tpu.memory_space<vmem>>, vector<256x128xf32>,
    %c2_89 = arith.constant 2 : index
    %c2_90 = arith.constant 2 : index
    %c0_91 = arith.constant 0 : index
    %78 = vector.load %arg7[%c2_89, %c2_90, %c0_91] : memref<18x18x128xf32, #tpu.memory_space<vmem>>, vector<16x16x128xf32>
    %79 = vector.shape_cast %78 : vector<16x16x128xf32> to vector<256x128xf32>
    %c0_92 = arith.constant 0 : index
    %c0_93 = arith.constant 0 : index
    %80 = vector.load %arg8[%c0_92, %c0_93] : memref<256x128xf32, #tpu.memory_space<vmem>>, vector<256x128xf32>
    %81 = arith.truncf %79 : vector<256x128xf32> to vector<256x128xbf16>
    %c8 = arith.constant 8 : index
    %c0_94 = arith.constant 0 : index
    %c0_95 = arith.constant 0 : index
    %82 = vector.load %arg3[%c8, %c0_94, %c0_95] : memref<9x128x128xbf16, #tpu.memory_space<vmem>>, vector<1x128x128xbf16>
    %83 = vector.shape_cast %82 : vector<1x128x128xbf16> to vector<128x128xbf16>
    %cst_96 = arith.constant dense<0.000000e+00> : vector<256x128xf32>
    %84 = tpu.matmul %81, %83, %cst_96 {dimension_numbers = #tpu.dot_dimension_numbers<[1], [0], [0], [1], [0, 0, 1, 1], [], []>} : vector<256x128xbf16>, vector<128x128xbf16>, vector<256x128xf32> -> vector<256x128xf32>
    %85 = arith.addf %80, %84 : vector<256x128xf32>
    %c0_97 = arith.constant 0 : index
    %c0_98 = arith.constant 0 : index
    %86 = vector.load %arg8[%c0_97, %c0_98] : memref<256x128xf32, #tpu.memory_space<vmem>>, vector<256x128xf32>
    tpu.vector_store %arg8[%c0_97, %c0_98], %85 {strides = array<i32>} : memref<256x128xf32, #tpu.memory_space<vmem>>, vector<256x128xf32>,
    %c0_99 = arith.constant 0 : index
    %c0_100 = arith.constant 0 : index
    %87 = vector.load %arg8[%c0_99, %c0_100] : memref<256x128xf32, #tpu.memory_space<vmem>>, vector<256x128xf32>
    %c0_101 = arith.constant 0 : index
    %c0_102 = arith.constant 0 : index
    %88 = vector.load %arg4[%c0_101, %c0_102] : memref<1x128xf32, #tpu.memory_space<vmem>>, vector<1x128xf32>
    %89 = vector.broadcast %88 : vector<1x128xf32> to vector<256x128xf32>
    %90 = arith.addf %87, %89 : vector<256x128xf32>
    %91 = vector.shape_cast %90 : vector<256x128xf32> to vector<1x16x16x128xf32>
    %c0_103 = arith.constant 0 : index
    %c0_104 = arith.constant 0 : index
    %c0_105 = arith.constant 0 : index
    %c0_106 = arith.constant 0 : index
    %92 = vector.load %arg5[%c0_103, %c0_104, %c0_105, %c0_106] : memref<1x16x16x128xbf16, #tpu.memory_space<vmem>>, vector<1x16x16x128xbf16>
    %93 = arith.extf %92 : vector<1x16x16x128xbf16> to vector<1x16x16x128xf32>
    %94 = arith.addf %91, %93 : vector<1x16x16x128xf32>
    %cst_107 = arith.constant 0.000000e+00 : f32
    %95 = vector.broadcast %cst_107 : f32 to vector<1x16x16x128xf32>
    %96 = arith.maximumf %94, %95 : vector<1x16x16x128xf32>
    %97 = arith.truncf %96 : vector<1x16x16x128xf32> to vector<1x16x16x128xbf16>
    %c0_108 = arith.constant 0 : index
    %c0_109 = arith.constant 0 : index
    %c0_110 = arith.constant 0 : index
    %c0_111 = arith.constant 0 : index
    %98 = vector.load %arg6[%c0_108, %c0_109, %c0_110, %c0_111] : memref<1x16x16x128xbf16, #tpu.memory_space<vmem>>, vector<1x16x16x128xbf16>
    tpu.vector_store %arg6[%c0_108, %c0_109, %c0_110, %c0_111], %97 {strides = array<i32>} : memref<1x16x16x128xbf16, #tpu.memory_space<vmem>>, vector<1x16x16x128xbf16>,
    return
  }
  func.func @transform_0(%arg0: i32, %arg1: i32) -> (i32, i32, i32, i32) {
    %c0_i32 = arith.constant 0 : i32
    %c0_i32_0 = arith.constant 0 : i32
    %c0_i32_1 = arith.constant 0 : i32
    %c0_i32_2 = arith.constant 0 : i32
    return %arg0, %c0_i32, %c0_i32_0, %c0_i32_1 : i32, i32, i32, i32
  }
  func.func @transform_1(%arg0: i32, %arg1: i32) -> (i32, i32, i32) {
    %c0_i32 = arith.constant 0 : i32
    %c0_i32_0 = arith.constant 0 : i32
    %c0_i32_1 = arith.constant 0 : i32
    return %c0_i32, %c0_i32_0, %arg1 : i32, i32, i32
  }
  func.func @transform_2(%arg0: i32, %arg1: i32) -> (i32, i32) {
    %c0_i32 = arith.constant 0 : i32
    %c0_i32_0 = arith.constant 0 : i32
    return %c0_i32, %arg1 : i32, i32
  }
  func.func @transform_3(%arg0: i32, %arg1: i32) -> (i32, i32, i32, i32) {
    %c0_i32 = arith.constant 0 : i32
    %c0_i32_0 = arith.constant 0 : i32
    %c0_i32_1 = arith.constant 0 : i32
    return %arg0, %c0_i32, %c0_i32_0, %arg1 : i32, i32, i32, i32
  }
  func.func @transform_4(%arg0: i32, %arg1: i32) -> (i32, i32, i32, i32) {
    %c0_i32 = arith.constant 0 : i32
    %c0_i32_0 = arith.constant 0 : i32
    %c0_i32_1 = arith.constant 0 : i32
    return %arg0, %c0_i32, %c0_i32_0, %arg1 : i32, i32, i32, i32
  }
}

module attributes {stable_mosaic.version = 11 : i64} {
  func.func @_head_kernel(%arg0: i32, %arg1: memref<2x256x128xbf16, #tpu.memory_space<vmem>>, %arg2: memref<128x128xf32, #tpu.memory_space<vmem>>, %arg3: memref<1x128xf32, #tpu.memory_space<vmem>>, %arg4: memref<2x1xi32, #tpu.memory_space<vmem>>, %arg5: memref<2x128xf32, #tpu.memory_space<vmem>>, %arg6: memref<1x1xf32, #tpu.memory_space<vmem>>) attributes {dimension_semantics = [#tpu.dimension_semantics<arbitrary>], iteration_bounds = array<i64: 1>, scalar_prefetch = 0 : i64, scratch_operands = 0 : i64, tpu.core_type = #tpu.core_type<tc>, window_params = [{pipeline_mode = #tpu.pipeline_mode<synchronous>, transform_indices = @transform_0, window_bounds = array<i64: 2, 256, 128>}, {pipeline_mode = #tpu.pipeline_mode<synchronous>, transform_indices = @transform_1, window_bounds = array<i64: 128, 128>}, {pipeline_mode = #tpu.pipeline_mode<synchronous>, transform_indices = @transform_2, window_bounds = array<i64: 1, 128>}, {pipeline_mode = #tpu.pipeline_mode<synchronous>, transform_indices = @transform_3, window_bounds = array<i64: 2, 1>}, {pipeline_mode = #tpu.pipeline_mode<synchronous>, transform_indices = @transform_4, window_bounds = array<i64: 2, 128>}, {pipeline_mode = #tpu.pipeline_mode<synchronous>, transform_indices = @transform_5, window_bounds = array<i64: 1, 1>}]} {
    %c0 = arith.constant 0 : index
    %c0_0 = arith.constant 0 : index
    %c0_1 = arith.constant 0 : index
    %0 = vector.load %arg1[%c0, %c0_0, %c0_1] : memref<2x256x128xbf16, #tpu.memory_space<vmem>>, vector<2x256x128xbf16>
    %1 = arith.extf %0 : vector<2x256x128xbf16> to vector<2x256x128xf32>
    %cst = arith.constant dense<0.000000e+00> : vector<2x128xf32>
    %2 = vector.multi_reduction <add>, %1, %cst [1] : vector<2x256x128xf32> to vector<2x128xf32>
    %cst_2 = arith.constant 2.560000e+02 : f32
    %3 = vector.broadcast %cst_2 : f32 to vector<2x128xf32>
    %4 = arith.divf %2, %3 : vector<2x128xf32>
    %c0_3 = arith.constant 0 : index
    %c0_4 = arith.constant 0 : index
    %5 = vector.load %arg2[%c0_3, %c0_4] : memref<128x128xf32, #tpu.memory_space<vmem>>, vector<128x128xf32>
    %cst_5 = arith.constant dense<0.000000e+00> : vector<2x128xf32>
    %6 = tpu.matmul %4, %5, %cst_5 {dimension_numbers = #tpu.dot_dimension_numbers<[1], [0], [0], [1], [0, 0, 1, 1], [], []>} : vector<2x128xf32>, vector<128x128xf32>, vector<2x128xf32> -> vector<2x128xf32>
    %c0_6 = arith.constant 0 : index
    %c0_7 = arith.constant 0 : index
    %7 = vector.load %arg3[%c0_6, %c0_7] : memref<1x128xf32, #tpu.memory_space<vmem>>, vector<1x128xf32>
    %8 = vector.broadcast %7 : vector<1x128xf32> to vector<2x128xf32>
    %9 = arith.addf %6, %8 : vector<2x128xf32>
    %c0_8 = arith.constant 0 : index
    %c0_9 = arith.constant 0 : index
    %10 = vector.load %arg5[%c0_8, %c0_9] : memref<2x128xf32, #tpu.memory_space<vmem>>, vector<2x128xf32>
    tpu.vector_store %arg5[%c0_8, %c0_9], %9 {strides = array<i32>} : memref<2x128xf32, #tpu.memory_space<vmem>>, vector<2x128xf32>,
    %11 = tpu.iota {dimensions = array<i32: 1>} : vector<2x128xi32>
    %c10_i32 = arith.constant 10 : i32
    %12 = vector.broadcast %c10_i32 : i32 to vector<2x128xi32>
    %13 = arith.cmpi slt, %11, %12 : vector<2x128xi32>
    %cst_10 = arith.constant -1.000000e+30 : f32
    %14 = vector.broadcast %cst_10 : f32 to vector<2x128xf32>
    %15 = arith.select %13, %9, %14 : vector<2x128xi1>, vector<2x128xf32>
    %cst_11 = arith.constant dense<0xFF800000> : vector<2xf32>
    %16 = vector.multi_reduction <maximumf>, %15, %cst_11 [1] : vector<2x128xf32> to vector<2xf32>
    %17 = vector.shape_cast %16 : vector<2xf32> to vector<2x1xf32>
    %18 = vector.broadcast %17 : vector<2x1xf32> to vector<2x128xf32>
    %19 = arith.subf %15, %18 : vector<2x128xf32>
    %20 = math.exp %19 : vector<2x128xf32>
    %cst_12 = arith.constant dense<0.000000e+00> : vector<2xf32>
    %21 = vector.multi_reduction <add>, %20, %cst_12 [1] : vector<2x128xf32> to vector<2xf32>
    %22 = vector.shape_cast %21 : vector<2xf32> to vector<2x1xf32>
    %23 = math.log %22 : vector<2x1xf32>
    %24 = arith.addf %17, %23 : vector<2x1xf32>
    %c0_13 = arith.constant 0 : index
    %c0_14 = arith.constant 0 : index
    %25 = vector.load %arg4[%c0_13, %c0_14] : memref<2x1xi32, #tpu.memory_space<vmem>>, vector<2x1xi32>
    %26 = vector.broadcast %25 : vector<2x1xi32> to vector<2x128xi32>
    %27 = arith.cmpi eq, %11, %26 : vector<2x128xi32>
    %28 = arith.extui %27 : vector<2x128xi1> to vector<2x128xi32>
    %29 = arith.sitofp %28 : vector<2x128xi32> to vector<2x128xf32>
    %30 = arith.mulf %9, %29 : vector<2x128xf32>
    %cst_15 = arith.constant dense<0.000000e+00> : vector<2xf32>
    %31 = vector.multi_reduction <add>, %30, %cst_15 [1] : vector<2x128xf32> to vector<2xf32>
    %32 = vector.shape_cast %31 : vector<2xf32> to vector<2x1xf32>
    %33 = arith.subf %24, %32 : vector<2x1xf32>
    %cst_16 = arith.constant dense<0.000000e+00> : vector<1xf32>
    %34 = vector.multi_reduction <add>, %33, %cst_16 [0] : vector<2x1xf32> to vector<1xf32>
    %35 = vector.shape_cast %34 : vector<1xf32> to vector<1x1xf32>
    %cst_17 = arith.constant 2.000000e+00 : f32
    %36 = vector.broadcast %cst_17 : f32 to vector<1x1xf32>
    %37 = arith.divf %35, %36 : vector<1x1xf32>
    %c0_18 = arith.constant 0 : index
    %c0_19 = arith.constant 0 : index
    %38 = vector.load %arg6[%c0_18, %c0_19] : memref<1x1xf32, #tpu.memory_space<vmem>>, vector<1x1xf32>
    tpu.vector_store %arg6[%c0_18, %c0_19], %37 {strides = array<i32>} : memref<1x1xf32, #tpu.memory_space<vmem>>, vector<1x1xf32>,
    return
  }
  func.func @transform_0(%arg0: i32) -> (i32, i32, i32) {
    %c0_i32 = arith.constant 0 : i32
    %c0_i32_0 = arith.constant 0 : i32
    %c0_i32_1 = arith.constant 0 : i32
    %c0_i32_2 = arith.constant 0 : i32
    return %c0_i32, %c0_i32_0, %c0_i32_1 : i32, i32, i32
  }
  func.func @transform_1(%arg0: i32) -> (i32, i32) {
    %c0_i32 = arith.constant 0 : i32
    %c0_i32_0 = arith.constant 0 : i32
    %c0_i32_1 = arith.constant 0 : i32
    return %c0_i32, %c0_i32_0 : i32, i32
  }
  func.func @transform_2(%arg0: i32) -> (i32, i32) {
    %c0_i32 = arith.constant 0 : i32
    %c0_i32_0 = arith.constant 0 : i32
    %c0_i32_1 = arith.constant 0 : i32
    return %c0_i32, %c0_i32_0 : i32, i32
  }
  func.func @transform_3(%arg0: i32) -> (i32, i32) {
    %c0_i32 = arith.constant 0 : i32
    %c0_i32_0 = arith.constant 0 : i32
    %c0_i32_1 = arith.constant 0 : i32
    return %c0_i32, %c0_i32_0 : i32, i32
  }
  func.func @transform_4(%arg0: i32) -> (i32, i32) {
    %c0_i32 = arith.constant 0 : i32
    %c0_i32_0 = arith.constant 0 : i32
    %c0_i32_1 = arith.constant 0 : i32
    return %c0_i32, %c0_i32_0 : i32, i32
  }
  func.func @transform_5(%arg0: i32) -> (i32, i32) {
    %c0_i32 = arith.constant 0 : i32
    %c0_i32_0 = arith.constant 0 : i32
    %c0_i32_1 = arith.constant 0 : i32
    return %c0_i32, %c0_i32_0 : i32, i32
  }
}

</mosaic_0001>

<bundles_post_ra>
// kernel: model_and_loss_forward.4
= control target key start
LH: loop header
LB: loop body
LE: loop exit
PB: predicated region body
PF: predicated region fallthrough
CT: control target
= control target key end

     0   :  { %s1236_s12 = smov 0   ;;  %s1238_s13 = smov 0   ;;  %s1374_s0 = inlined_call_operand.vmem [shape: bf16[512,36], index: 0, kind: input, shape index: {}]   ;;  %s1375_s1 = inlined_call_operand.vmem [shape: bf16[36,128], index: 1, kind: input, shape index: {}]   ;;  %s1376_s2 = inlined_call_operand.vmem [shape: f32[1,128], index: 2, kind: input, shape index: {}]   ;;  %s1377_s3 = inlined_call_operand.vmem [shape: bf16[512,128], index: 3, kind: output, shape index: {}]  }
   0x1   :  { %s1240_s14 = smov 0  }
   0x2 LB: > { %s32_s15 = sadd.s32 1, %s1210_s13  ;;  %p950_p0 = scmp.ge.s32.totalorder %s1214_s14, 1  ;;  %s1214_s14 = sphi %s1240_s14, %s13_s14   ;;  %s1210_s13 = sphi %s1238_s13, %s1379_s13   ;;  %s1206_s12 = sphi %s1236_s12, %s1378_s12  }
   0x3   : > { %p34_p1 = scmp.ge.s32.totalorder %s32_s15, 2  ;;  %p188_p2 = scmp.lt.s32.totalorder %s1214_s14, 3 }
   0x5   : > { %s1381_s15 = smov (%p34_p1, %s32_s15), 0  ;;  %p189_p3 = pnand %p950_p0, %p188_p2 }
   0x6   : > { %s951_s18 = sshll.u32 (!%p189_p3), %s1206_s12, 5 }
   0x7   : > { %192 = sbr.rel (%p189_p3) target bundleno = 226 (0xe2), region = 32  ;;  %p230_p4 = scmp.lt.s32.totalorder (!%p189_p3), %s951_s18, 63 }
   0xc   : > { %v364_v0 = vld [vmem:[%s1375_s1 + $0x10] sm:$0x3]  ;;  %vm509_vm0 = vcmask 1041408   ;;  %s1383_s18 = smov (!%p230_p4, %s951_s18), 63  ;;  %v1062_v4 = vld [vmem:[%s1375_s1 + $0x8] sm:$0xff]  ;;  %v1061_v5 = vld [vmem:[%s1375_s1] sm:$0xff] }
   0xd   : > { %v454_v1 = vunpack.c.l.b16 %v364_v0  ;;  %s952_s21 = sshll.u32 %s1383_s18, 2  ;;  %vm460_vm1 = vcmask 293888   ;;  %v1308_v24 = vld [vmem:[%s1376_s2] ss:$0 sm:$0xff] }
   0xe   : > { %s1271_s26 = scalar_lea.vmem %s1374_s0, %s952_s21  ;;  %s1319_s4 = scalar_lea.vmem %s1377_s3, %s952_s21 }
   0xf   : > { %v457_v2 = vpack.c.b16 %v454_v1, %v454_v1  ;;  %v1045_v6 = vld [vmem:[%s1271_s26] sm:$0xff]  ;;  %v1046_v10 = vld [vmem:[%s1271_s26 + $0x8] sm:$0xff]  ;;  %v1047_v14 = vld [vmem:[%s1271_s26 + $0x10] sm:$0xff] }
  0x10   : > { %v1049_v7 = vld [vmem:[%s1271_s26 + $0x20] sm:$0xff]  ;;  %v1050_v11 = vld [vmem:[%s1271_s26 + $0x28] sm:$0xff]  ;;  %v1051_v15 = vld [vmem:[%s1271_s26 + $0x30] sm:$0xff] }
  0x11   : > { %v511_v3 = vsel %vm509_vm0, %v457_v2, 0  ;;  %v1053_v8 = vld [vmem:[%s1271_s26 + $0x40] sm:$0xff]  ;;  %v1054_v12 = vld [vmem:[%s1271_s26 + $0x48] sm:$0xff]  ;;  %v1055_v16 = vld [vmem:[%s1271_s26 + $0x50] sm:$0xff] }
  0x12   : > { %518 = vmatpush.bf16.msra.mxu0 %v511_v3  ;;  %1158 = vmatpush.bf16.msra.mxu1 %v511_v3  ;;  %v1057_v9 = vld [vmem:[%s1271_s26 + $0x60] sm:$0xff]  ;;  %v1058_v13 = vld [vmem:[%s1271_s26 + $0x68] sm:$0xff]  ;;  %v1059_v17 = vld [vmem:[%s1271_s26 + $0x70] sm:$0xff] }
  0x13   : > { %1159 = vmatpush.bf16.msra.mxu2 %v511_v3  ;;  %1160 = vmatpush.bf16.msra.mxu3 %v511_v3  ;;  %v1048_v18 = vld [vmem:[%s1271_s26 + $0x18] sm:$0xff] }
  0x14   : > { %v1052_v19 = vld [vmem:[%s1271_s26 + $0x38] sm:$0xff] }
  0x15   : > { %v1056_v20 = vld [vmem:[%s1271_s26 + $0x58] sm:$0xff] }
  0x16   : > { %519 = vmatpush.bf16.msra.mxu0 %v1062_v4  ;;  %1161 = vmatpush.bf16.msra.mxu1 %v1062_v4  ;;  %v1060_v21 = vld [vmem:[%s1271_s26 + $0x78] sm:$0xff] }
  0x17   : > { %1162 = vmatpush.bf16.msra.mxu2 %v1062_v4  ;;  %1163 = vmatpush.bf16.msra.mxu3 %v1062_v4 }
  0x1a   : > { %520 = vmatpush.bf16.msra.mxu0 %v1061_v5  ;;  %1164 = vmatpush.bf16.msra.mxu1 %v1061_v5 }
  0x1b   : > { %1165 = vmatpush.bf16.msra.mxu2 %v1061_v5  ;;  %1166 = vmatpush.bf16.msra.mxu3 %v1061_v5 }
  0x1d   : > { %1027 = vmatmul.msk.bf16.vlgmr.msra.gmra.mxu0 %vm460_vm1, %v1045_v6  ;;  %1031 = vmatmul.msk.bf16.vlgmr.msra.gmra.mxu1 %vm460_vm1, %v1049_v7 }
  0x1e   : > { %1035 = vmatmul.msk.bf16.vlgmr.msra.gmra.mxu2 %vm460_vm1, %v1053_v8  ;;  %1039 = vmatmul.msk.bf16.vlgmr.msra.gmra.mxu3 %vm460_vm1, %v1057_v9 }
  0x2d   : > { %1028 = vmatmul.msk.bf16.gmra.mxu0 %vm460_vm1, %v1046_v10  ;;  %1032 = vmatmul.msk.bf16.gmra.mxu1 %vm460_vm1, %v1050_v11 }
  0x2e   : > { %1036 = vmatmul.msk.bf16.gmra.mxu2 %vm460_vm1, %v1054_v12  ;;  %1040 = vmatmul.msk.bf16.gmra.mxu3 %vm460_vm1, %v1058_v13 }
  0x3d   : > { %1029 = vmatmul.msk.bf16.gmra.mxu0 %vm460_vm1, %v1047_v14  ;;  %1033 = vmatmul.msk.bf16.gmra.mxu1 %vm460_vm1, %v1051_v15 }
  0x3e   : > { %1037 = vmatmul.msk.bf16.gmra.mxu2 %vm460_vm1, %v1055_v16  ;;  %1041 = vmatmul.msk.bf16.gmra.mxu3 %vm460_vm1, %v1059_v17 }
  0x4d   : > { %1030 = vmatmul.msk.bf16.gmra.mxu0 %vm460_vm1, %v1048_v18  ;;  %1034 = vmatmul.msk.bf16.gmra.mxu1 %vm460_vm1, %v1052_v19 }
  0x4e   : > { %1038 = vmatmul.msk.bf16.gmra.mxu2 %vm460_vm1, %v1056_v20  ;;  %1042 = vmatmul.msk.bf16.gmra.mxu3 %vm460_vm1, %v1060_v21 }
  0x9a   : > { %v522_v22 = vpop.f32.mrf.mxu0  ;;  %v542_v23 = vpop.f32.mrf.mxu1 }
  0x9b   : > { %v705_v25 = vadd.f32 %v1308_v24, %v522_v22  ;;  %v713_v26 = vadd.f32 %v1308_v24, %v542_v23 }
  0x9d   : > { %v737_v33 = vmax.f32 %v705_v25, 0.0  ;;  %v745_v34 = vmax.f32 %v713_v26, 0.0 }
  0xa1   : > { %v562_v27 = vpop.f32.mrf.mxu2  ;;  %v582_v28 = vpop.f32.mrf.mxu3 }
  0xa2   : > { %v524_v29 = vpop.f32.mrf.mxu0  ;;  %v544_v30 = vpop.f32.mrf.mxu1  ;;  %v721_v39 = vadd.f32 %v1308_v24, %v562_v27  ;;  %v729_v40 = vadd.f32 %v1308_v24, %v582_v28 }
  0xa3   : > { %v706_v31 = vadd.f32 %v1308_v24, %v524_v29  ;;  %v714_v32 = vadd.f32 %v1308_v24, %v544_v30 }
  0xa4   : > { %v753_v47 = vmax.f32 %v721_v39, 0.0  ;;  %v761_v48 = vmax.f32 %v729_v40, 0.0 }
  0xa5   : > { %v738_v35 = vmax.f32 %v706_v31, 0.0  ;;  %v746_v36 = vmax.f32 %v714_v32, 0.0 }
  0xa7   : > { %v1066_v37 = vpack.c.bf16 %v738_v35, %v737_v33  ;;  %v1086_v38 = vpack.c.bf16 %v746_v36, %v745_v34 }
  0xa9   : > { %1067 = vst [vmem:[%s1319_s4] sm:$0xff] %v1066_v37   ;;  %v564_v41 = vpop.f32.mrf.mxu2  ;;  %v584_v42 = vpop.f32.mrf.mxu3 }
  0xaa   : > { %1146 = vst [vmem:[%s1319_s4 + $0x20] sm:$0xff] %v1086_v38   ;;  %v722_v43 = vadd.f32 %v1308_v24, %v564_v41  ;;  %v730_v44 = vadd.f32 %v1308_v24, %v584_v42  ;;  %v527_v45 = vpop.f32.mrf.mxu0  ;;  %v547_v46 = vpop.f32.mrf.mxu1 }
  0xab   : > { %v707_v53 = vadd.f32 %v1308_v24, %v527_v45  ;;  %v715_v54 = vadd.f32 %v1308_v24, %v547_v46 }
  0xac   : > { %v754_v49 = vmax.f32 %v722_v43, 0.0  ;;  %v762_v50 = vmax.f32 %v730_v44, 0.0 }
  0xad   : > { %v739_v61 = vmax.f32 %v707_v53, 0.0  ;;  %v747_v62 = vmax.f32 %v715_v54, 0.0 }
  0xae   : > { %v1106_v51 = vpack.c.bf16 %v754_v49, %v753_v47  ;;  %v1126_v52 = vpack.c.bf16 %v762_v50, %v761_v48 }
  0xb0   : > { %1150 = vst [vmem:[%s1319_s4 + $0x40] sm:$0xff] %v1106_v51  }
  0xb1   : > { %1154 = vst [vmem:[%s1319_s4 + $0x60] sm:$0xff] %v1126_v52   ;;  %v567_v55 = vpop.f32.mrf.mxu2  ;;  %v587_v56 = vpop.f32.mrf.mxu3 }
  0xb2   : > { %v529_v57 = vpop.f32.mrf.mxu0  ;;  %v549_v58 = vpop.f32.mrf.mxu1  ;;  %v723_v3 = vadd.f32 %v1308_v24, %v567_v55  ;;  %v731_v4 = vadd.f32 %v1308_v24, %v587_v56 }
  0xb3   : > { %v708_v59 = vadd.f32 %v1308_v24, %v529_v57  ;;  %v716_v60 = vadd.f32 %v1308_v24, %v549_v58 }
  0xb4   : > { %v755_v11 = vmax.f32 %v723_v3, 0.0  ;;  %v763_v12 = vmax.f32 %v731_v4, 0.0 }
  0xb5   : > { %v740_v63 = vmax.f32 %v708_v59, 0.0  ;;  %v748_v0 = vmax.f32 %v716_v60, 0.0 }
  0xb7   : > { %v1071_v1 = vpack.c.bf16 %v740_v63, %v739_v61  ;;  %v1091_v2 = vpack.c.bf16 %v748_v0, %v747_v62 }
  0xb9   : > { %1143 = vst [vmem:[%s1319_s4 + $0x8] sm:$0xff] %v1071_v1   ;;  %v569_v5 = vpop.f32.mrf.mxu2  ;;  %v589_v6 = vpop.f32.mrf.mxu3 }
  0xba   : > { %1147 = vst [vmem:[%s1319_s4 + $0x28] sm:$0xff] %v1091_v2   ;;  %v724_v7 = vadd.f32 %v1308_v24, %v569_v5  ;;  %v732_v8 = vadd.f32 %v1308_v24, %v589_v6  ;;  %v532_v9 = vpop.f32.mrf.mxu0  ;;  %v552_v10 = vpop.f32.mrf.mxu1 }
  0xbb   : > { %v709_v17 = vadd.f32 %v1308_v24, %v532_v9  ;;  %v717_v18 = vadd.f32 %v1308_v24, %v552_v10 }
  0xbc   : > { %v756_v13 = vmax.f32 %v724_v7, 0.0  ;;  %v764_v14 = vmax.f32 %v732_v8, 0.0 }
  0xbd   : > { %v741_v26 = vmax.f32 %v709_v17, 0.0  ;;  %v749_v27 = vmax.f32 %v717_v18, 0.0 }
  0xbe   : > { %v1111_v15 = vpack.c.bf16 %v756_v13, %v755_v11  ;;  %v1131_v16 = vpack.c.bf16 %v764_v14, %v763_v12 }
  0xc0   : > { %1151 = vst [vmem:[%s1319_s4 + $0x48] sm:$0xff] %v1111_v15  }
  0xc1   : > { %1155 = vst [vmem:[%s1319_s4 + $0x68] sm:$0xff] %v1131_v16   ;;  %v572_v19 = vpop.f32.mrf.mxu2  ;;  %v592_v20 = vpop.f32.mrf.mxu3 }
  0xc2   : > { %v534_v21 = vpop.f32.mrf.mxu0  ;;  %v554_v22 = vpop.f32.mrf.mxu1  ;;  %v725_v32 = vadd.f32 %v1308_v24, %v572_v19  ;;  %v733_v33 = vadd.f32 %v1308_v24, %v592_v20 }
  0xc3   : > { %v710_v23 = vadd.f32 %v1308_v24, %v534_v21  ;;  %v718_v25 = vadd.f32 %v1308_v24, %v554_v22 }
  0xc4   : > { %v757_v40 = vmax.f32 %v725_v32, 0.0  ;;  %v765_v41 = vmax.f32 %v733_v33, 0.0 }
  0xc5   : > { %v742_v28 = vmax.f32 %v710_v23, 0.0  ;;  %v750_v29 = vmax.f32 %v718_v25, 0.0 }
  0xc7   : > { %v1076_v30 = vpack.c.bf16 %v742_v28, %v741_v26  ;;  %v1096_v31 = vpack.c.bf16 %v750_v29, %v749_v27 }
  0xc9   : > { %1144 = vst [vmem:[%s1319_s4 + $0x10] sm:$0xff] %v1076_v30   ;;  %v574_v34 = vpop.f32.mrf.mxu2  ;;  %v594_v35 = vpop.f32.mrf.mxu3 }
  0xca   : > { %1148 = vst [vmem:[%s1319_s4 + $0x30] sm:$0xff] %v1096_v31   ;;  %v726_v36 = vadd.f32 %v1308_v24, %v574_v34  ;;  %v734_v37 = vadd.f32 %v1308_v24, %v594_v35  ;;  %v537_v38 = vpop.f32.mrf.mxu0  ;;  %v557_v39 = vpop.f32.mrf.mxu1 }
  0xcb   : > { %v711_v46 = vadd.f32 %v1308_v24, %v537_v38  ;;  %v719_v47 = vadd.f32 %v1308_v24, %v557_v39 }
  0xcc   : > { %v758_v42 = vmax.f32 %v726_v36, 0.0  ;;  %v766_v43 = vmax.f32 %v734_v37, 0.0 }
  0xcd   : > { %v743_v54 = vmax.f32 %v711_v46, 0.0  ;;  %v751_v55 = vmax.f32 %v719_v47, 0.0 }
  0xce   : > { %v1116_v44 = vpack.c.bf16 %v758_v42, %v757_v40  ;;  %v1136_v45 = vpack.c.bf16 %v766_v43, %v765_v41 }
  0xd0   : > { %1152 = vst [vmem:[%s1319_s4 + $0x50] sm:$0xff] %v1116_v44  }
  0xd1   : > { %1156 = vst [vmem:[%s1319_s4 + $0x70] sm:$0xff] %v1136_v45   ;;  %v577_v48 = vpop.f32.mrf.mxu2  ;;  %v597_v49 = vpop.f32.mrf.mxu3 }
  0xd2   : > { %v539_v50 = vpop.f32.mrf.mxu0  ;;  %v559_v51 = vpop.f32.mrf.mxu1  ;;  %v727_v60 = vadd.f32 %v1308_v24, %v577_v48  ;;  %v735_v61 = vadd.f32 %v1308_v24, %v597_v49 }
  0xd3   : > { %v712_v52 = vadd.f32 %v1308_v24, %v539_v50  ;;  %v720_v53 = vadd.f32 %v1308_v24, %v559_v51 }
  0xd4   : > { %v759_v2 = vmax.f32 %v727_v60, 0.0  ;;  %v767_v3 = vmax.f32 %v735_v61, 0.0 }
  0xd5   : > { %v744_v56 = vmax.f32 %v712_v52, 0.0  ;;  %v752_v57 = vmax.f32 %v720_v53, 0.0 }
  0xd7   : > { %v1081_v58 = vpack.c.bf16 %v744_v56, %v743_v54  ;;  %v1101_v59 = vpack.c.bf16 %v752_v57, %v751_v55 }
  0xd9   : > { %1145 = vst [vmem:[%s1319_s4 + $0x18] sm:$0xff] %v1081_v58   ;;  %v579_v62 = vpop.f32.mrf.mxu2  ;;  %v599_v63 = vpop.f32.mrf.mxu3 }
  0xda   : > { %1149 = vst [vmem:[%s1319_s4 + $0x38] sm:$0xff] %v1101_v59   ;;  %v728_v0 = vadd.f32 %v1308_v24, %v579_v62  ;;  %v736_v1 = vadd.f32 %v1308_v24, %v599_v63 }
  0xdc   : > { %v760_v4 = vmax.f32 %v728_v0, 0.0  ;;  %v768_v5 = vmax.f32 %v736_v1, 0.0 }
  0xde   : > { %v1121_v6 = vpack.c.bf16 %v760_v4, %v759_v2  ;;  %v1141_v7 = vpack.c.bf16 %v768_v5, %v767_v3 }
  0xe0   : > { %1153 = vst [vmem:[%s1319_s4 + $0x58] sm:$0xff] %v1121_v6  }
  0xe1   : > { %1157 = vst [vmem:[%s1319_s4 + $0x78] sm:$0xff] %v1141_v7  }
  0xe2 PF: > { %s13_s14 = sadd.s32 1, %s1214_s14   ;;  %s1378_s12 = smov %s1210_s13 }
  0xe3   : > { %p10_p5 = scmp.ge.s32.totalorder %s13_s14, 4   ;;  %s1379_s13 = smov %s1381_s15 }
  0xe5   :  { %12 = sbr.rel (!%p10_p5) target bundleno = 2 (0x2), region = 76 }

// kernel: model_and_loss_forward.7
= control target key start
LH: loop header
LB: loop body
LE: loop exit
PB: predicated region body
PF: predicated region fallthrough
CT: control target
= control target key end

     0   :  { %11 = vsyncpa [#allocation3], 0  ;;  %s780_s0 = inlined_call_operand.vmem [shape: bf16[2,256,128], index: 0, kind: input, shape index: {}]   ;;  %s781_s1 = inlined_call_operand.vmem [shape: f32[128,128], index: 1, kind: input, shape index: {}]   ;;  %s782_s2 = inlined_call_operand.vmem [shape: f32[1,128], index: 2, kind: input, shape index: {}]   ;;  %s783_s3 = inlined_call_operand.vmem [shape: s32[2,1], index: 3, kind: input, shape index: {}]   ;;  %s784_s4 = inlined_call_operand.hbm [shape: f32[2,128], index: 4, kind: output, shape index: {0}]   ;;  %s785_s5 = inlined_call_operand.hbm [shape: f32[1,1], index: 5, kind: output, shape index: {1}]  }
   0x1   :  { %v247_v0 = vld [vmem:[%s781_s1 + $0x78] sm:$0xff]  ;;  %v246_v1 = vld [vmem:[%s781_s1 + $0x70] sm:$0xff]  ;;  %v245_v2 = vld [vmem:[%s781_s1 + $0x68] sm:$0xff] }
   0x2   :  { %257 = vmatpush.msra.mxu0 %v247_v0  ;;  %v244_v3 = vld [vmem:[%s781_s1 + $0x60] sm:$0xff]  ;;  %v243_v4 = vld [vmem:[%s781_s1 + $0x58] sm:$0xff]  ;;  %v242_v5 = vld [vmem:[%s781_s1 + $0x50] sm:$0xff] }
   0x3   :  { %v241_v6 = vld [vmem:[%s781_s1 + $0x48] sm:$0xff]  ;;  %v240_v7 = vld [vmem:[%s781_s1 + $0x40] sm:$0xff]  ;;  %v239_v8 = vld [vmem:[%s781_s1 + $0x38] sm:$0xff] }
   0x4   :  { %258 = vmatpush.msra.mxu0 %v246_v1  ;;  %v358_v9 = vld [vmem:[%s780_s0] sm:$0xff]   ;;  %v238_v11 = vld [vmem:[%s781_s1 + $0x30] sm:$0xff] }
   0x5   :  { %v500_v10 = vld [vmem:[%s780_s0 + $0x80] sm:$0xff]  }
   0x6   :  { %259 = vmatpush.msra.mxu0 %v245_v2 }
   0x8   :  { %260 = vmatpush.msra.mxu0 %v244_v3 }
   0xa   :  { %261 = vmatpush.msra.mxu0 %v243_v4 }
   0xc   :  { %262 = vmatpush.msra.mxu0 %v242_v5 }
   0xe   :  { %263 = vmatpush.msra.mxu0 %v241_v6 }
  0x10   :  { %264 = vmatpush.msra.mxu0 %v240_v7 }
  0x11   :  { %12 = vsyncpa [#allocation5], 0  ;;  %v485_v12 = vld [vmem:[%s780_s0 + $0x8] sm:$0xff]   ;;  %v359_v15 = vunpack.c.l.bf16 %v358_v9  ;;  %v360_v16 = vunpack.c.h.bf16 %v358_v9  ;;  %v423_v17 = vunpack.c.l.bf16 %v500_v10  ;;  %v424_v18 = vunpack.c.h.bf16 %v500_v10  ;;  %v236_v19 = vld [vmem:[%s781_s1 + $0x20] sm:$0xff]  ;;  %s587_s16 = smov [#allocation2]   ;;  %s342_s20 = sshll.u32 %s785_s5, 4  ;;  %s343_s20 = int_to_ptr.hbm [resolvable:$true] %s342_s20 }
  0x12   :  { %265 = vmatpush.msra.mxu0 %v239_v8  ;;  %v501_v13 = vld [vmem:[%s780_s0 + $0x88] sm:$0xff]   ;;  %v363_v20 = vunpack.c.l.bf16 %v485_v12  ;;  %v486_v22 = vld [vmem:[%s780_s0 + $0x10] sm:$0xff]   ;;  %v235_v24 = vld [vmem:[%s781_s1 + $0x18] sm:$0xff]  ;;  %v364_v25 = vunpack.c.h.bf16 %v485_v12  ;;  %vm254_vm1 = vcmask 1041409   ;;  %vm282_vm3 = vcmask 1041408   ;;  %s329_s17 = sshll.u32 %s587_s16, 4  ;;  %s330_s17 = int_to_ptr.vmem [resolvable:$true] %s329_s17 }
  0x13   :  { %v237_v14 = vld [vmem:[%s781_s1 + $0x28] sm:$0xff]  ;;  %v427_v21 = vunpack.c.l.bf16 %v501_v13  ;;  %v502_v23 = vld [vmem:[%s780_s0 + $0x90] sm:$0xff]   ;;  %v428_v26 = vunpack.c.h.bf16 %v501_v13  ;;  %v149_v27 = vadd.f32 %v360_v16, %v359_v15  ;;  %v186_v28 = vadd.f32 %v424_v18, %v423_v17  ;;  %v487_v34 = vld [vmem:[%s780_s0 + $0x18] sm:$0xff]  }
  0x14   :  { %266 = vmatpush.msra.mxu0 %v238_v11  ;;  %v234_v29 = vld [vmem:[%s781_s1 + $0x10] sm:$0xff]  ;;  %v367_v30 = vunpack.c.l.bf16 %v486_v22  ;;  %v431_v31 = vunpack.c.l.bf16 %v502_v23  ;;  %v503_v35 = vld [vmem:[%s780_s0 + $0x98] sm:$0xff]   ;;  %v233_v36 = vld [vmem:[%s781_s1 + $0x8] sm:$0xff]  ;;  %v368_v37 = vunpack.c.h.bf16 %v486_v22  ;;  %v432_v38 = vunpack.c.h.bf16 %v502_v23 }
  0x15   :  { %v150_v32 = vadd.f32 %v363_v20, %v149_v27  ;;  %v187_v33 = vadd.f32 %v427_v21, %v186_v28  ;;  %v232_v41 = vld [vmem:[%s781_s1] sm:$0xff]  ;;  %v371_v42 = vunpack.c.l.bf16 %v487_v34  ;;  %v435_v43 = vunpack.c.l.bf16 %v503_v35  ;;  %v489_v56 = vld [vmem:[%s780_s0 + $0x28] sm:$0xff]   ;;  %v490_v2 = vld [vmem:[%s780_s0 + $0x30] sm:$0xff]  }
  0x16   :  { %267 = vmatpush.msra.mxu0 %v237_v14  ;;  %v488_v46 = vld [vmem:[%s780_s0 + $0x20] sm:$0xff]   ;;  %v372_v48 = vunpack.c.h.bf16 %v487_v34  ;;  %v436_v49 = vunpack.c.h.bf16 %v503_v35  ;;  %v505_v57 = vld [vmem:[%s780_s0 + $0xa8] sm:$0xff]   ;;  %v379_v62 = vunpack.c.l.bf16 %v489_v56  ;;  %v506_v3 = vld [vmem:[%s780_s0 + $0xb0] sm:$0xff]   ;;  %v380_v4 = vunpack.c.h.bf16 %v489_v56 }
  0x17   :  { %v151_v39 = vadd.f32 %v364_v25, %v150_v32  ;;  %v188_v40 = vadd.f32 %v428_v26, %v187_v33  ;;  %v504_v47 = vld [vmem:[%s780_s0 + $0xa0] sm:$0xff]   ;;  %v375_v52 = vunpack.c.l.bf16 %v488_v46  ;;  %v376_v58 = vunpack.c.h.bf16 %v488_v46  ;;  %v491_v12 = vld [vmem:[%s780_s0 + $0x38] sm:$0xff]   ;;  %v493_v32 = vld [vmem:[%s780_s0 + $0x48] sm:$0xff]  }
  0x18   :  { %268 = vmatpush.msra.mxu0 %v236_v19  ;;  %v439_v53 = vunpack.c.l.bf16 %v504_v47  ;;  %v440_v59 = vunpack.c.h.bf16 %v504_v47  ;;  %v443_v63 = vunpack.c.l.bf16 %v505_v57  ;;  %v444_v5 = vunpack.c.h.bf16 %v505_v57  ;;  %v507_v13 = vld [vmem:[%s780_s0 + $0xb8] sm:$0xff]   ;;  %v492_v22 = vld [vmem:[%s780_s0 + $0x40] sm:$0xff]   ;;  %v509_v33 = vld [vmem:[%s780_s0 + $0xc8] sm:$0xff]  }
  0x19   :  { %v152_v44 = vadd.f32 %v367_v30, %v151_v39  ;;  %v189_v45 = vadd.f32 %v431_v31, %v188_v40  ;;  %v383_v8 = vunpack.c.l.bf16 %v490_v2  ;;  %v447_v9 = vunpack.c.l.bf16 %v506_v3  ;;  %v508_v23 = vld [vmem:[%s780_s0 + $0xc0] sm:$0xff]  }
  0x1a   :  { %269 = vmatpush.msra.mxu0 %v235_v24  ;;  %v384_v14 = vunpack.c.h.bf16 %v490_v2  ;;  %v448_v15 = vunpack.c.h.bf16 %v506_v3  ;;  %v387_v18 = vunpack.c.l.bf16 %v491_v12  ;;  %v451_v19 = vunpack.c.l.bf16 %v507_v13 }
  0x1b   :  { %v153_v50 = vadd.f32 %v368_v37, %v152_v44  ;;  %v190_v51 = vadd.f32 %v432_v38, %v189_v45  ;;  %v388_v24 = vunpack.c.h.bf16 %v491_v12  ;;  %v452_v25 = vunpack.c.h.bf16 %v507_v13 }
  0x1c   :  { %270 = vmatpush.msra.mxu0 %v234_v29  ;;  %v391_v28 = vunpack.c.l.bf16 %v492_v22  ;;  %v455_v29 = vunpack.c.l.bf16 %v508_v23  ;;  %v392_v34 = vunpack.c.h.bf16 %v492_v22  ;;  %v456_v35 = vunpack.c.h.bf16 %v508_v23 }
  0x1d   :  { %v154_v54 = vadd.f32 %v371_v42, %v153_v50  ;;  %v191_v55 = vadd.f32 %v435_v43, %v190_v51  ;;  %v395_v38 = vunpack.c.l.bf16 %v493_v32  ;;  %v459_v39 = vunpack.c.l.bf16 %v509_v33  ;;  %v494_v42 = vld [vmem:[%s780_s0 + $0x50] sm:$0xff]  }
  0x1e   :  { %271 = vmatpush.msra.mxu0 %v233_v36  ;;  %v510_v43 = vld [vmem:[%s780_s0 + $0xd0] sm:$0xff]   ;;  %v396_v44 = vunpack.c.h.bf16 %v493_v32  ;;  %v460_v45 = vunpack.c.h.bf16 %v509_v33  ;;  %vm322_vm6 = vcmask 0  }
  0x1f   :  { %v155_v60 = vadd.f32 %v372_v48, %v154_v54  ;;  %v192_v61 = vadd.f32 %v436_v49, %v191_v55  ;;  %v399_v48 = vunpack.c.l.bf16 %v494_v42  ;;  %v463_v49 = vunpack.c.l.bf16 %v510_v43 }
  0x20   :  { %272 = vmatpush.msra.mxu0 %v232_v41  ;;  %v400_v54 = vunpack.c.h.bf16 %v494_v42  ;;  %v464_v55 = vunpack.c.h.bf16 %v510_v43 }
  0x21   :  { %v156_v0 = vadd.f32 %v375_v52, %v155_v60  ;;  %v193_v1 = vadd.f32 %v439_v53, %v192_v61  ;;  %v495_v52 = vld [vmem:[%s780_s0 + $0x58] sm:$0xff]  }
  0x22   :  { %v511_v53 = vld [vmem:[%s780_s0 + $0xd8] sm:$0xff]  }
  0x23   :  { %v157_v6 = vadd.f32 %v376_v58, %v156_v0  ;;  %v194_v7 = vadd.f32 %v440_v59, %v193_v1  ;;  %v403_v58 = vunpack.c.l.bf16 %v495_v52  ;;  %v467_v59 = vunpack.c.l.bf16 %v511_v53 }
  0x24   :  { %v404_v0 = vunpack.c.h.bf16 %v495_v52  ;;  %v468_v1 = vunpack.c.h.bf16 %v511_v53 }
  0x25   :  { %v158_v10 = vadd.f32 %v379_v62, %v157_v6  ;;  %v195_v11 = vadd.f32 %v443_v63, %v194_v7  ;;  %v496_v62 = vld [vmem:[%s780_s0 + $0x60] sm:$0xff]  }
  0x26   :  { %v512_v63 = vld [vmem:[%s780_s0 + $0xe0] sm:$0xff]  }
  0x27   :  { %v159_v16 = vadd.f32 %v380_v4, %v158_v10  ;;  %v196_v17 = vadd.f32 %v444_v5, %v195_v11  ;;  %v407_v4 = vunpack.c.l.bf16 %v496_v62  ;;  %v497_v5 = vld [vmem:[%s780_s0 + $0x68] sm:$0xff]   ;;  %v471_v6 = vunpack.c.l.bf16 %v512_v63 }
  0x28   :  { %v408_v10 = vunpack.c.h.bf16 %v496_v62  ;;  %v472_v11 = vunpack.c.h.bf16 %v512_v63 }
  0x29   :  { %v160_v20 = vadd.f32 %v383_v8, %v159_v16  ;;  %v197_v21 = vadd.f32 %v447_v9, %v196_v17  ;;  %v513_v9 = vld [vmem:[%s780_s0 + $0xe8] sm:$0xff]  }
  0x2a   :  { %v476_v22 = vunpack.c.h.bf16 %v513_v9 }
  0x2b   :  { %v161_v26 = vadd.f32 %v384_v14, %v160_v20  ;;  %v198_v27 = vadd.f32 %v448_v15, %v197_v21  ;;  %v411_v14 = vunpack.c.l.bf16 %v497_v5  ;;  %v475_v15 = vunpack.c.l.bf16 %v513_v9  ;;  %v514_v20 = vld [vmem:[%s780_s0 + $0xf0] sm:$0xff]  }
  0x2c   :  { %v412_v21 = vunpack.c.h.bf16 %v497_v5  ;;  %v480_v33 = vunpack.c.h.bf16 %v514_v20  ;;  %v278_v5 = vlaneseq }
  0x2d   :  { %v162_v30 = vadd.f32 %v387_v18, %v161_v26  ;;  %v199_v31 = vadd.f32 %v451_v19, %v198_v27  ;;  %v584_v18 = vmov 256.0   ;;  %v498_v19 = vld [vmem:[%s780_s0 + $0x70] sm:$0xff]   ;;  %v479_v26 = vunpack.c.l.bf16 %v514_v20 }
  0x2e   :  { %524 = vrcp.f32 %v584_v18  ;;  %v416_v32 = vunpack.c.h.bf16 %v498_v19 }
  0x2f   :  { %v163_v36 = vadd.f32 %v388_v24, %v162_v30  ;;  %v200_v37 = vadd.f32 %v452_v25, %v199_v31  ;;  %v415_v25 = vunpack.c.l.bf16 %v498_v19  ;;  %v515_v30 = vld [vmem:[%s780_s0 + $0xf8] sm:$0xff]   ;;  %v586_v19 = vmov 0.0  }
  0x30   :  { %v484_v42 = vunpack.c.h.bf16 %v515_v30 }
  0x31   :  { %v164_v40 = vadd.f32 %v391_v28, %v163_v36  ;;  %v201_v41 = vadd.f32 %v455_v29, %v200_v37  ;;  %v499_v29 = vld [vmem:[%s780_s0 + $0x78] sm:$0xff]   ;;  %v483_v37 = vunpack.c.l.bf16 %v515_v30 }
  0x32   :  { %v419_v36 = vunpack.c.l.bf16 %v499_v29 }
  0x33   :  { %v165_v46 = vadd.f32 %v392_v34, %v164_v40  ;;  %v202_v47 = vadd.f32 %v456_v35, %v201_v41  ;;  %v420_v41 = vunpack.c.h.bf16 %v499_v29 }
  0x34   :  { %v525_v31 = vpop.eup %524 }
  0x35   :  { %v166_v50 = vadd.f32 %v395_v38, %v165_v46  ;;  %v203_v51 = vadd.f32 %v459_v39, %v202_v47  ;;  %v224_v40 = vmul.f32 256.0, %v525_v31  ;;  %vm228_vm0 = vweird.f32 %v525_v31 }
  0x37   :  { %v167_v56 = vadd.f32 %v396_v44, %v166_v50  ;;  %v204_v57 = vadd.f32 %v460_v45, %v203_v51  ;;  %v225_v47 = vsub.f32 1.0, %v224_v40 }
  0x39   :  { %v168_v60 = vadd.f32 %v399_v48, %v167_v56  ;;  %v205_v61 = vadd.f32 %v463_v49, %v204_v57  ;;  %v226_v52 = vmul.f32 %v525_v31, %v225_v47 }
  0x3b   :  { %v169_v2 = vadd.f32 %v400_v54, %v168_v60  ;;  %v206_v3 = vadd.f32 %v464_v55, %v205_v61  ;;  %v227_v57 = vadd.f32 %v525_v31, %v226_v52 }
  0x3d   :  { %v170_v7 = vadd.f32 %v403_v58, %v169_v2  ;;  %v207_v8 = vadd.f32 %v467_v59, %v206_v3  ;;  %v229_v62 = vsel %vm228_vm0, %v525_v31, %v227_v57 }
  0x3f   :  { %v171_v12 = vadd.f32 %v404_v0, %v170_v7  ;;  %v208_v13 = vadd.f32 %v468_v1, %v207_v8  ;;  %v523_v7 = vld [vmem:[%s782_s2] ss:$0 sm:$0xff] }
  0x41   :  { %v172_v16 = vadd.f32 %v407_v4, %v171_v12  ;;  %v209_v17 = vadd.f32 %v471_v6, %v208_v13  ;;  %v585_v4 = vmov 0   ;;  %v279_v6 = vand.u32 127, %v278_v5  ;;  %v295_v12 = vld [vmem:[%s783_s3] sm:$0x3]  ;;  %s331_s3 = sshll.u32 %s784_s4, 4  ;;  %s589_s4 = smov [#allocation4]   ;;  %s332_s3 = int_to_ptr.hbm [resolvable:$true] %s331_s3 }
  0x42   :  { %522 = vset.pattern.permute.xlu0 %v585_v4  ;;  %s340_s18 = sshll.u32 %s589_s4, 4  ;;  %s341_s18 = int_to_ptr.vmem [resolvable:$true] %s340_s18 }
  0x43   :  { %v173_v23 = vadd.f32 %v408_v10, %v172_v16  ;;  %v210_v24 = vadd.f32 %v472_v11, %v209_v17  ;;  %vm280_vm2 = vcmp.lt.s32.totalorder %v279_v6, 10 }
  0x45   :  { %v174_v27 = vadd.f32 %v411_v14, %v173_v23  ;;  %v211_v28 = vadd.f32 %v475_v15, %v210_v24  ;;  %v588_v24 = vmov 2.0  }
  0x47   :  { %v175_v34 = vadd.f32 %v412_v21, %v174_v27  ;;  %v212_v35 = vadd.f32 %v476_v22, %v211_v28 }
  0x49   :  { %v176_v38 = vadd.f32 %v415_v25, %v175_v34  ;;  %v213_v39 = vadd.f32 %v479_v26, %v212_v35 }
  0x4b   :  { %v177_v43 = vadd.f32 %v416_v32, %v176_v38  ;;  %v214_v44 = vadd.f32 %v480_v33, %v213_v39 }
  0x4d   :  { %v178_v45 = vadd.f32 %v419_v36, %v177_v43  ;;  %v215_v46 = vadd.f32 %v483_v37, %v214_v44 }
  0x4f   :  { %v179_v48 = vadd.f32 %v420_v41, %v178_v45  ;;  %v216_v49 = vadd.f32 %v484_v42, %v215_v46 }
  0x51   :  { %v180_v50 = vrot.slane %v179_v48, 4  ;;  %v217_v51 = vrot.slane %v216_v49, 4 }
  0x53   :  { %v181_v53 = vadd.f32 %v180_v50, %v179_v48  ;;  %v218_v54 = vadd.f32 %v217_v51, %v216_v49 }
  0x55   :  { %v182_v55 = vrot.slane %v181_v53, 2  ;;  %v219_v56 = vrot.slane %v218_v54, 2 }
  0x57   :  { %v183_v58 = vadd.f32 %v182_v55, %v181_v53  ;;  %v220_v59 = vadd.f32 %v219_v56, %v218_v54 }
  0x59   :  { %v184_v60 = vrot.slane %v183_v58, 1  ;;  %v221_v61 = vrot.slane %v220_v59, 1 }
  0x5b   :  { %v185_v63 = vadd.f32 %v184_v60, %v183_v58  ;;  %v222_v0 = vadd.f32 %v221_v61, %v220_v59 }
  0x5d   :  { %v230_v1 = vmul.f32 %v229_v62, %v185_v63  ;;  %v231_v2 = vmul.f32 %v229_v62, %v222_v0 }
  0x5f   :  { %v255_v3 = vsel %vm254_vm1, %v231_v2, %v230_v1 }
  0x60   :  { %273 = vmatmul.f32.vlgmr.msra.gmra.mxu0 %v255_v3 }
  0xdd   :  { %v274_v8 = vpop.f32.mrf.mxu0 }
  0xde   :  { %v275_v9 = vadd.f32 %v523_v7, %v274_v8 }
  0xe0   :  { %277 = vst [vmem:[#allocation2] sm:$0x3] %v275_v9  ;;  %v281_v10 = vsel %vm280_vm2, %v275_v9, -1e+30 }
  0xe1   :  { %v283_v11 = vsel %vm282_vm3, %v281_v10, -inf  ;;  %334 = dma.vmem_to_hbm [thread:$0]  %s330_s17, 32, %s332_s3, [#allocation3]  }
  0xe2   :  { %284 = vmax.xlane.f32.xlu0 %v283_v11 }
  0xf6   :  { %297 = vperm.xlu0 %522, %v295_v12  }
 0x155   :  { %v285_v13 = vpop.xlane.xlu0 %284 }
 0x156   :  { %v286_v14 = vsub.f32 %v281_v10, %v285_v13 }
 0x158   :  { %v287_v15 = vmul.f32 1.442695, %v286_v14 }
 0x15a   :  { %526 = vpow2.f32 %v287_v15 }
 0x15b   :  { %528 = vrcp.f32 %v588_v24 }
 0x160   :  { %v527_v16 = vpop.eup %526 }
 0x161   :  { %v289_v17 = vsel %vm282_vm3, %v527_v16, 0.0  ;;  %v529_v25 = vpop.eup %528 }
 0x162   :  { %290 = vadd.xlane.f32.xlu1 %v289_v17  ;;  %v315_v28 = vmul.f32 2.0, %v529_v25  ;;  %vm319_vm5 = vweird.f32 %v529_v25 }
 0x164   :  { %v316_v32 = vsub.f32 1.0, %v315_v28 }
 0x166   :  { %v317_v35 = vmul.f32 %v529_v25, %v316_v32 }
 0x168   :  { %v298_v18 = vpop.permute.xlu0 %297  ;;  %v318_v38 = vadd.f32 %v529_v25, %v317_v35 }
 0x169   :  { %vm299_vm4 = vcmp.eq.s32.totalorder %v279_v6, %v298_v18 }
 0x16a   :  { %v356_v20 = vsel %vm299_vm4, 1.0, %v586_v19  ;;  %v320_v41 = vsel %vm319_vm5, %v529_v25, %v318_v38 }
 0x16b   :  { %v302_v21 = vmul.f32 %v356_v20, %v275_v9 }
 0x16d   :  { %v303_v22 = vsel %vm282_vm3, %v302_v21, 0.0 }
 0x16e   :  { %304 = vadd.xlane.f32.xlu1 %v303_v22 }
 0x1d5   :  { %v291_v23 = vpop.xlane.xlu1 %290 }
 0x1d6   :  { %530 = vlog2.f32 %v291_v23 }
 0x1dc   :  { %v531_v26 = vpop.eup %530 }
 0x1dd   :  { %v293_v27 = vmul.f32 0.6931472, %v531_v26 }
 0x1df   :  { %v294_v29 = vadd.f32 %v293_v27, %v285_v13 }
 0x1e1   :  { %v305_v30 = vpop.xlane.xlu1 %304 }
 0x1e2   :  { %v306_v31 = vsub.f32 %v294_v29, %v305_v30 }
 0x1e4   :  { %v307_v33 = vsel %vm282_vm3, %v306_v31, 0.0 }
 0x1e5   :  { %v308_v34 = vrot.slane %v307_v33, 4 }
 0x1e7   :  { %v309_v36 = vadd.f32 %v308_v34, %v307_v33 }
 0x1e9   :  { %v310_v37 = vrot.slane %v309_v36, 2 }
 0x1eb   :  { %v311_v39 = vadd.f32 %v310_v37, %v309_v36 }
 0x1ed   :  { %v312_v40 = vrot.slane %v311_v39, 1 }
 0x1ef   :  { %v313_v42 = vadd.f32 %v312_v40, %v311_v39 }
 0x1f1   :  { %v321_v43 = vmul.f32 %v320_v41, %v313_v42 }
 0x1f3   :  { %323 = vst.msk [vmem:[#allocation4] sm:$0x1] %vm322_vm6, %v321_v43 }
 0x1f4   :  { %345 = dma.vmem_to_hbm [thread:$0]  %s341_s18, 16, %s343_s20, [#allocation5]  }
 0x1f5   :  { %580 = dma.done.wait [#allocation3], 32  }
 0x1f6   :  { %581 = vsyncadd [#allocation3], 4294967264 }
 0x1f7   :  { %582 = dma.done.wait [#allocation5], 16  }
 0x1f8   :  { %583 = vsyncadd [#allocation5], 4294967280 }
 0x1f9   :  { %354 = vsyncpa [#allocation3], 1 }
 0x1fa   :  { %355 = vsyncpa [#allocation5], 1 }

// kernel: model_and_loss_forward.5
= control target key start
LH: loop header
LB: loop body
LE: loop exit
PB: predicated region body
PF: predicated region fallthrough
CT: control target
= control target key end

     0   :  { %s4111_s12 = smov 0   ;;  %s4113_s13 = smov 0   ;;  %s4757_s0 = inlined_call_operand.vmem [shape: bf16[2,18,18,128], index: 0, kind: input, shape index: {}]   ;;  %s4758_s1 = inlined_call_operand.vmem [shape: bf16[9,128,128], index: 1, kind: input, shape index: {}]   ;;  %s4759_s2 = inlined_call_operand.vmem [shape: f32[1,128], index: 2, kind: input, shape index: {}]   ;;  %s4760_s3 = inlined_call_operand.vmem [shape: bf16[2,16,16,128], index: 3, kind: output, shape index: {}]  }
   0x1   :  { %s4115_s14 = smov 0  }
   0x2 LB: > { %s25_s15 = sadd.s32 1, %s4085_s13  ;;  %p3374_p0 = scmp.ge.s32.totalorder %s4089_s14, 1  ;;  %s4089_s14 = sphi %s4115_s14, %s13_s14   ;;  %s4085_s13 = sphi %s4113_s13, %s4762_s13   ;;  %s4081_s12 = sphi %s4111_s12, %s4761_s12  }
   0x3   : > { %p27_p1 = scmp.ge.s32.totalorder %s25_s15, 2  ;;  %p168_p2 = scmp.lt.s32.totalorder %s4089_s14, 3 }
   0x5   : > { %s4764_s15 = smov (%p27_p1, %s25_s15), 0  ;;  %p169_p3 = pnand %p3374_p0, %p168_p2 }
   0x6   : > { %p202_p4 = scmp.lt.s32.totalorder (!%p169_p3), %s4081_s12, 1 }
   0x7   : > { %172 = sbr.rel (%p169_p3) target bundleno = 757 (0x2f5), region = 32 }
   0xc   : > { %v3804_v0 = vld [vmem:[%s4758_s1 + $0x38] sm:$0xff]  ;;  %v3803_v1 = vld [vmem:[%s4758_s1 + $0x30] sm:$0xff]  ;;  %s4766_s12 = smov (!%p202_p4, %s4081_s12), 1  ;;  %v3802_v2 = vld [vmem:[%s4758_s1 + $0x28] sm:$0xff] }
   0xd   : > { %4008 = vmatpush.bf16.msra.mxu1 %v3804_v0  ;;  %4009 = vmatpush.bf16.msra.mxu2 %v3804_v0  ;;  %s4032_s20 = smul.u32 216, %s4766_s12  ;;  %v3801_v11 = vld [vmem:[%s4758_s1 + $0x20] sm:$0xff]  ;;  %v3800_v17 = vld [vmem:[%s4758_s1 + $0x18] sm:$0xff]  ;;  %v3799_v22 = vld [vmem:[%s4758_s1 + $0x10] sm:$0xff]  ;;  %s3796_s7 = sshll.u32 %s4766_s12, 7 }
   0xe   : > { %4010 = vmatpush.bf16.msra.mxu3 %v3804_v0  ;;  %560 = vmatpush.bf16.msra.mxu0 %v3804_v0  ;;  %v3798_v29 = vld [vmem:[%s4758_s1 + $0x8] sm:$0xff]  ;;  %v3797_v34 = vld [vmem:[%s4758_s1] sm:$0xff]  ;;  %v3820_v35 = vld [vmem:[%s4758_s1 + $0xb8] sm:$0xff]  ;;  %s4659_s10 = scalar_lea.vmem %s4760_s3, %s3796_s7 }
   0xf   : > { %s4144_s25 = scalar_lea.vmem %s4757_s0, %s4032_s20  ;;  %v3828_v36 = vld [vmem:[%s4758_s1 + $0xf8] sm:$0xff]  ;;  %v3819_v43 = vld [vmem:[%s4758_s1 + $0xb0] sm:$0xff]  ;;  %v3818_v54 = vld [vmem:[%s4758_s1 + $0xa8] sm:$0xff] }
  0x10   : > { %v3986_v3 = vld [vmem:[%s4144_s25 + $0x30] sm:$0xff]   ;;  %v3988_v4 = vld [vmem:[%s4144_s25 + $0x60] sm:$0xff]   ;;  %v3987_v27 = vld [vmem:[%s4144_s25 + $0x48] sm:$0xff]  }
  0x11   : > { %4011 = vmatpush.bf16.msra.mxu1 %v3803_v1  ;;  %4012 = vmatpush.bf16.msra.mxu2 %v3803_v1  ;;  %v3879_v5 = vunpack.c.l.bf16 %v3986_v3  ;;  %v3880_v6 = vunpack.c.h.bf16 %v3986_v3  ;;  %v3887_v7 = vunpack.c.l.bf16 %v3988_v4  ;;  %v3990_v8 = vld [vmem:[%s4144_s25 + $0x90] sm:$0xff]   ;;  %v3888_v9 = vunpack.c.h.bf16 %v3988_v4  ;;  %v3870_v10 = vld [vmem:[%s4144_s25] sm:$0xff]   ;;  %v3812_v41 = vld [vmem:[%s4758_s1 + $0x78] sm:$0xff] }
  0x12   : > { %4013 = vmatpush.bf16.msra.mxu3 %v3803_v1  ;;  %561 = vmatpush.bf16.msra.mxu0 %v3803_v1  ;;  %v3895_v12 = vunpack.c.l.bf16 %v3990_v8  ;;  %v3896_v13 = vunpack.c.h.bf16 %v3990_v8  ;;  %v3871_v14 = vunpack.c.l.bf16 %v3870_v10  ;;  %v3872_v15 = vunpack.c.h.bf16 %v3870_v10  ;;  %v4154_v16 = vld [vmem:[%s4144_s25 + $0x3c] sm:$0xff]   ;;  %v4160_v18 = vld [vmem:[%s4144_s25 + $0x6c] sm:$0xff]   ;;  %v4230_v58 = vld [vmem:[%s4144_s25 + $0x54] sm:$0xff]  }
  0x13   : > { %342 = vst [vmem:[#allocation2 + $0x60] sm:$0xff] %v3879_v5  ;;  %v291_v19 = vunpack.c.l.bf16 %v4154_v16  ;;  %v292_v20 = vunpack.c.h.bf16 %v4154_v16  ;;  %v4165_v21 = vld [vmem:[%s4144_s25 + $0x9c] sm:$0xff]   ;;  %v303_v23 = vunpack.c.l.bf16 %v4160_v18  ;;  %v304_v24 = vunpack.c.h.bf16 %v4160_v18  ;;  %v4173_v25 = vld [vmem:[%s4144_s25 + $0xc] sm:$0xff]   ;;  %v4259_v5 = vld [vmem:[%s4144_s25 + $0x84] sm:$0xff]  }
  0x14   : > { %343 = vst [vmem:[#allocation2 + $0x68] sm:$0xff] %v3880_v6  ;;  %v315_v26 = vunpack.c.l.bf16 %v4165_v21  ;;  %v316_v28 = vunpack.c.h.bf16 %v4165_v21  ;;  %v279_v30 = vunpack.c.l.bf16 %v4173_v25  ;;  %v3883_v31 = vunpack.c.l.bf16 %v3987_v27  ;;  %v4193_v37 = vld [vmem:[%s4144_s25 + $0x30] sm:$0xff]  ;;  %v4196_v38 = vld [vmem:[%s4144_s25 + $0x60] sm:$0xff]  ;;  %v3836_v42 = vld [vmem:[%s4758_s1 + $0x138] sm:$0xff] }
  0x15   : > { %4014 = vmatpush.bf16.msra.mxu1 %v3802_v2  ;;  %4015 = vmatpush.bf16.msra.mxu2 %v3802_v2  ;;  %354 = vst [vmem:[#allocation2 + $0xc0] sm:$0xff] %v3887_v7  ;;  %v280_v32 = vunpack.c.h.bf16 %v4173_v25  ;;  %v3884_v33 = vunpack.c.h.bf16 %v3987_v27  ;;  %v4059_v39 = vld [vmem:[%s4144_s25 + $0x90] sm:$0xff]  ;;  %v4060_v40 = vld [vmem:[%s4144_s25] sm:$0xff]  ;;  %v3989_v45 = vld [vmem:[%s4144_s25 + $0x78] sm:$0xff]   ;;  %v297_v63 = vunpack.c.l.bf16 %v4230_v58  ;;  %v298_v0 = vunpack.c.h.bf16 %v4230_v58 }
  0x16   : > { %4016 = vmatpush.bf16.msra.mxu3 %v3802_v2  ;;  %562 = vmatpush.bf16.msra.mxu0 %v3802_v2  ;;  %355 = vst [vmem:[#allocation2 + $0xc8] sm:$0xff] %v3888_v9  ;;  %v3827_v44 = vld [vmem:[%s4758_s1 + $0xf0] sm:$0xff]  ;;  %v3991_v46 = vld [vmem:[%s4144_s25 + $0xa8] sm:$0xff]   ;;  %v3891_v47 = vunpack.c.l.bf16 %v3989_v45  ;;  %v3892_v48 = vunpack.c.h.bf16 %v3989_v45  ;;  %v3985_v50 = vld [vmem:[%s4144_s25 + $0x18] sm:$0xff]   ;;  %v309_v7 = vunpack.c.l.bf16 %v4259_v5  ;;  %v310_v10 = vunpack.c.h.bf16 %v4259_v5 }
  0x17   : > { %366 = vst [vmem:[#allocation2 + $0x120] sm:$0xff] %v3895_v12  ;;  %v3899_v49 = vunpack.c.l.bf16 %v3991_v46  ;;  %v3811_v51 = vld [vmem:[%s4758_s1 + $0x70] sm:$0xff]  ;;  %v3900_v53 = vunpack.c.h.bf16 %v3991_v46  ;;  %v3826_v55 = vld [vmem:[%s4758_s1 + $0xe8] sm:$0xff]  ;;  %v3875_v56 = vunpack.c.l.bf16 %v3985_v50  ;;  %v3876_v57 = vunpack.c.h.bf16 %v3985_v50  ;;  %v3817_v61 = vld [vmem:[%s4758_s1 + $0xa0] sm:$0xff] }
  0x18   : > { %367 = vst [vmem:[#allocation2 + $0x128] sm:$0xff] %v3896_v13  ;;  %v3835_v52 = vld [vmem:[%s4758_s1 + $0x130] sm:$0xff]  ;;  %v3810_v59 = vld [vmem:[%s4758_s1 + $0x68] sm:$0xff]  ;;  %v3825_v62 = vld [vmem:[%s4758_s1 + $0xe0] sm:$0xff] }
  0x19   : > { %4017 = vmatpush.bf16.msra.mxu1 %v3801_v11  ;;  %4018 = vmatpush.bf16.msra.mxu2 %v3801_v11  ;;  %330 = vst [vmem:[#allocation2] sm:$0xff] %v3871_v14  ;;  %v3834_v60 = vld [vmem:[%s4758_s1 + $0x128] sm:$0xff]  ;;  %v3809_v1 = vld [vmem:[%s4758_s1 + $0x60] sm:$0xff]  ;;  %v3816_v3 = vld [vmem:[%s4758_s1 + $0x98] sm:$0xff] }
  0x1a   : > { %4019 = vmatpush.bf16.msra.mxu3 %v3801_v11  ;;  %563 = vmatpush.bf16.msra.mxu0 %v3801_v11  ;;  %331 = vst [vmem:[#allocation2 + $0x8] sm:$0xff] %v3872_v15  ;;  %v3833_v2 = vld [vmem:[%s4758_s1 + $0x120] sm:$0xff]  ;;  %v3824_v4 = vld [vmem:[%s4758_s1 + $0xd8] sm:$0xff]  ;;  %v3815_v12 = vld [vmem:[%s4758_s1 + $0x90] sm:$0xff] }
  0x1b   : > { %345 = vst [vmem:[#allocation2 + $0x78] sm:$0xff] %v291_v19  ;;  %v4262_v6 = vld [vmem:[%s4144_s25 + $0xb4] sm:$0xff]   ;;  %v4273_v11 = vld [vmem:[%s4144_s25 + $0x24] sm:$0xff]   ;;  %v230_v45 = vld [vmem:[%s4144_s25 + $0x20] sm:$0x1] }
  0x1c   : > { %346 = vst [vmem:[#allocation2 + $0x80] sm:$0xff] %v292_v20  ;;  %v3808_v8 = vld [vmem:[%s4758_s1 + $0x58] sm:$0xff]  ;;  %v3823_v13 = vld [vmem:[%s4758_s1 + $0xd0] sm:$0xff]  ;;  %v321_v14 = vunpack.c.l.bf16 %v4262_v6  ;;  %v322_v15 = vunpack.c.h.bf16 %v4262_v6  ;;  %v286_v20 = vunpack.c.h.bf16 %v4273_v11  ;;  %v3806_v27 = vld [vmem:[%s4758_s1 + $0x48] sm:$0xff]  ;;  %v284_v46 = vunpack.c.l.bf16 %v230_v45 }
  0x1d   : > { %4020 = vmatpush.bf16.msra.mxu1 %v3800_v17  ;;  %4021 = vmatpush.bf16.msra.mxu2 %v3800_v17  ;;  %357 = vst [vmem:[#allocation2 + $0xd8] sm:$0xff] %v303_v23  ;;  %v3832_v9 = vld [vmem:[%s4758_s1 + $0x118] sm:$0xff]  ;;  %v3807_v19 = vld [vmem:[%s4758_s1 + $0x50] sm:$0xff]  ;;  %v3822_v23 = vld [vmem:[%s4758_s1 + $0xc8] sm:$0xff] }
  0x1e   : > { %4022 = vmatpush.bf16.msra.mxu3 %v3800_v17  ;;  %564 = vmatpush.bf16.msra.mxu0 %v3800_v17  ;;  %358 = vst [vmem:[#allocation2 + $0xe0] sm:$0xff] %v304_v24  ;;  %v285_v17 = vunpack.c.l.bf16 %v4273_v11  ;;  %v224_v24 = vld [vmem:[%s4144_s25 + $0x8] sm:$0x1] }
  0x1f   : > { %369 = vst [vmem:[#allocation2 + $0x138] sm:$0xff] %v315_v26  ;;  %v278_v26 = vunpack.c.l.bf16 %v224_v24 }
  0x20   : > { %370 = vst [vmem:[#allocation2 + $0x140] sm:$0xff] %v316_v28  ;;  %v3830_v28 = vld [vmem:[%s4758_s1 + $0x108] sm:$0xff] }
  0x21   : > { %4023 = vmatpush.bf16.msra.mxu1 %v3799_v22  ;;  %4024 = vmatpush.bf16.msra.mxu2 %v3799_v22  ;;  %333 = vst [vmem:[#allocation2 + $0x18] sm:$0xff] %v279_v30  ;;  %v3813_v30 = vld [vmem:[%s4758_s1 + $0x80] sm:$0xff] }
  0x22   : > { %4025 = vmatpush.bf16.msra.mxu3 %v3799_v22  ;;  %565 = vmatpush.bf16.msra.mxu0 %v3799_v22  ;;  %334 = vst [vmem:[#allocation2 + $0x20] sm:$0xff] %v280_v32  ;;  %v3814_v22 = vld [vmem:[%s4758_s1 + $0x88] sm:$0xff] }
  0x23   : > { %348 = vst [vmem:[#allocation2 + $0x90] sm:$0xff] %v3883_v31  ;;  %v3821_v31 = vld [vmem:[%s4758_s1 + $0xc0] sm:$0xff] }
  0x24   : > { %349 = vst [vmem:[#allocation2 + $0x98] sm:$0xff] %v3884_v33  ;;  %v3805_v33 = vld [vmem:[%s4758_s1 + $0x40] sm:$0xff] }
  0x25   : > { %4026 = vmatpush.bf16.msra.mxu1 %v3798_v29  ;;  %4027 = vmatpush.bf16.msra.mxu2 %v3798_v29  ;;  %360 = vst [vmem:[#allocation2 + $0xf0] sm:$0xff] %v3891_v47  ;;  %v233_v47 = vld [vmem:[%s4144_s25 + $0x2c] sm:$0x1] }
  0x26   : > { %4028 = vmatpush.bf16.msra.mxu3 %v3798_v29  ;;  %566 = vmatpush.bf16.msra.mxu0 %v3798_v29  ;;  %361 = vst [vmem:[#allocation2 + $0xf8] sm:$0xff] %v3892_v48  ;;  %v227_v29 = vld [vmem:[%s4144_s25 + $0x14] sm:$0x1]  ;;  %v287_v48 = vunpack.c.l.bf16 %v233_v47  ;;  %v3841_v47 = vld [vmem:[%s4758_s1 + $0x160] sm:$0xff] }
  0x27   : > { %372 = vst [vmem:[#allocation2 + $0x150] sm:$0xff] %v3899_v49  ;;  %v281_v32 = vunpack.c.l.bf16 %v227_v29  ;;  %v713_v49 = vld [vmem:[#allocation2 + $0x1] sm:$0xff] }
  0x28   : > { %373 = vst [vmem:[#allocation2 + $0x158] sm:$0xff] %v3900_v53 }
  0x29   : > { %4029 = vmatpush.bf16.msra.mxu1 %v3797_v34  ;;  %4030 = vmatpush.bf16.msra.mxu2 %v3797_v34  ;;  %336 = vst [vmem:[#allocation2 + $0x30] sm:$0xff] %v3875_v56  ;;  %v1608_v53 = vld [vmem:[#allocation2 + $0x19] sm:$0xff] }
  0x2a   : > { %4031 = vmatpush.bf16.msra.mxu3 %v3797_v34  ;;  %567 = vmatpush.bf16.msra.mxu0 %v3797_v34  ;;  %337 = vst [vmem:[#allocation2 + $0x38] sm:$0xff] %v3876_v57  ;;  %v3829_v34 = vld [vmem:[%s4758_s1 + $0x100] sm:$0xff] }
  0x2b   : > { %351 = vst [vmem:[#allocation2 + $0xa8] sm:$0xff] %v297_v63 }
  0x2c   : > { %588 = vmatmul.bf16.vlgmr.msra.gmra.mxu1 %v4193_v37  ;;  %608 = vmatmul.bf16.vlgmr.msra.gmra.mxu2 %v4196_v38  ;;  %352 = vst [vmem:[#allocation2 + $0xb0] sm:$0xff] %v298_v0  ;;  %v1013_v0 = vld [vmem:[#allocation2 + $0x1a] sm:$0xff] }
  0x2d   : > { %1156 = vmatpush.bf16.msrb.mxu2 %v3820_v35  ;;  %628 = vmatmul.bf16.vlgmr.msra.gmra.mxu3 %v4059_v39  ;;  %363 = vst [vmem:[#allocation2 + $0x108] sm:$0xff] %v309_v7  ;;  %v4322_v35 = vld [vmem:[%s4144_s25 + $0x48] sm:$0xff]  ;;  %v239_v7 = vld [vmem:[%s4144_s25 + $0x44] sm:$0x1] }
  0x2e   : > { %1455 = vmatpush.bf16.msrb.mxu3 %v3828_v36  ;;  %568 = vmatmul.bf16.vlgmr.msra.gmra.mxu0 %v4060_v40  ;;  %364 = vst [vmem:[#allocation2 + $0x110] sm:$0xff] %v310_v10  ;;  %v4325_v36 = vld [vmem:[%s4144_s25 + $0x78] sm:$0xff]  ;;  %v4063_v39 = vld [vmem:[%s4144_s25 + $0xa8] sm:$0xff] }
  0x2f   : > { %858 = vmatpush.bf16.msrb.mxu1 %v3812_v41  ;;  %1753 = vmatpush.bf16.msrb.mxu0 %v3836_v42  ;;  %375 = vst [vmem:[#allocation2 + $0x168] sm:$0xff] %v321_v14  ;;  %v4064_v40 = vld [vmem:[%s4144_s25 + $0x18] sm:$0xff] }
  0x30   : > { %376 = vst [vmem:[#allocation2 + $0x170] sm:$0xff] %v322_v15  ;;  %v3852_v41 = vld [vmem:[%s4758_s1 + $0x1b8] sm:$0xff] }
  0x31   : > { %1157 = vmatpush.bf16.msrb.mxu2 %v3819_v43  ;;  %339 = vst [vmem:[#allocation2 + $0x48] sm:$0xff] %v285_v17  ;;  %v3860_v42 = vld [vmem:[%s4758_s1 + $0x1f8] sm:$0xff]  ;;  %v3850_v17 = vld [vmem:[%s4758_s1 + $0x1a8] sm:$0xff] }
  0x32   : > { %1456 = vmatpush.bf16.msrb.mxu3 %v3827_v44  ;;  %340 = vst [vmem:[#allocation2 + $0x50] sm:$0xff] %v286_v20  ;;  %v3844_v43 = vld [vmem:[%s4758_s1 + $0x178] sm:$0xff]  ;;  %v3842_v20 = vld [vmem:[%s4758_s1 + $0x168] sm:$0xff] }
  0x33   : > { %859 = vmatpush.bf16.msrb.mxu1 %v3811_v51  ;;  %1754 = vmatpush.bf16.msrb.mxu0 %v3835_v52  ;;  %332 = vst [vmem:[#allocation2 + $0x10] sm:$0x3] %v278_v26  ;;  %v3868_v44 = vld [vmem:[%s4758_s1 + $0x238] sm:$0xff]  ;;  %v1011_v51 = vld [vmem:[#allocation2 + $0x2] sm:$0xff] }
  0x34   : > { %335 = vst [vmem:[#allocation2 + $0x28] sm:$0x3] %v281_v32  ;;  %v1614_v26 = vld [vmem:[#allocation2 + $0x61] sm:$0xff] }
  0x35   : > { %1158 = vmatpush.bf16.msrb.mxu2 %v3818_v54  ;;  %338 = vst [vmem:[#allocation2 + $0x40] sm:$0x3] %v284_v46  ;;  %v1019_v32 = vld [vmem:[#allocation2 + $0x62] sm:$0xff] }
  0x36   : > { %1457 = vmatpush.bf16.msrb.mxu3 %v3826_v55  ;;  %341 = vst [vmem:[#allocation2 + $0x58] sm:$0x3] %v287_v48 }
  0x37   : > { %860 = vmatpush.bf16.msrb.mxu1 %v3810_v59  ;;  %1755 = vmatpush.bf16.msrb.mxu0 %v3834_v60  ;;  %v3851_v59 = vld [vmem:[%s4758_s1 + $0x1b0] sm:$0xff] }
  0x38   : > { %v3859_v60 = vld [vmem:[%s4758_s1 + $0x1f0] sm:$0xff] }
  0x39   : > { %1159 = vmatpush.bf16.msrb.mxu2 %v3817_v61  ;;  %v3843_v61 = vld [vmem:[%s4758_s1 + $0x170] sm:$0xff] }
  0x3a   : > { %1458 = vmatpush.bf16.msrb.mxu3 %v3825_v62  ;;  %v714_v50 = vld [vmem:[#allocation2 + $0x9] sm:$0xff] }
  0x3b   : > { %861 = vmatpush.bf16.msrb.mxu1 %v3809_v1  ;;  %1756 = vmatpush.bf16.msrb.mxu0 %v3833_v2  ;;  %v1012_v52 = vld [vmem:[#allocation2 + $0xa] sm:$0xff]  ;;  %v1609_v54 = vld [vmem:[#allocation2 + $0x21] sm:$0xff]  ;;  %v777_v55 = vpack.c.bf16 %v714_v50, %v713_v49 }
  0x3c   : > { %593 = vmatmul.bf16.gmra.mxu1 %v4154_v16  ;;  %613 = vmatmul.bf16.gmra.mxu2 %v4160_v18  ;;  %v1075_v56 = vpack.c.bf16 %v1012_v52, %v1011_v51  ;;  %v1672_v57 = vpack.c.bf16 %v1609_v54, %v1608_v53  ;;  %v3867_v62 = vld [vmem:[%s4758_s1 + $0x230] sm:$0xff]  ;;  %v1014_v1 = vld [vmem:[#allocation2 + $0x22] sm:$0xff]  ;;  %v1016_v10 = vld [vmem:[#allocation2 + $0x3a] sm:$0xff] }
  0x3d   : > { %1160 = vmatpush.bf16.msrb.mxu2 %v3816_v3  ;;  %633 = vmatmul.bf16.gmra.mxu3 %v4165_v21  ;;  %v3831_v21 = vld [vmem:[%s4758_s1 + $0x110] sm:$0xff]  ;;  %v1611_v3 = vld [vmem:[#allocation2 + $0x39] sm:$0xff]  ;;  %v248_v50 = vld [vmem:[%s4144_s25 + $0x68] sm:$0x1] }
  0x3e   : > { %1459 = vmatpush.bf16.msrb.mxu3 %v3824_v4  ;;  %573 = vmatmul.bf16.gmra.mxu0 %v4173_v25  ;;  %v1610_v2 = vld [vmem:[#allocation2 + $0x31] sm:$0xff]  ;;  %v1076_v4 = vpack.c.bf16 %v1014_v1, %v1013_v0  ;;  %v3865_v49 = vld [vmem:[%s4758_s1 + $0x220] sm:$0xff]  ;;  %v302_v51 = vunpack.c.l.bf16 %v248_v50 }
  0x3f   : > { %862 = vmatpush.bf16.msrb.mxu1 %v3808_v8  ;;  %1757 = vmatpush.bf16.msrb.mxu0 %v3832_v9  ;;  %v293_v8 = vunpack.c.l.bf16 %v239_v7  ;;  %v1015_v9 = vld [vmem:[#allocation2 + $0x32] sm:$0xff]  ;;  %v1021_v52 = vld [vmem:[#allocation2 + $0x7a] sm:$0xff]  ;;  %v1620_v7 = vld [vmem:[#allocation2 + $0xa9] sm:$0xff] }
  0x40   : > { %v1077_v14 = vpack.c.bf16 %v1016_v10, %v1015_v9  ;;  %v1018_v24 = vld [vmem:[#allocation2 + $0x52] sm:$0xff]  ;;  %356 = vst [vmem:[#allocation2 + $0xd0] sm:$0x3] %v302_v51  ;;  %v1027_v50 = vld [vmem:[#allocation2 + $0xc2] sm:$0xff] }
  0x41   : > { %1161 = vmatpush.bf16.msrb.mxu2 %v3815_v12  ;;  %347 = vst [vmem:[#allocation2 + $0x88] sm:$0x3] %v293_v8  ;;  %v1612_v12 = vld [vmem:[#allocation2 + $0x49] sm:$0xff]  ;;  %v1618_v54 = vld [vmem:[#allocation2 + $0x91] sm:$0xff] }
  0x42   : > { %1460 = vmatpush.bf16.msrb.mxu3 %v3823_v13  ;;  %v1613_v13 = vld [vmem:[#allocation2 + $0x51] sm:$0xff] }
  0x43   : > { %863 = vmatpush.bf16.msrb.mxu1 %v3807_v19  ;;  %1758 = vmatpush.bf16.msrb.mxu0 %v3831_v21  ;;  %v1674_v15 = vpack.c.bf16 %v1613_v13, %v1612_v12  ;;  %v3858_v19 = vld [vmem:[%s4758_s1 + $0x1e8] sm:$0xff]  ;;  %v242_v21 = vld [vmem:[%s4144_s25 + $0x50] sm:$0x1] }
  0x45   : > { %1162 = vmatpush.bf16.msrb.mxu2 %v3814_v22  ;;  %v296_v22 = vunpack.c.l.bf16 %v242_v21 }
  0x46   : > { %1461 = vmatpush.bf16.msrb.mxu3 %v3822_v23  ;;  %v1017_v23 = vld [vmem:[#allocation2 + $0x4a] sm:$0xff] }
  0x47   : > { %864 = vmatpush.bf16.msrb.mxu1 %v3806_v27  ;;  %1759 = vmatpush.bf16.msrb.mxu0 %v3830_v28  ;;  %350 = vst [vmem:[#allocation2 + $0xa0] sm:$0x3] %v296_v22  ;;  %v1078_v28 = vpack.c.bf16 %v1018_v24, %v1017_v23  ;;  %v3864_v22 = vld [vmem:[%s4758_s1 + $0x218] sm:$0xff]  ;;  %v254_v23 = vld [vmem:[%s4144_s25 + $0x80] sm:$0x1]  ;;  %v1028_v51 = vld [vmem:[#allocation2 + $0xca] sm:$0xff] }
  0x48   : > { %v1022_v53 = vld [vmem:[#allocation2 + $0x82] sm:$0xff]  ;;  %v308_v24 = vunpack.c.l.bf16 %v254_v23 }
  0x49   : > { %1163 = vmatpush.bf16.msrb.mxu2 %v3813_v30  ;;  %v245_v30 = vld [vmem:[%s4144_s25 + $0x5c] sm:$0x1] }
  0x4a   : > { %1462 = vmatpush.bf16.msrb.mxu3 %v3821_v31  ;;  %v299_v31 = vunpack.c.l.bf16 %v245_v30  ;;  %362 = vst [vmem:[#allocation2 + $0x100] sm:$0x3] %v308_v24 }
  0x4b   : > { %865 = vmatpush.bf16.msrb.mxu1 %v3805_v33  ;;  %1760 = vmatpush.bf16.msrb.mxu0 %v3829_v34  ;;  %v1616_v34 = vld [vmem:[#allocation2 + $0x79] sm:$0xff] }
  0x4c   : > { %598 = vmatmul.bf16.gmra.mxu1 %v4322_v35  ;;  %618 = vmatmul.bf16.gmra.mxu2 %v4325_v36  ;;  %353 = vst [vmem:[#allocation2 + $0xb8] sm:$0x3] %v299_v31 }
  0x4d   : > { %638 = vmatmul.bf16.gmra.mxu3 %v4063_v39  ;;  %2350 = vmatpush.bf16.msra.mxu2 %v3852_v41  ;;  %v1617_v39 = vld [vmem:[#allocation2 + $0x81] sm:$0xff] }
  0x4e   : > { %578 = vmatmul.bf16.gmra.mxu0 %v4064_v40  ;;  %2648 = vmatpush.bf16.msra.mxu3 %v3860_v42  ;;  %v1676_v42 = vpack.c.bf16 %v1617_v39, %v1616_v34 }
  0x4f   : > { %2051 = vmatpush.bf16.msra.mxu1 %v3844_v43  ;;  %2946 = vmatpush.bf16.msra.mxu0 %v3868_v44  ;;  %v3857_v44 = vld [vmem:[%s4758_s1 + $0x1e0] sm:$0xff] }
  0x51   : > { %2351 = vmatpush.bf16.msra.mxu2 %v3851_v59  ;;  %v1080_v59 = vpack.c.bf16 %v1022_v53, %v1021_v52  ;;  %v1624_v52 = vld [vmem:[#allocation2 + $0xd9] sm:$0xff] }
  0x52   : > { %2649 = vmatpush.bf16.msra.mxu3 %v3859_v60 }
  0x53   : > { %2052 = vmatpush.bf16.msra.mxu1 %v3843_v61  ;;  %2947 = vmatpush.bf16.msra.mxu0 %v3867_v62  ;;  %v1621_v8 = vld [vmem:[#allocation2 + $0xb1] sm:$0xff] }
  0x54   : > { %v1678_v13 = vpack.c.bf16 %v1621_v8, %v1620_v7 }
  0x55   : > { %2352 = vmatpush.bf16.msra.mxu2 %v3850_v17  ;;  %v3856_v17 = vld [vmem:[%s4758_s1 + $0x1d8] sm:$0xff] }
  0x56   : > { %2650 = vmatpush.bf16.msra.mxu3 %v3858_v19 }
  0x57   : > { %2053 = vmatpush.bf16.msra.mxu1 %v3842_v20 }
  0x5a   : > { %2651 = vmatpush.bf16.msra.mxu3 %v3857_v44 }
  0x5b   : > { %2054 = vmatpush.bf16.msra.mxu1 %v3841_v47  ;;  %v257_v47 = vld [vmem:[%s4144_s25 + $0x8c] sm:$0x1] }
  0x5c   : > { %603 = vmatmul.bf16.gmra.mxu1 %v4230_v58  ;;  %623 = vmatmul.bf16.gmra.mxu2 %v4259_v5 }
  0x5d   : > { %643 = vmatmul.bf16.gmra.mxu3 %v4262_v6  ;;  %v1673_v6 = vpack.c.bf16 %v1611_v3, %v1610_v2  ;;  %v251_v2 = vld [vmem:[%s4144_s25 + $0x74] sm:$0x1] }
  0x5e   : > { %583 = vmatmul.bf16.gmra.mxu0 %v4273_v11  ;;  %v305_v3 = vunpack.c.l.bf16 %v251_v2  ;;  %2652 = vmatpush.bf16.msra.mxu3 %v3856_v17 }
  0x60   : > { %359 = vst [vmem:[#allocation2 + $0xe8] sm:$0x3] %v305_v3 }
  0x67   : > { %v1625_v53 = vld [vmem:[#allocation2 + $0xe1] sm:$0xff] }
  0x6c   : > { %866 = vmatmul.bf16.vlgmr.msrb.gmra.mxu1 %v777_v55  ;;  %1164 = vmatmul.bf16.vlgmr.msrb.gmra.mxu2 %v1075_v56  ;;  %v1619_v55 = vld [vmem:[#allocation2 + $0x99] sm:$0xff] }
  0x6d   : > { %1463 = vmatmul.bf16.vlgmr.msrb.gmra.mxu3 %v4173_v25  ;;  %v236_v25 = vld [vmem:[%s4144_s25 + $0x38] sm:$0x1]  ;;  %v1677_v61 = vpack.c.bf16 %v1619_v55, %v1618_v54 }
  0x6e   : > { %1761 = vmatmul.bf16.vlgmr.msrb.gmra.mxu0 %v1672_v57  ;;  %v290_v63 = vunpack.c.l.bf16 %v236_v25 }
  0x70   : > { %344 = vst [vmem:[#allocation2 + $0x70] sm:$0x3] %v290_v63 }
  0x77   : > { %v1615_v27 = vld [vmem:[#allocation2 + $0x69] sm:$0xff] }
  0x78   : > { %v1675_v29 = vpack.c.bf16 %v1615_v27, %v1614_v26  ;;  %v1020_v33 = vld [vmem:[#allocation2 + $0x6a] sm:$0xff]  ;;  %v1026_v27 = vld [vmem:[#allocation2 + $0xb2] sm:$0xff] }
  0x79   : > { %v1025_v26 = vld [vmem:[#allocation2 + $0xaa] sm:$0xff] }
  0x7c   : > { %871 = vmatmul.bf16.gmra.mxu1 %v1672_v57  ;;  %1169 = vmatmul.bf16.gmra.mxu2 %v1076_v4  ;;  %v1023_v4 = vld [vmem:[#allocation2 + $0x92] sm:$0xff] }
  0x7d   : > { %1468 = vmatmul.bf16.gmra.mxu3 %v4064_v40  ;;  %v1079_v40 = vpack.c.bf16 %v1020_v33, %v1019_v32  ;;  %v1082_v32 = vpack.c.bf16 %v1026_v27, %v1025_v26  ;;  %v1029_v26 = vld [vmem:[#allocation2 + $0xda] sm:$0xff]  ;;  %v1030_v27 = vld [vmem:[#allocation2 + $0xe2] sm:$0xff] }
  0x7e   : > { %1766 = vmatmul.bf16.gmra.mxu0 %v1673_v6 }
  0x8c   : > { %876 = vmatmul.bf16.gmra.mxu1 %v1673_v6  ;;  %1174 = vmatmul.bf16.gmra.mxu2 %v1077_v14  ;;  %v1024_v6 = vld [vmem:[#allocation2 + $0x9a] sm:$0xff] }
  0x8d   : > { %1473 = vmatmul.bf16.gmra.mxu3 %v4273_v11  ;;  %v3866_v11 = vld [vmem:[%s4758_s1 + $0x228] sm:$0xff] }
  0x8e   : > { %1771 = vmatmul.bf16.gmra.mxu0 %v1674_v15 }
  0x8f   : > { %2948 = vmatpush.bf16.msra.mxu0 %v3866_v11 }
  0x93   : > { %2949 = vmatpush.bf16.msra.mxu0 %v3865_v49  ;;  %v311_v49 = vunpack.c.l.bf16 %v257_v47  ;;  %v4494_v47 = vpack.c.bf16 %v1030_v27, %v1029_v26 }
  0x95   : > { %365 = vst [vmem:[#allocation2 + $0x118] sm:$0x3] %v311_v49 }
  0x97   : > { %2950 = vmatpush.bf16.msra.mxu0 %v3864_v22  ;;  %v260_v22 = vld [vmem:[%s4144_s25 + $0x98] sm:$0x1] }
  0x98   : > { %v314_v23 = vunpack.c.l.bf16 %v260_v22 }
  0x9a   : > { %368 = vst [vmem:[#allocation2 + $0x130] sm:$0x3] %v314_v23 }
  0x9c   : > { %881 = vmatmul.bf16.gmra.mxu1 %v1674_v15  ;;  %1179 = vmatmul.bf16.gmra.mxu2 %v1078_v28  ;;  %v3848_v15 = vld [vmem:[%s4758_s1 + $0x198] sm:$0xff]  ;;  %v1622_v28 = vld [vmem:[#allocation2 + $0xc1] sm:$0xff] }
  0x9d   : > { %1478 = vmatmul.bf16.gmra.mxu3 %v4193_v37  ;;  %v3849_v37 = vld [vmem:[%s4758_s1 + $0x1a0] sm:$0xff] }
  0x9e   : > { %1776 = vmatmul.bf16.gmra.mxu0 %v1675_v29  ;;  %2353 = vmatpush.bf16.msra.mxu2 %v3849_v37 }
  0xa2   : > { %2354 = vmatpush.bf16.msra.mxu2 %v3848_v15 }
  0xa9   : > { %v4380_v41 = vpop.f32.mrf.mxu1 }
  0xab   : > { %v4382_v43 = vpop.f32.mrf.mxu0 }
  0xac   : > { %886 = vmatmul.bf16.gmra.mxu1 %v1675_v29  ;;  %1184 = vmatmul.bf16.gmra.mxu2 %v1079_v40  ;;  %v1623_v29 = vld [vmem:[#allocation2 + $0xc9] sm:$0xff] }
  0xad   : > { %1483 = vmatmul.bf16.gmra.mxu3 %v4154_v16  ;;  %v1679_v34 = vpack.c.bf16 %v1623_v29, %v1622_v28  ;;  %v1626_v28 = vld [vmem:[#allocation2 + $0xf1] sm:$0xff] }
  0xae   : > { %1781 = vmatmul.bf16.gmra.mxu0 %v1676_v42 }
  0xaf   : > { %v4391_v45 = vpop.f32.mrf.mxu2 }
  0xb0   : > { %v4393_v46 = vpop.f32.mrf.mxu3 }
  0xb1   : > { %v4398_v16 = vpop.f32.mrf.mxu1 }
  0xb3   : > { %v4400_v48 = vpop.f32.mrf.mxu0 }
  0xb7   : > { %v4406_v56 = vpop.f32.mrf.mxu2 }
  0xb8   : > { %v4408_v57 = vpop.f32.mrf.mxu3 }
  0xb9   : > { %v4410_v60 = vpop.f32.mrf.mxu1 }
  0xbb   : > { %v4412_v62 = vpop.f32.mrf.mxu0 }
  0xbc   : > { %891 = vmatmul.bf16.gmra.mxu1 %v1676_v42  ;;  %1189 = vmatmul.bf16.gmra.mxu2 %v1080_v59 }
  0xbd   : > { %1488 = vmatmul.bf16.gmra.mxu3 %v4322_v35  ;;  %v1081_v35 = vpack.c.bf16 %v1024_v6, %v1023_v4  ;;  %v3847_v4 = vld [vmem:[%s4758_s1 + $0x190] sm:$0xff] }
  0xbe   : > { %1786 = vmatmul.bf16.gmra.mxu0 %v1677_v61  ;;  %v3855_v6 = vld [vmem:[%s4758_s1 + $0x1d0] sm:$0xff]  ;;  %2355 = vmatpush.bf16.msra.mxu2 %v3847_v4 }
  0xbf   : > { %v4415_v25 = vpop.f32.mrf.mxu2  ;;  %2653 = vmatpush.bf16.msra.mxu3 %v3855_v6 }
  0xc0   : > { %v4417_v63 = vpop.f32.mrf.mxu3 }
  0xc1   : > { %v4419_v0 = vpop.f32.mrf.mxu1 }
  0xc3   : > { %v4421_v1 = vpop.f32.mrf.mxu0 }
  0xc7   : > { %v4424_v9 = vpop.f32.mrf.mxu2 }
  0xc8   : > { %v4426_v10 = vpop.f32.mrf.mxu3 }
  0xc9   : > { %v4428_v12 = vpop.f32.mrf.mxu1 }
  0xcb   : > { %v4430_v14 = vpop.f32.mrf.mxu0 }
  0xcc   : > { %896 = vmatmul.bf16.gmra.mxu1 %v1677_v61  ;;  %1194 = vmatmul.bf16.gmra.mxu2 %v1081_v35  ;;  %v1680_v61 = vpack.c.bf16 %v1625_v53, %v1624_v52 }
  0xcd   : > { %1493 = vmatmul.bf16.gmra.mxu3 %v4230_v58  ;;  %v3840_v58 = vld [vmem:[%s4758_s1 + $0x158] sm:$0xff] }
  0xce   : > { %1791 = vmatmul.bf16.gmra.mxu0 %v1678_v13  ;;  %2055 = vmatpush.bf16.msra.mxu1 %v3840_v58  ;;  %v3863_v58 = vld [vmem:[%s4758_s1 + $0x210] sm:$0xff] }
  0xcf   : > { %v4439_v19 = vpop.f32.mrf.mxu2  ;;  %2951 = vmatpush.bf16.msra.mxu0 %v3863_v58 }
  0xd0   : > { %v4441_v20 = vpop.f32.mrf.mxu3 }
  0xd1   : > { %v4443_v11 = vpop.f32.mrf.mxu1 }
  0xd3   : > { %v4445_v21 = vpop.f32.mrf.mxu0 }
  0xd7   : > { %v4454_v30 = vpop.f32.mrf.mxu2 }
  0xd8   : > { %v4456_v31 = vpop.f32.mrf.mxu3 }
  0xd9   : > { %v4458_v33 = vpop.f32.mrf.mxu1 }
  0xdb   : > { %v4460_v39 = vpop.f32.mrf.mxu0 }
  0xdc   : > { %901 = vmatmul.bf16.gmra.mxu1 %v1678_v13  ;;  %1199 = vmatmul.bf16.gmra.mxu2 %v1082_v32 }
  0xdd   : > { %1498 = vmatmul.bf16.gmra.mxu3 %v4196_v38  ;;  %v1083_v38 = vpack.c.bf16 %v1028_v51, %v1027_v50 }
  0xde   : > { %1796 = vmatmul.bf16.gmra.mxu0 %v1679_v34 }
  0xdf   : > { %v4463_v40 = vpop.f32.mrf.mxu2 }
  0xe0   : > { %v4465_v42 = vpop.f32.mrf.mxu3 }
  0xe1   : > { %v4467_v37 = vpop.f32.mrf.mxu1 }
  0xe3   : > { %v4469_v44 = vpop.f32.mrf.mxu0 }
  0xe7   : > { %v4472_v54 = vpop.f32.mrf.mxu2 }
  0xe8   : > { %v4474_v55 = vpop.f32.mrf.mxu3 }
  0xe9   : > { %v867_v59 = vpop.f32.mrf.mxu1 }
  0xea   : > { %v947_v2 = vadd.f32 %v867_v59, %v4382_v43 }
  0xeb   : > { %v1762_v3 = vpop.f32.mrf.mxu0 }
  0xec   : > { %906 = vmatmul.bf16.gmra.mxu1 %v1679_v34  ;;  %1204 = vmatmul.bf16.gmra.mxu2 %v1083_v38 }
  0xed   : > { %1503 = vmatmul.bf16.gmra.mxu3 %v4160_v18  ;;  %v3839_v18 = vld [vmem:[%s4758_s1 + $0x150] sm:$0xff] }
  0xee   : > { %1801 = vmatmul.bf16.gmra.mxu0 %v1680_v61  ;;  %2056 = vmatpush.bf16.msra.mxu1 %v3839_v18 }
  0xef   : > { %v1165_v7 = vpop.f32.mrf.mxu2 }
  0xf0   : > { %v1245_v8 = vadd.f32 %v1165_v7, %v947_v2  ;;  %v1464_v43 = vpop.f32.mrf.mxu3 }
  0xf1   : > { %v869_v35 = vpop.f32.mrf.mxu1 }
  0xf2   : > { %v1544_v13 = vadd.f32 %v1464_v43, %v1245_v8  ;;  %v948_v15 = vadd.f32 %v869_v35, %v4400_v48  ;;  %v1627_v48 = vld [vmem:[#allocation2 + $0xf9] sm:$0xff]  ;;  %v263_v43 = vld [vmem:[%s4144_s25 + $0xa4] sm:$0x1] }
  0xf3   : > { %v1764_v17 = vpop.f32.mrf.mxu0  ;;  %v1681_v50 = vpack.c.bf16 %v1627_v48, %v1626_v28  ;;  %v317_v35 = vunpack.c.l.bf16 %v263_v43  ;;  %v1630_v43 = vld [vmem:[#allocation2 + $0x121] sm:$0xff] }
  0xf4   : > { %v4492_v24 = vadd.f32 %v1762_v3, %v1544_v13  ;;  %v1032_v13 = vld [vmem:[#allocation2 + $0xfa] sm:$0xff] }
  0xf5   : > { %371 = vst [vmem:[#allocation2 + $0x148] sm:$0x3] %v317_v35  ;;  %v1631_v35 = vld [vmem:[#allocation2 + $0x129] sm:$0xff] }
  0xf7   : > { %v1167_v29 = vpop.f32.mrf.mxu2 }
  0xf8   : > { %v1246_v32 = vadd.f32 %v1167_v29, %v948_v15  ;;  %v1466_v34 = vpop.f32.mrf.mxu3  ;;  %v1628_v15 = vld [vmem:[#allocation2 + $0x109] sm:$0xff] }
  0xf9   : > { %v872_v49 = vpop.f32.mrf.mxu1  ;;  %v3846_v29 = vld [vmem:[%s4758_s1 + $0x188] sm:$0xff] }
  0xfa   : > { %v1545_v51 = vadd.f32 %v1466_v34, %v1246_v32  ;;  %v949_v52 = vadd.f32 %v872_v49, %v4412_v62  ;;  %v3854_v32 = vld [vmem:[%s4758_s1 + $0x1c8] sm:$0xff]  ;;  %2356 = vmatpush.bf16.msra.mxu2 %v3846_v29 }
  0xfb   : > { %v1767_v53 = vpop.f32.mrf.mxu0  ;;  %2654 = vmatpush.bf16.msra.mxu3 %v3854_v32 }
  0xfc   : > { %911 = vmatmul.bf16.gmra.mxu1 %v1680_v61  ;;  %1209 = vmatmul.bf16.gmra.mxu2 %v4494_v47  ;;  %v4498_v38 = vadd.f32 %v1764_v17, %v1545_v51  ;;  %v1031_v61 = vld [vmem:[#allocation2 + $0xf2] sm:$0xff] }
  0xfd   : > { %1508 = vmatmul.bf16.gmra.mxu3 %v4325_v36  ;;  %v1629_v17 = vld [vmem:[#allocation2 + $0x111] sm:$0xff]  ;;  %v4505_v22 = vpack.c.bf16 %v1032_v13, %v1031_v61 }
  0xfe   : > { %1806 = vmatmul.bf16.gmra.mxu0 %v1681_v50  ;;  %v1682_v26 = vpack.c.bf16 %v1629_v17, %v1628_v15 }
  0xff   : > { %v1170_v59 = vpop.f32.mrf.mxu2 }
 0x100   : > { %v1247_v2 = vadd.f32 %v1170_v59, %v949_v52  ;;  %v1469_v3 = vpop.f32.mrf.mxu3  ;;  %v3862_v59 = vld [vmem:[%s4758_s1 + $0x208] sm:$0xff] }
 0x101   : > { %v874_v4 = vpop.f32.mrf.mxu1  ;;  %2952 = vmatpush.bf16.msra.mxu0 %v3862_v59 }
 0x102   : > { %v1546_v6 = vadd.f32 %v1469_v3, %v1247_v2  ;;  %v950_v7 = vadd.f32 %v874_v4, %v4421_v1  ;;  %v266_v2 = vld [vmem:[%s4144_s25 + $0xb0] sm:$0x1] }
 0x103   : > { %v1769_v8 = vpop.f32.mrf.mxu0  ;;  %v320_v3 = vunpack.c.l.bf16 %v266_v2  ;;  %v1334_v2 = vld [vmem:[#allocation2 + $0x138] sm:$0xff] }
 0x104   : > { %v4503_v62 = vadd.f32 %v1767_v53, %v1546_v6  ;;  %v1033_v6 = vld [vmem:[#allocation2 + $0x10a] sm:$0xff] }
 0x105   : > { %374 = vst [vmem:[#allocation2 + $0x160] sm:$0x3] %v320_v3  ;;  %v1632_v3 = vld [vmem:[#allocation2 + $0x139] sm:$0xff] }
 0x107   : > { %v1172_v18 = vpop.f32.mrf.mxu2 }
 0x108   : > { %v1248_v36 = vadd.f32 %v1172_v18, %v950_v7  ;;  %v1471_v58 = vpop.f32.mrf.mxu3  ;;  %v1034_v7 = vld [vmem:[#allocation2 + $0x112] sm:$0xff] }
 0x109   : > { %v877_v23 = vpop.f32.mrf.mxu1  ;;  %v4528_v17 = vpack.c.bf16 %v1034_v7, %v1033_v6  ;;  %v1633_v6 = vld [vmem:[#allocation2 + $0x141] sm:$0xff] }
 0x10a   : > { %v1547_v27 = vadd.f32 %v1471_v58, %v1248_v36  ;;  %v951_v1 = vadd.f32 %v877_v23, %v4430_v14  ;;  %v1683_v58 = vpack.c.bf16 %v1631_v35, %v1630_v43 }
 0x10b   : > { %v1772_v28 = vpop.f32.mrf.mxu0 }
 0x10c   : > { %916 = vmatmul.bf16.gmra.mxu1 %v1681_v50  ;;  %1214 = vmatmul.bf16.gmra.mxu2 %v4505_v22  ;;  %v4509_v48 = vadd.f32 %v1769_v8, %v1547_v27  ;;  %v1332_v8 = vld [vmem:[#allocation2 + $0x120] sm:$0xff] }
 0x10d   : > { %1513 = vmatmul.bf16.gmra.mxu3 %v4259_v5  ;;  %v3838_v5 = vld [vmem:[%s4758_s1 + $0x148] sm:$0xff] }
 0x10e   : > { %1811 = vmatmul.bf16.gmra.mxu0 %v1682_v26  ;;  %2057 = vmatpush.bf16.msra.mxu1 %v3838_v5 }
 0x10f   : > { %v1175_v34 = vpop.f32.mrf.mxu2 }
 0x110   : > { %v1249_v14 = vadd.f32 %v1175_v34, %v951_v1  ;;  %v1474_v49 = vpop.f32.mrf.mxu3 }
 0x111   : > { %v879_v50 = vpop.f32.mrf.mxu1 }
 0x112   : > { %v1548_v51 = vadd.f32 %v1474_v49, %v1249_v14  ;;  %v952_v52 = vadd.f32 %v879_v50, %v4445_v21  ;;  %v1333_v21 = vld [vmem:[#allocation2 + $0x128] sm:$0xff] }
 0x113   : > { %v1774_v53 = vpop.f32.mrf.mxu0  ;;  %v1385_v36 = vpack.c.bf16 %v1333_v21, %v1332_v8 }
 0x114   : > { %v4526_v4 = vadd.f32 %v1772_v28, %v1548_v51 }
 0x117   : > { %v1177_v61 = vpop.f32.mrf.mxu2 }
 0x118   : > { %v1250_v13 = vadd.f32 %v1177_v61, %v952_v52  ;;  %v1476_v15 = vpop.f32.mrf.mxu3  ;;  %v269_v52 = vld [vmem:[%s4144_s25 + $0xbc] sm:$0x1] }
 0x119   : > { %v882_v18 = vpop.f32.mrf.mxu1  ;;  %v323_v5 = vunpack.c.l.bf16 %v269_v52 }
 0x11a   : > { %v1549_v23 = vadd.f32 %v1476_v15, %v1250_v13  ;;  %v953_v27 = vadd.f32 %v882_v18, %v4460_v39  ;;  %v1035_v39 = vld [vmem:[#allocation2 + $0x122] sm:$0xff] }
 0x11b   : > { %v1777_v1 = vpop.f32.mrf.mxu0  ;;  %377 = vst [vmem:[#allocation2 + $0x178] sm:$0x3] %v323_v5 }
 0x11c   : > { %921 = vmatmul.bf16.gmra.mxu1 %v1682_v26  ;;  %1219 = vmatmul.bf16.gmra.mxu2 %v4528_v17  ;;  %v4532_v28 = vadd.f32 %v1774_v53, %v1549_v23  ;;  %v1036_v26 = vld [vmem:[#allocation2 + $0x12a] sm:$0xff]  ;;  %v1335_v53 = vld [vmem:[#allocation2 + $0x140] sm:$0xff] }
 0x11d   : > { %1518 = vmatmul.bf16.gmra.mxu3 %v1385_v36  ;;  %v4538_v43 = vpack.c.bf16 %v1036_v26, %v1035_v39  ;;  %v1386_v61 = vpack.c.bf16 %v1335_v53, %v1334_v2  ;;  %v3845_v36 = vld [vmem:[%s4758_s1 + $0x180] sm:$0xff] }
 0x11e   : > { %1816 = vmatmul.bf16.gmra.mxu0 %v1683_v58  ;;  %v3853_v23 = vld [vmem:[%s4758_s1 + $0x1c0] sm:$0xff]  ;;  %2357 = vmatpush.bf16.msra.mxu2 %v3845_v36 }
 0x11f   : > { %v1180_v29 = vpop.f32.mrf.mxu2  ;;  %2655 = vmatpush.bf16.msra.mxu3 %v3853_v23  ;;  %v1037_v2 = vld [vmem:[#allocation2 + $0x13a] sm:$0xff]  ;;  %v1038_v53 = vld [vmem:[#allocation2 + $0x142] sm:$0xff] }
 0x120   : > { %v1251_v32 = vadd.f32 %v1180_v29, %v953_v27  ;;  %v1479_v34 = vpop.f32.mrf.mxu3  ;;  %v4561_v36 = vpack.c.bf16 %v1038_v53, %v1037_v2  ;;  %v1338_v2 = vld [vmem:[#allocation2 + $0x168] sm:$0xff]  ;;  %v1339_v53 = vld [vmem:[#allocation2 + $0x170] sm:$0xff] }
 0x121   : > { %v884_v14 = vpop.f32.mrf.mxu1 }
 0x122   : > { %v1550_v49 = vadd.f32 %v1479_v34, %v1251_v32  ;;  %v954_v50 = vadd.f32 %v884_v14, %v4469_v44  ;;  %v1684_v44 = vpack.c.bf16 %v1633_v6, %v1632_v3  ;;  %v1336_v3 = vld [vmem:[#allocation2 + $0x150] sm:$0xff] }
 0x123   : > { %v1779_v51 = vpop.f32.mrf.mxu0 }
 0x124   : > { %v4536_v59 = vadd.f32 %v1777_v1, %v1550_v49  ;;  %v3837_v49 = vld [vmem:[%s4758_s1 + $0x140] sm:$0xff] }
 0x125   : > { %2058 = vmatpush.bf16.msra.mxu1 %v3837_v49 }
 0x127   : > { %v1182_v7 = vpop.f32.mrf.mxu2 }
 0x128   : > { %v1252_v8 = vadd.f32 %v1182_v7, %v954_v50  ;;  %v1481_v21 = vpop.f32.mrf.mxu3  ;;  %v3861_v50 = vld [vmem:[%s4758_s1 + $0x200] sm:$0xff]  ;;  %v1337_v7 = vld [vmem:[#allocation2 + $0x158] sm:$0xff] }
 0x129   : > { %v887_v35 = vpop.f32.mrf.mxu1  ;;  %2953 = vmatpush.bf16.msra.mxu0 %v3861_v50 }
 0x12a   : > { %v1551_v13 = vadd.f32 %v1481_v21, %v1252_v8  ;;  %v955_v27 = vadd.f32 %v887_v35, %v4380_v41  ;;  %v272_v41 = vld [vmem:[%s4144_s25 + $0xc8] sm:$0x1]  ;;  %v1634_v8 = vld [vmem:[#allocation2 + $0x151] sm:$0xff]  ;;  %v1635_v21 = vld [vmem:[#allocation2 + $0x159] sm:$0xff] }
 0x12b   : > { %v1782_v15 = vpop.f32.mrf.mxu0  ;;  %v326_v39 = vunpack.c.l.bf16 %v272_v41  ;;  %v1039_v41 = vld [vmem:[#allocation2 + $0x152] sm:$0xff] }
 0x12c   : > { %926 = vmatmul.bf16.gmra.mxu1 %v1683_v58  ;;  %1224 = vmatmul.bf16.gmra.mxu2 %v4538_v43  ;;  %v4541_v18 = vadd.f32 %v1779_v51, %v1551_v13  ;;  %v3992_v51 = vld [vmem:[%s4144_s25 + $0xc0] sm:$0xff]  }
 0x12d   : > { %1523 = vmatmul.bf16.gmra.mxu3 %v1386_v61  ;;  %v3903_v52 = vunpack.c.l.bf16 %v3992_v51  ;;  %v3904_v5 = vunpack.c.h.bf16 %v3992_v51  ;;  %380 = vst [vmem:[#allocation2 + $0x190] sm:$0x3] %v326_v39  ;;  %v1040_v39 = vld [vmem:[#allocation2 + $0x15a] sm:$0xff] }
 0x12e   : > { %1821 = vmatmul.bf16.gmra.mxu0 %v1684_v44 }
 0x12f   : > { %v1185_v1 = vpop.f32.mrf.mxu2  ;;  %378 = vst [vmem:[#allocation2 + $0x180] sm:$0xff] %v3903_v52 }
 0x130   : > { %v1253_v58 = vadd.f32 %v1185_v1, %v955_v27  ;;  %v1484_v29 = vpop.f32.mrf.mxu3  ;;  %379 = vst [vmem:[#allocation2 + $0x188] sm:$0xff] %v3904_v5  ;;  %v1387_v27 = vpack.c.bf16 %v1337_v7, %v1336_v3  ;;  %v1637_v3 = vld [vmem:[#allocation2 + $0x171] sm:$0xff] }
 0x131   : > { %v889_v32 = vpop.f32.mrf.mxu1 }
 0x132   : > { %v1552_v34 = vadd.f32 %v1484_v29, %v1253_v58  ;;  %v956_v6 = vadd.f32 %v889_v32, %v4398_v16 }
 0x133   : > { %v1784_v14 = vpop.f32.mrf.mxu0 }
 0x134   : > { %v4558_v26 = vadd.f32 %v1782_v15, %v1552_v34  ;;  %v1685_v15 = vpack.c.bf16 %v1635_v21, %v1634_v8 }
 0x137   : > { %v1187_v35 = vpop.f32.mrf.mxu2 }
 0x138   : > { %v1254_v61 = vadd.f32 %v1187_v35, %v956_v6  ;;  %v1486_v13 = vpop.f32.mrf.mxu3  ;;  %v1388_v35 = vpack.c.bf16 %v1339_v53, %v1338_v2 }
 0x139   : > { %v892_v23 = vpop.f32.mrf.mxu1 }
 0x13a   : > { %v1553_v1 = vadd.f32 %v1486_v13, %v1254_v61  ;;  %v957_v16 = vadd.f32 %v892_v23, %v4410_v60  ;;  %v4570_v60 = vpack.c.bf16 %v1040_v39, %v1039_v41  ;;  %v1042_v41 = vld [vmem:[#allocation2 + $0x172] sm:$0xff]  ;;  %v1638_v39 = vld [vmem:[#allocation2 + $0x181] sm:$0xff] }
 0x13b   : > { %v1787_v58 = vpop.f32.mrf.mxu0 }
 0x13c   : > { %931 = vmatmul.bf16.gmra.mxu1 %v1684_v44  ;;  %1229 = vmatmul.bf16.gmra.mxu2 %v4561_v36  ;;  %v4564_v29 = vadd.f32 %v1784_v14, %v1553_v1  ;;  %v1636_v14 = vld [vmem:[#allocation2 + $0x169] sm:$0xff] }
 0x13d   : > { %1528 = vmatmul.bf16.gmra.mxu3 %v1387_v27  ;;  %v1686_v61 = vpack.c.bf16 %v1637_v3, %v1636_v14  ;;  %v4065_v3 = vld [vmem:[%s4144_s25 + $0xc0] sm:$0xff] }
 0x13e   : > { %1826 = vmatmul.bf16.gmra.mxu0 %v1685_v15 }
 0x13f   : > { %v1190_v32 = vpop.f32.mrf.mxu2 }
 0x140   : > { %v1255_v34 = vadd.f32 %v1190_v32, %v957_v16  ;;  %v1489_v49 = vpop.f32.mrf.mxu3 }
 0x141   : > { %v894_v50 = vpop.f32.mrf.mxu1 }
 0x142   : > { %v1554_v51 = vadd.f32 %v1489_v49, %v1255_v34  ;;  %v958_v44 = vadd.f32 %v894_v50, %v4419_v0 }
 0x143   : > { %v1789_v52 = vpop.f32.mrf.mxu0 }
 0x144   : > { %v4567_v5 = vadd.f32 %v1787_v58, %v1554_v51  ;;  %v1041_v51 = vld [vmem:[#allocation2 + $0x16a] sm:$0xff] }
 0x145   : > { %v4579_v14 = vpack.c.bf16 %v1042_v41, %v1041_v51  ;;  %v2206_v51 = vld [vmem:[#allocation2 + $0x38] sm:$0xff] }
 0x146   : > { %v2503_v41 = vld [vmem:[#allocation2 + $0x31] sm:$0xff] }
 0x147   : > { %v1192_v6 = vpop.f32.mrf.mxu2 }
 0x148   : > { %v1256_v7 = vadd.f32 %v1192_v6, %v958_v44  ;;  %v1491_v8 = vpop.f32.mrf.mxu3 }
 0x149   : > { %v897_v21 = vpop.f32.mrf.mxu1 }
 0x14a   : > { %v1555_v13 = vadd.f32 %v1491_v8, %v1256_v7  ;;  %v959_v0 = vadd.f32 %v897_v21, %v4428_v12 }
 0x14b   : > { %v1792_v23 = vpop.f32.mrf.mxu0 }
 0x14c   : > { %936 = vmatmul.bf16.gmra.mxu1 %v1685_v15  ;;  %1234 = vmatmul.bf16.gmra.mxu2 %v4570_v60  ;;  %v4573_v27 = vadd.f32 %v1789_v52, %v1555_v13  ;;  %v1639_v52 = vld [vmem:[#allocation2 + $0x189] sm:$0xff] }
 0x14d   : > { %1533 = vmatmul.bf16.gmra.mxu3 %v1388_v35  ;;  %v4582_v6 = vpack.c.bf16 %v1639_v52, %v1638_v39  ;;  %v2801_v39 = vld [vmem:[#allocation2 + $0x32] sm:$0xff]  ;;  %v2802_v52 = vld [vmem:[#allocation2 + $0x3a] sm:$0xff] }
 0x14e   : > { %1831 = vmatmul.bf16.gmra.mxu0 %v1686_v61 }
 0x14f   : > { %v1195_v1 = vpop.f32.mrf.mxu2 }
 0x150   : > { %v1257_v58 = vadd.f32 %v1195_v1, %v959_v0  ;;  %v1494_v16 = vpop.f32.mrf.mxu3 }
 0x151   : > { %v899_v32 = vpop.f32.mrf.mxu1 }
 0x152   : > { %v1556_v34 = vadd.f32 %v1494_v16, %v1257_v58  ;;  %v960_v15 = vadd.f32 %v899_v32, %v4443_v11  ;;  %v1906_v16 = vld [vmem:[#allocation2 + $0x1a] sm:$0xff]  ;;  %v1907_v32 = vld [vmem:[#allocation2 + $0x22] sm:$0xff] }
 0x153   : > { %v1794_v49 = vpop.f32.mrf.mxu0 }
 0x154   : > { %v4576_v50 = vadd.f32 %v1792_v23, %v1556_v34 }
 0x157   : > { %v1197_v2 = vpop.f32.mrf.mxu2 }
 0x158   : > { %v1258_v44 = vadd.f32 %v1197_v2, %v960_v15  ;;  %v1496_v53 = vpop.f32.mrf.mxu3  ;;  %v2504_v15 = vld [vmem:[#allocation2 + $0x39] sm:$0xff] }
 0x159   : > { %v902_v12 = vpop.f32.mrf.mxu1 }
 0x15a   : > { %v1557_v7 = vadd.f32 %v1496_v53, %v1258_v44  ;;  %v961_v11 = vadd.f32 %v902_v12, %v4458_v33  ;;  %v1970_v53 = vpack.c.bf16 %v1907_v32, %v1906_v16 }
 0x15b   : > { %v1797_v8 = vpop.f32.mrf.mxu0 }
 0x15c   : > { %941 = vmatmul.bf16.gmra.mxu1 %v1686_v61  ;;  %1239 = vmatmul.bf16.gmra.mxu2 %v4579_v14  ;;  %v4585_v21 = vadd.f32 %v1794_v49, %v1557_v7  ;;  %v2205_v61 = vld [vmem:[#allocation2 + $0x30] sm:$0xff]  ;;  %v2567_v7 = vpack.c.bf16 %v2504_v15, %v2503_v41 }
 0x15d   : > { %1538 = vmatmul.bf16.gmra.mxu3 %v4065_v3  ;;  %v2269_v12 = vpack.c.bf16 %v2206_v51, %v2205_v61  ;;  %v2207_v61 = vld [vmem:[#allocation2 + $0x48] sm:$0xff]  ;;  %v2208_v51 = vld [vmem:[#allocation2 + $0x50] sm:$0xff] }
 0x15e   : > { %1836 = vmatmul.bf16.gmra.mxu0 %v4582_v6  ;;  %v2505_v41 = vld [vmem:[#allocation2 + $0x49] sm:$0xff] }
 0x15f   : > { %v1200_v35 = vpop.f32.mrf.mxu2 }
 0x160   : > { %v1259_v13 = vadd.f32 %v1200_v35, %v961_v11  ;;  %v1499_v23 = vpop.f32.mrf.mxu3  ;;  %v2865_v11 = vpack.c.bf16 %v2802_v52, %v2801_v39  ;;  %v2506_v39 = vld [vmem:[#allocation2 + $0x51] sm:$0xff] }
 0x161   : > { %v904_v0 = vpop.f32.mrf.mxu1  ;;  %v2804_v52 = vld [vmem:[#allocation2 + $0x52] sm:$0xff] }
 0x162   : > { %v1558_v1 = vadd.f32 %v1499_v23, %v1259_v13  ;;  %v962_v49 = vadd.f32 %v904_v0, %v4467_v37 }
 0x163   : > { %v1799_v58 = vpop.f32.mrf.mxu0 }
 0x164   : > { %v4589_v34 = vadd.f32 %v1797_v8, %v1558_v1 }
 0x167   : > { %v1202_v2 = vpop.f32.mrf.mxu2 }
 0x168   : > { %v1260_v33 = vadd.f32 %v1202_v2, %v962_v49  ;;  %v1501_v44 = vpop.f32.mrf.mxu3 }
 0x169   : > { %v907_v3 = vpop.f32.mrf.mxu1 }
 0x16a   : > { %v1559_v35 = vadd.f32 %v1501_v44, %v1260_v33  ;;  %v963_v37 = vadd.f32 %v907_v3, %v4391_v45  ;;  %v2270_v45 = vpack.c.bf16 %v2208_v51, %v2207_v61  ;;  %v2568_v3 = vpack.c.bf16 %v2506_v39, %v2505_v41  ;;  %v2209_v51 = vld [vmem:[#allocation2 + $0x60] sm:$0xff]  ;;  %v2210_v41 = vld [vmem:[#allocation2 + $0x68] sm:$0xff] }
 0x16b   : > { %v1802_v13 = vpop.f32.mrf.mxu0  ;;  %v2507_v39 = vld [vmem:[#allocation2 + $0x61] sm:$0xff] }
 0x16c   : > { %2059 = vmatmul.bf16.vlgmr.msra.gmra.mxu1 %v1970_v53  ;;  %2358 = vmatmul.bf16.vlgmr.msra.gmra.mxu2 %v2269_v12  ;;  %v4592_v8 = vadd.f32 %v1799_v58, %v1559_v35  ;;  %v2803_v58 = vld [vmem:[#allocation2 + $0x4a] sm:$0xff] }
 0x16d   : > { %2656 = vmatmul.bf16.vlgmr.msra.gmra.mxu3 %v2567_v7  ;;  %v2866_v7 = vpack.c.bf16 %v2804_v52, %v2803_v58  ;;  %v2508_v58 = vld [vmem:[#allocation2 + $0x69] sm:$0xff] }
 0x16e   : > { %2954 = vmatmul.bf16.vlgmr.msra.gmra.mxu0 %v2865_v11  ;;  %v2806_v52 = vld [vmem:[#allocation2 + $0x6a] sm:$0xff] }
 0x16f   : > { %v1205_v23 = vpop.f32.mrf.mxu2 }
 0x170   : > { %v1261_v0 = vadd.f32 %v1205_v23, %v963_v37  ;;  %v1504_v1 = vpop.f32.mrf.mxu3 }
 0x171   : > { %v909_v49 = vpop.f32.mrf.mxu1 }
 0x172   : > { %v1560_v2 = vadd.f32 %v1504_v1, %v1261_v0  ;;  %v964_v15 = vadd.f32 %v909_v49, %v4406_v56 }
 0x173   : > { %v1804_v16 = vpop.f32.mrf.mxu0 }
 0x174   : > { %v4595_v32 = vadd.f32 %v1802_v13, %v1560_v2 }
 0x177   : > { %v1207_v33 = vpop.f32.mrf.mxu2 }
 0x178   : > { %v1262_v44 = vadd.f32 %v1207_v33, %v964_v15  ;;  %v1506_v53 = vpop.f32.mrf.mxu3 }
 0x179   : > { %v912_v12 = vpop.f32.mrf.mxu1 }
 0x17a   : > { %v1561_v35 = vadd.f32 %v1506_v53, %v1262_v44  ;;  %v965_v56 = vadd.f32 %v912_v12, %v4415_v25  ;;  %v2271_v25 = vpack.c.bf16 %v2210_v41, %v2209_v51  ;;  %v2569_v12 = vpack.c.bf16 %v2508_v58, %v2507_v39  ;;  %v2211_v41 = vld [vmem:[#allocation2 + $0x78] sm:$0xff]  ;;  %v2212_v39 = vld [vmem:[#allocation2 + $0x80] sm:$0xff] }
 0x17b   : > { %v1807_v37 = vpop.f32.mrf.mxu0  ;;  %v2509_v58 = vld [vmem:[#allocation2 + $0x79] sm:$0xff] }
 0x17c   : > { %2064 = vmatmul.bf16.gmra.mxu1 %v2865_v11  ;;  %2363 = vmatmul.bf16.gmra.mxu2 %v2270_v45  ;;  %v4598_v13 = vadd.f32 %v1804_v16, %v1561_v35  ;;  %v2805_v16 = vld [vmem:[#allocation2 + $0x62] sm:$0xff] }
 0x17d   : > { %2661 = vmatmul.bf16.gmra.mxu3 %v2568_v3  ;;  %v2867_v3 = vpack.c.bf16 %v2806_v52, %v2805_v16  ;;  %v2510_v16 = vld [vmem:[#allocation2 + $0x81] sm:$0xff] }
 0x17e   : > { %2959 = vmatmul.bf16.gmra.mxu0 %v2866_v7  ;;  %v2808_v52 = vld [vmem:[#allocation2 + $0x82] sm:$0xff] }
 0x17f   : > { %v1210_v23 = vpop.f32.mrf.mxu2 }
 0x180   : > { %v1263_v0 = vadd.f32 %v1210_v23, %v965_v56  ;;  %v1509_v1 = vpop.f32.mrf.mxu3 }
 0x181   : > { %v914_v49 = vpop.f32.mrf.mxu1 }
 0x182   : > { %v1562_v2 = vadd.f32 %v1509_v1, %v1263_v0  ;;  %v966_v11 = vadd.f32 %v914_v49, %v4424_v9 }
 0x183   : > { %v1809_v15 = vpop.f32.mrf.mxu0 }
 0x184   : > { %v4601_v61 = vadd.f32 %v1807_v37, %v1562_v2 }
 0x187   : > { %v1212_v33 = vpop.f32.mrf.mxu2 }
 0x188   : > { %v1264_v44 = vadd.f32 %v1212_v33, %v966_v11  ;;  %v1511_v53 = vpop.f32.mrf.mxu3 }
 0x189   : > { %v917_v45 = vpop.f32.mrf.mxu1 }
 0x18a   : > { %v1563_v35 = vadd.f32 %v1511_v53, %v1264_v44  ;;  %v967_v9 = vadd.f32 %v917_v45, %v4439_v19  ;;  %v2272_v19 = vpack.c.bf16 %v2212_v39, %v2211_v41  ;;  %v2570_v45 = vpack.c.bf16 %v2510_v16, %v2509_v58  ;;  %v2213_v39 = vld [vmem:[#allocation2 + $0x90] sm:$0xff]  ;;  %v2214_v58 = vld [vmem:[#allocation2 + $0x98] sm:$0xff] }
 0x18b   : > { %v1812_v56 = vpop.f32.mrf.mxu0  ;;  %v2511_v16 = vld [vmem:[#allocation2 + $0x91] sm:$0xff] }
 0x18c   : > { %2069 = vmatmul.bf16.gmra.mxu1 %v2866_v7  ;;  %2368 = vmatmul.bf16.gmra.mxu2 %v2271_v25  ;;  %v4604_v37 = vadd.f32 %v1809_v15, %v1563_v35  ;;  %v2807_v15 = vld [vmem:[#allocation2 + $0x7a] sm:$0xff] }
 0x18d   : > { %2666 = vmatmul.bf16.gmra.mxu3 %v2569_v12  ;;  %v2868_v12 = vpack.c.bf16 %v2808_v52, %v2807_v15  ;;  %v2512_v15 = vld [vmem:[#allocation2 + $0x99] sm:$0xff] }
 0x18e   : > { %2964 = vmatmul.bf16.gmra.mxu0 %v2867_v3  ;;  %v2810_v52 = vld [vmem:[#allocation2 + $0x9a] sm:$0xff] }
 0x18f   : > { %v1215_v23 = vpop.f32.mrf.mxu2 }
 0x190   : > { %v1265_v0 = vadd.f32 %v1215_v23, %v967_v9  ;;  %v1514_v1 = vpop.f32.mrf.mxu3 }
 0x191   : > { %v919_v49 = vpop.f32.mrf.mxu1 }
 0x192   : > { %v1564_v2 = vadd.f32 %v1514_v1, %v1265_v0  ;;  %v968_v7 = vadd.f32 %v919_v49, %v4454_v30 }
 0x193   : > { %v1814_v11 = vpop.f32.mrf.mxu0 }
 0x194   : > { %v4607_v51 = vadd.f32 %v1812_v56, %v1564_v2 }
 0x197   : > { %v1217_v33 = vpop.f32.mrf.mxu2 }
 0x198   : > { %v1266_v44 = vadd.f32 %v1217_v33, %v968_v7  ;;  %v1516_v53 = vpop.f32.mrf.mxu3 }
 0x199   : > { %v922_v25 = vpop.f32.mrf.mxu1 }
 0x19a   : > { %v1565_v35 = vadd.f32 %v1516_v53, %v1266_v44  ;;  %v969_v30 = vadd.f32 %v922_v25, %v4463_v40  ;;  %v2273_v40 = vpack.c.bf16 %v2214_v58, %v2213_v39  ;;  %v2571_v25 = vpack.c.bf16 %v2512_v15, %v2511_v16  ;;  %v2215_v58 = vld [vmem:[#allocation2 + $0xa8] sm:$0xff]  ;;  %v2216_v16 = vld [vmem:[#allocation2 + $0xb0] sm:$0xff] }
 0x19b   : > { %v1817_v9 = vpop.f32.mrf.mxu0  ;;  %v2513_v15 = vld [vmem:[#allocation2 + $0xa9] sm:$0xff] }
 0x19c   : > { %2074 = vmatmul.bf16.gmra.mxu1 %v2867_v3  ;;  %2373 = vmatmul.bf16.gmra.mxu2 %v2272_v19  ;;  %v4610_v56 = vadd.f32 %v1814_v11, %v1565_v35  ;;  %v2809_v11 = vld [vmem:[#allocation2 + $0x92] sm:$0xff] }
 0x19d   : > { %2671 = vmatmul.bf16.gmra.mxu3 %v2570_v45  ;;  %v2869_v45 = vpack.c.bf16 %v2810_v52, %v2809_v11  ;;  %v2514_v11 = vld [vmem:[#allocation2 + $0xb1] sm:$0xff] }
 0x19e   : > { %2969 = vmatmul.bf16.gmra.mxu0 %v2868_v12  ;;  %v2812_v52 = vld [vmem:[#allocation2 + $0xb2] sm:$0xff] }
 0x19f   : > { %v1220_v23 = vpop.f32.mrf.mxu2 }
 0x1a0   : > { %v1267_v0 = vadd.f32 %v1220_v23, %v969_v30  ;;  %v1519_v1 = vpop.f32.mrf.mxu3 }
 0x1a1   : > { %v924_v49 = vpop.f32.mrf.mxu1 }
 0x1a2   : > { %v1566_v2 = vadd.f32 %v1519_v1, %v1267_v0  ;;  %v970_v3 = vadd.f32 %v924_v49, %v4472_v54 }
 0x1a3   : > { %v1819_v7 = vpop.f32.mrf.mxu0 }
 0x1a4   : > { %v4613_v41 = vadd.f32 %v1817_v9, %v1566_v2 }
 0x1a7   : > { %v1222_v33 = vpop.f32.mrf.mxu2 }
 0x1a8   : > { %v1268_v44 = vadd.f32 %v1222_v33, %v970_v3  ;;  %v1521_v53 = vpop.f32.mrf.mxu3 }
 0x1a9   : > { %v927_v19 = vpop.f32.mrf.mxu1 }
 0x1aa   : > { %v1567_v35 = vadd.f32 %v1521_v53, %v1268_v44  ;;  %v971_v54 = vadd.f32 %v927_v19, %v4393_v46  ;;  %v2274_v46 = vpack.c.bf16 %v2216_v16, %v2215_v58  ;;  %v2572_v19 = vpack.c.bf16 %v2514_v11, %v2513_v15  ;;  %v2217_v16 = vld [vmem:[#allocation2 + $0xc0] sm:$0xff]  ;;  %v2218_v15 = vld [vmem:[#allocation2 + $0xc8] sm:$0xff] }
 0x1ab   : > { %v1822_v30 = vpop.f32.mrf.mxu0  ;;  %v2515_v11 = vld [vmem:[#allocation2 + $0xc1] sm:$0xff] }
 0x1ac   : > { %2079 = vmatmul.bf16.gmra.mxu1 %v2868_v12  ;;  %2378 = vmatmul.bf16.gmra.mxu2 %v2273_v40  ;;  %v4616_v9 = vadd.f32 %v1819_v7, %v1567_v35  ;;  %v2811_v7 = vld [vmem:[#allocation2 + $0xaa] sm:$0xff] }
 0x1ad   : > { %2676 = vmatmul.bf16.gmra.mxu3 %v2571_v25  ;;  %v2870_v25 = vpack.c.bf16 %v2812_v52, %v2811_v7  ;;  %v2516_v7 = vld [vmem:[#allocation2 + $0xc9] sm:$0xff] }
 0x1ae   : > { %2974 = vmatmul.bf16.gmra.mxu0 %v2869_v45  ;;  %v2814_v52 = vld [vmem:[#allocation2 + $0xca] sm:$0xff] }
 0x1af   : > { %v1225_v23 = vpop.f32.mrf.mxu2 }
 0x1b0   : > { %v1269_v0 = vadd.f32 %v1225_v23, %v971_v54  ;;  %v1524_v1 = vpop.f32.mrf.mxu3 }
 0x1b1   : > { %v929_v49 = vpop.f32.mrf.mxu1 }
 0x1b2   : > { %v1568_v2 = vadd.f32 %v1524_v1, %v1269_v0  ;;  %v972_v12 = vadd.f32 %v929_v49, %v4408_v57 }
 0x1b3   : > { %v1824_v3 = vpop.f32.mrf.mxu0 }
 0x1b4   : > { %v4619_v39 = vadd.f32 %v1822_v30, %v1568_v2 }
 0x1b7   : > { %v1227_v33 = vpop.f32.mrf.mxu2 }
 0x1b8   : > { %v1270_v44 = vadd.f32 %v1227_v33, %v972_v12  ;;  %v1526_v53 = vpop.f32.mrf.mxu3 }
 0x1b9   : > { %v932_v40 = vpop.f32.mrf.mxu1 }
 0x1ba   : > { %v1569_v35 = vadd.f32 %v1526_v53, %v1270_v44  ;;  %v973_v57 = vadd.f32 %v932_v40, %v4417_v63  ;;  %v2275_v63 = vpack.c.bf16 %v2218_v15, %v2217_v16  ;;  %v2573_v40 = vpack.c.bf16 %v2516_v7, %v2515_v11  ;;  %v2219_v15 = vld [vmem:[#allocation2 + $0xd8] sm:$0xff]  ;;  %v2220_v11 = vld [vmem:[#allocation2 + $0xe0] sm:$0xff] }
 0x1bb   : > { %v1827_v54 = vpop.f32.mrf.mxu0 }
 0x1bc   : > { %2084 = vmatmul.bf16.gmra.mxu1 %v2869_v45  ;;  %2383 = vmatmul.bf16.gmra.mxu2 %v2274_v46  ;;  %v4622_v30 = vadd.f32 %v1824_v3, %v1569_v35  ;;  %v2813_v3 = vld [vmem:[#allocation2 + $0xc2] sm:$0xff] }
 0x1bd   : > { %2681 = vmatmul.bf16.gmra.mxu3 %v2572_v19  ;;  %v2871_v19 = vpack.c.bf16 %v2814_v52, %v2813_v3  ;;  %v2518_v3 = vld [vmem:[#allocation2 + $0xe1] sm:$0xff] }
 0x1be   : > { %2979 = vmatmul.bf16.gmra.mxu0 %v2870_v25 }
 0x1bf   : > { %v1230_v23 = vpop.f32.mrf.mxu2 }
 0x1c0   : > { %v1271_v0 = vadd.f32 %v1230_v23, %v973_v57  ;;  %v1529_v1 = vpop.f32.mrf.mxu3 }
 0x1c1   : > { %v934_v49 = vpop.f32.mrf.mxu1 }
 0x1c2   : > { %v1570_v2 = vadd.f32 %v1529_v1, %v1271_v0  ;;  %v974_v45 = vadd.f32 %v934_v49, %v4426_v10 }
 0x1c3   : > { %v1829_v12 = vpop.f32.mrf.mxu0 }
 0x1c4   : > { %v4625_v58 = vadd.f32 %v1827_v54, %v1570_v2 }
 0x1c7   : > { %v1232_v33 = vpop.f32.mrf.mxu2 }
 0x1c8   : > { %v1272_v44 = vadd.f32 %v1232_v33, %v974_v45  ;;  %v1531_v53 = vpop.f32.mrf.mxu3 }
 0x1c9   : > { %v937_v46 = vpop.f32.mrf.mxu1 }
 0x1ca   : > { %v1571_v35 = vadd.f32 %v1531_v53, %v1272_v44  ;;  %v975_v10 = vadd.f32 %v937_v46, %v4441_v20  ;;  %v2276_v44 = vpack.c.bf16 %v2220_v11, %v2219_v15  ;;  %v1923_v15 = vld [vmem:[#allocation2 + $0xe2] sm:$0xff]  ;;  %v2221_v11 = vld [vmem:[#allocation2 + $0xf0] sm:$0xff] }
 0x1cb   : > { %v1832_v57 = vpop.f32.mrf.mxu0 }
 0x1cc   : > { %2089 = vmatmul.bf16.gmra.mxu1 %v2870_v25  ;;  %2388 = vmatmul.bf16.gmra.mxu2 %v2275_v63  ;;  %v4628_v54 = vadd.f32 %v1829_v12, %v1571_v35  ;;  %v2517_v25 = vld [vmem:[#allocation2 + $0xd9] sm:$0xff] }
 0x1cd   : > { %2686 = vmatmul.bf16.gmra.mxu3 %v2573_v40  ;;  %v2574_v20 = vpack.c.bf16 %v2518_v3, %v2517_v25  ;;  %v2520_v25 = vld [vmem:[#allocation2 + $0xf9] sm:$0xff] }
 0x1ce   : > { %2984 = vmatmul.bf16.gmra.mxu0 %v2871_v19 }
 0x1cf   : > { %v1235_v23 = vpop.f32.mrf.mxu2 }
 0x1d0   : > { %v1273_v0 = vadd.f32 %v1235_v23, %v975_v10  ;;  %v1534_v1 = vpop.f32.mrf.mxu3 }
 0x1d1   : > { %v939_v49 = vpop.f32.mrf.mxu1 }
 0x1d2   : > { %v1572_v2 = vadd.f32 %v1534_v1, %v1273_v0  ;;  %v976_v7 = vadd.f32 %v939_v49, %v4456_v31  ;;  %v1922_v49 = vld [vmem:[#allocation2 + $0xda] sm:$0xff] }
 0x1d3   : > { %v1834_v45 = vpop.f32.mrf.mxu0 }
 0x1d4   : > { %v4631_v16 = vadd.f32 %v1832_v57, %v1572_v2 }
 0x1d7   : > { %v1237_v12 = vpop.f32.mrf.mxu2 }
 0x1d8   : > { %v1274_v52 = vadd.f32 %v1237_v12, %v976_v7  ;;  %v1536_v33 = vpop.f32.mrf.mxu3  ;;  %v2519_v7 = vld [vmem:[#allocation2 + $0xf1] sm:$0xff] }
 0x1d9   : > { %v942_v53 = vpop.f32.mrf.mxu1 }
 0x1da   : > { %v1573_v63 = vadd.f32 %v1536_v33, %v1274_v52  ;;  %v977_v35 = vadd.f32 %v942_v53, %v4465_v42  ;;  %v1978_v42 = vpack.c.bf16 %v1923_v15, %v1922_v49  ;;  %v1925_v49 = vld [vmem:[#allocation2 + $0xfa] sm:$0xff]  ;;  %v2223_v15 = vld [vmem:[#allocation2 + $0x108] sm:$0xff] }
 0x1db   : > { %v1837_v46 = vpop.f32.mrf.mxu0 }
 0x1dc   : > { %2094 = vmatmul.bf16.gmra.mxu1 %v2871_v19  ;;  %2393 = vmatmul.bf16.gmra.mxu2 %v2276_v44  ;;  %v4634_v40 = vadd.f32 %v1834_v45, %v1573_v63  ;;  %v2222_v19 = vld [vmem:[#allocation2 + $0xf8] sm:$0xff]  ;;  %v2575_v44 = vpack.c.bf16 %v2520_v25, %v2519_v7 }
 0x1dd   : > { %2691 = vmatmul.bf16.gmra.mxu3 %v2574_v20  ;;  %v2277_v52 = vpack.c.bf16 %v2222_v19, %v2221_v11  ;;  %v2224_v11 = vld [vmem:[#allocation2 + $0x110] sm:$0xff] }
 0x1de   : > { %2989 = vmatmul.bf16.gmra.mxu0 %v4494_v47 }
 0x1df   : > { %v1240_v31 = vpop.f32.mrf.mxu2 }
 0x1e0   : > { %v1275_v57 = vadd.f32 %v1240_v31, %v977_v35  ;;  %v1539_v10 = vpop.f32.mrf.mxu3 }
 0x1e1   : > { %v944_v23 = vpop.f32.mrf.mxu1 }
 0x1e2   : > { %v1574_v0 = vadd.f32 %v1539_v10, %v1275_v57  ;;  %v978_v45 = vadd.f32 %v944_v23, %v4474_v55 }
 0x1e3   : > { %v1839_v1 = vpop.f32.mrf.mxu0 }
 0x1e4   : > { %v4638_v2 = vadd.f32 %v1837_v46, %v1574_v0  ;;  %v1924_v0 = vld [vmem:[#allocation2 + $0xf2] sm:$0xff] }
 0x1e7   : > { %v1242_v3 = vpop.f32.mrf.mxu2 }
 0x1e8   : > { %v1276_v47 = vadd.f32 %v1242_v3, %v978_v45  ;;  %v1541_v12 = vpop.f32.mrf.mxu3  ;;  %v2521_v45 = vld [vmem:[#allocation2 + $0x109] sm:$0xff] }
 0x1e9   : > { %v2060_v33 = vpop.f32.mrf.mxu1 }
 0x1ea   : > { %v1575_v53 = vadd.f32 %v1541_v12, %v1276_v47  ;;  %v2140_v55 = vadd.f32 %v2060_v33, %v4492_v24  ;;  %v4649_v24 = vld [vmem:[%s4759_s2] ss:$0 sm:$0xff]  ;;  %v1979_v47 = vpack.c.bf16 %v1925_v49, %v1924_v0  ;;  %v2278_v12 = vpack.c.bf16 %v2224_v11, %v2223_v15  ;;  %v1926_v15 = vld [vmem:[#allocation2 + $0x10a] sm:$0xff]  ;;  %v1927_v11 = vld [vmem:[#allocation2 + $0x112] sm:$0xff] }
 0x1eb   : > { %v2955_v20 = vpop.f32.mrf.mxu0 }
 0x1ec   : > { %2099 = vmatmul.bf16.gmra.mxu1 %v1978_v42  ;;  %2398 = vmatmul.bf16.gmra.mxu2 %v2277_v52  ;;  %v4641_v63 = vadd.f32 %v1839_v1, %v1575_v53  ;;  %v2522_v1 = vld [vmem:[#allocation2 + $0x111] sm:$0xff] }
 0x1ed   : > { %2696 = vmatmul.bf16.gmra.mxu3 %v2575_v44  ;;  %v2576_v52 = vpack.c.bf16 %v2522_v1, %v2521_v45  ;;  %v2523_v1 = vld [vmem:[#allocation2 + $0x121] sm:$0xff] }
 0x1ee   : > { %2994 = vmatmul.bf16.gmra.mxu0 %v4505_v22 }
 0x1ef   : > { %v2359_v46 = vpop.f32.mrf.mxu2 }
 0x1f0   : > { %v2439_v35 = vadd.f32 %v2359_v46, %v2140_v55  ;;  %v2657_v31 = vpop.f32.mrf.mxu3 }
 0x1f1   : > { %v2062_v57 = vpop.f32.mrf.mxu1 }
 0x1f2   : > { %v2737_v23 = vadd.f32 %v2657_v31, %v2439_v35  ;;  %v2141_v19 = vadd.f32 %v2062_v57, %v4498_v38 }
 0x1f3   : > { %v2957_v10 = vpop.f32.mrf.mxu0 }
 0x1f4   : > { %v3035_v25 = vadd.f32 %v2955_v20, %v2737_v23 }
 0x1f6   : > { %v3135_v38 = vadd.f32 %v4649_v24, %v3035_v25 }
 0x1f7   : > { %v2361_v7 = vpop.f32.mrf.mxu2 }
 0x1f8   : > { %v2440_v22 = vadd.f32 %v2361_v7, %v2141_v19  ;;  %v2659_v3 = vpop.f32.mrf.mxu3  ;;  %v3167_v35 = vmax.f32 %v3135_v38, 0.0  ;;  %v2225_v19 = vld [vmem:[#allocation2 + $0x120] sm:$0xff]  ;;  %v2524_v7 = vld [vmem:[#allocation2 + $0x129] sm:$0xff] }
 0x1f9   : > { %v2065_v42 = vpop.f32.mrf.mxu1 }
 0x1fa   : > { %v2738_v33 = vadd.f32 %v2659_v3, %v2440_v22  ;;  %v2142_v55 = vadd.f32 %v2065_v42, %v4503_v62  ;;  %v2226_v62 = vld [vmem:[#allocation2 + $0x128] sm:$0xff] }
 0x1fb   : > { %v2960_v44 = vpop.f32.mrf.mxu0  ;;  %v2279_v42 = vpack.c.bf16 %v2226_v62, %v2225_v19  ;;  %v2227_v19 = vld [vmem:[#allocation2 + $0x138] sm:$0xff]  ;;  %v2228_v62 = vld [vmem:[#allocation2 + $0x140] sm:$0xff] }
 0x1fc   : > { %v3036_v53 = vadd.f32 %v2957_v10, %v2738_v33  ;;  %2104 = vmatmul.bf16.gmra.mxu1 %v1979_v47  ;;  %2403 = vmatmul.bf16.gmra.mxu2 %v2278_v12  ;;  %v1980_v12 = vpack.c.bf16 %v1927_v11, %v1926_v15  ;;  %v2577_v33 = vpack.c.bf16 %v2524_v7, %v2523_v1  ;;  %v1929_v11 = vld [vmem:[#allocation2 + $0x12a] sm:$0xff]  ;;  %v2526_v1 = vld [vmem:[#allocation2 + $0x141] sm:$0xff] }
 0x1fd   : > { %2701 = vmatmul.bf16.gmra.mxu3 %v2576_v52 }
 0x1fe   : > { %2999 = vmatmul.bf16.gmra.mxu0 %v4528_v17  ;;  %v3136_v20 = vadd.f32 %v4649_v24, %v3036_v53 }
 0x1ff   : > { %v2364_v46 = vpop.f32.mrf.mxu2 }
 0x200   : > { %v3168_v31 = vmax.f32 %v3136_v20, 0.0  ;;  %v2441_v57 = vadd.f32 %v2364_v46, %v2142_v55  ;;  %v2662_v23 = vpop.f32.mrf.mxu3 }
 0x201   : > { %v2067_v10 = vpop.f32.mrf.mxu1 }
 0x202   : > { %v3908_v0 = vpack.c.bf16 %v3168_v31, %v3167_v35  ;;  %v2739_v17 = vadd.f32 %v2662_v23, %v2441_v57  ;;  %v2143_v45 = vadd.f32 %v2067_v10, %v4509_v48 }
 0x203   : > { %v2962_v49 = vpop.f32.mrf.mxu0 }
 0x204   : > { %3909 = vst [vmem:[%s4659_s10] sm:$0xff] %v3908_v0   ;;  %v3037_v22 = vadd.f32 %v2960_v44, %v2739_v17 }
 0x206   : > { %v3137_v20 = vadd.f32 %v4649_v24, %v3037_v22 }
 0x207   : > { %v2366_v25 = vpop.f32.mrf.mxu2 }
 0x208   : > { %v2442_v3 = vadd.f32 %v2366_v25, %v2143_v45  ;;  %v2664_v47 = vpop.f32.mrf.mxu3  ;;  %v3169_v35 = vmax.f32 %v3137_v20, 0.0  ;;  %v2525_v45 = vld [vmem:[#allocation2 + $0x139] sm:$0xff] }
 0x209   : > { %v2070_v52 = vpop.f32.mrf.mxu1 }
 0x20a   : > { %v2740_v38 = vadd.f32 %v2664_v47, %v2442_v3  ;;  %v2144_v44 = vadd.f32 %v2070_v52, %v4526_v4  ;;  %v2280_v47 = vpack.c.bf16 %v2228_v62, %v2227_v19  ;;  %v2528_v19 = vld [vmem:[#allocation2 + $0x159] sm:$0xff] }
 0x20b   : > { %v2965_v53 = vpop.f32.mrf.mxu0 }
 0x20c   : > { %v3038_v55 = vadd.f32 %v2962_v49, %v2740_v38  ;;  %2109 = vmatmul.bf16.gmra.mxu1 %v1980_v12  ;;  %2408 = vmatmul.bf16.gmra.mxu2 %v2279_v42  ;;  %v1928_v49 = vld [vmem:[#allocation2 + $0x122] sm:$0xff]  ;;  %v2578_v42 = vpack.c.bf16 %v2526_v1, %v2525_v45 }
 0x20d   : > { %2706 = vmatmul.bf16.gmra.mxu3 %v2577_v33  ;;  %v1981_v3 = vpack.c.bf16 %v1929_v11, %v1928_v49  ;;  %v2230_v49 = vld [vmem:[#allocation2 + $0x158] sm:$0xff] }
 0x20e   : > { %3004 = vmatmul.bf16.gmra.mxu0 %v4538_v43  ;;  %v3138_v48 = vadd.f32 %v4649_v24, %v3038_v55  ;;  %v2527_v11 = vld [vmem:[#allocation2 + $0x151] sm:$0xff] }
 0x20f   : > { %v2369_v46 = vpop.f32.mrf.mxu2 }
 0x210   : > { %v3170_v31 = vmax.f32 %v3138_v48, 0.0  ;;  %v2443_v57 = vadd.f32 %v2369_v46, %v2144_v44  ;;  %v2667_v23 = vpop.f32.mrf.mxu3 }
 0x211   : > { %v2072_v10 = vpop.f32.mrf.mxu1 }
 0x212   : > { %v3913_v0 = vpack.c.bf16 %v3170_v31, %v3169_v35  ;;  %v2741_v15 = vadd.f32 %v2667_v23, %v2443_v57  ;;  %v2145_v43 = vadd.f32 %v2072_v10, %v4532_v28 }
 0x213   : > { %v2967_v17 = vpop.f32.mrf.mxu0 }
 0x214   : > { %3993 = vst [vmem:[%s4659_s10 + $0x8] sm:$0xff] %v3913_v0   ;;  %v3039_v4 = vadd.f32 %v2965_v53, %v2741_v15  ;;  %v1930_v0 = vld [vmem:[#allocation2 + $0x13a] sm:$0xff]  ;;  %v2229_v15 = vld [vmem:[#allocation2 + $0x150] sm:$0xff] }
 0x216   : > { %v3139_v38 = vadd.f32 %v4649_v24, %v3039_v4 }
 0x217   : > { %v2371_v7 = vpop.f32.mrf.mxu2 }
 0x218   : > { %v2444_v25 = vadd.f32 %v2371_v7, %v2145_v43  ;;  %v2669_v22 = vpop.f32.mrf.mxu3  ;;  %v3171_v48 = vmax.f32 %v3139_v38, 0.0  ;;  %v2281_v7 = vpack.c.bf16 %v2230_v49, %v2229_v15  ;;  %v2529_v15 = vld [vmem:[#allocation2 + $0x169] sm:$0xff]  ;;  %v2530_v49 = vld [vmem:[#allocation2 + $0x171] sm:$0xff] }
 0x219   : > { %v2075_v12 = vpop.f32.mrf.mxu1 }
 0x21a   : > { %v2742_v52 = vadd.f32 %v2669_v22, %v2444_v25  ;;  %v2146_v53 = vadd.f32 %v2075_v12, %v4536_v59  ;;  %v2579_v25 = vpack.c.bf16 %v2528_v19, %v2527_v11 }
 0x21b   : > { %v2970_v33 = vpop.f32.mrf.mxu0 }
 0x21c   : > { %v3040_v20 = vadd.f32 %v2967_v17, %v2742_v52  ;;  %2114 = vmatmul.bf16.gmra.mxu1 %v1981_v3  ;;  %2413 = vmatmul.bf16.gmra.mxu2 %v2280_v47  ;;  %v1931_v17 = vld [vmem:[#allocation2 + $0x142] sm:$0xff] }
 0x21d   : > { %2711 = vmatmul.bf16.gmra.mxu3 %v2578_v42  ;;  %v1982_v1 = vpack.c.bf16 %v1931_v17, %v1930_v0  ;;  %v2232_v0 = vld [vmem:[#allocation2 + $0x170] sm:$0xff] }
 0x21e   : > { %3009 = vmatmul.bf16.gmra.mxu0 %v4561_v36  ;;  %v3140_v28 = vadd.f32 %v4649_v24, %v3040_v20 }
 0x21f   : > { %v2374_v55 = vpop.f32.mrf.mxu2 }
 0x220   : > { %v3172_v44 = vmax.f32 %v3140_v28, 0.0  ;;  %v2445_v46 = vadd.f32 %v2374_v55, %v2146_v53  ;;  %v2672_v35 = vpop.f32.mrf.mxu3  ;;  %v4680_v53 = vld [vmem:[%s4144_s25 + $0xcc] sm:$0xff]   ;;  %v275_v55 = vld [vmem:[%s4144_s25 + $0xd4] sm:$0x1] }
 0x221   : > { %v2077_v31 = vpop.f32.mrf.mxu1 }
 0x222   : > { %v3918_v57 = vpack.c.bf16 %v3172_v44, %v3171_v48  ;;  %v2743_v10 = vadd.f32 %v2672_v35, %v2445_v46  ;;  %v2147_v36 = vadd.f32 %v2077_v31, %v4541_v18  ;;  %v327_v44 = vunpack.c.l.bf16 %v4680_v53 }
 0x223   : > { %v2972_v23 = vpop.f32.mrf.mxu0  ;;  %v328_v46 = vunpack.c.h.bf16 %v4680_v53  ;;  %v329_v31 = vunpack.c.l.bf16 %v275_v55  ;;  %v1934_v55 = vld [vmem:[#allocation2 + $0x16a] sm:$0xff] }
 0x224   : > { %3994 = vst [vmem:[%s4659_s10 + $0x10] sm:$0xff] %v3918_v57   ;;  %v3041_v59 = vadd.f32 %v2970_v33, %v2743_v10  ;;  %v2231_v10 = vld [vmem:[#allocation2 + $0x168] sm:$0xff] }
 0x225   : > { %381 = vst [vmem:[#allocation2 + $0x198] sm:$0xff] %v327_v44  ;;  %v2233_v44 = vld [vmem:[#allocation2 + $0x180] sm:$0xff] }
 0x226   : > { %v3141_v47 = vadd.f32 %v4649_v24, %v3041_v59  ;;  %382 = vst [vmem:[#allocation2 + $0x1a0] sm:$0xff] %v328_v46  ;;  %v2234_v46 = vld [vmem:[#allocation2 + $0x188] sm:$0xff] }
 0x227   : > { %v2376_v62 = vpop.f32.mrf.mxu2  ;;  %383 = vst [vmem:[#allocation2 + $0x1a8] sm:$0x3] %v329_v31 }
 0x228   : > { %v2446_v43 = vadd.f32 %v2376_v62, %v2147_v36  ;;  %v2674_v45 = vpop.f32.mrf.mxu3  ;;  %v3173_v33 = vmax.f32 %v3141_v47, 0.0 }
 0x229   : > { %v2080_v4 = vpop.f32.mrf.mxu1 }
 0x22a   : > { %v2744_v22 = vadd.f32 %v2674_v45, %v2446_v43  ;;  %v2148_v42 = vadd.f32 %v2080_v4, %v4558_v26  ;;  %v1932_v26 = vld [vmem:[#allocation2 + $0x152] sm:$0xff]  ;;  %v2282_v43 = vpack.c.bf16 %v2232_v0, %v2231_v10  ;;  %v2283_v10 = vpack.c.bf16 %v2234_v46, %v2233_v44 }
 0x22b   : > { %v2975_v3 = vpop.f32.mrf.mxu0 }
 0x22c   : > { %v3042_v12 = vadd.f32 %v2972_v23, %v2744_v22  ;;  %2119 = vmatmul.bf16.gmra.mxu1 %v1982_v1  ;;  %2418 = vmatmul.bf16.gmra.mxu2 %v2281_v7  ;;  %v1933_v23 = vld [vmem:[#allocation2 + $0x15a] sm:$0xff]  ;;  %v2580_v1 = vpack.c.bf16 %v2530_v49, %v2529_v15 }
 0x22d   : > { %2716 = vmatmul.bf16.gmra.mxu3 %v2579_v25  ;;  %v1983_v59 = vpack.c.bf16 %v1933_v23, %v1932_v26 }
 0x22e   : > { %3014 = vmatmul.bf16.gmra.mxu0 %v4570_v60  ;;  %v3142_v18 = vadd.f32 %v4649_v24, %v3042_v12 }
 0x22f   : > { %v2379_v52 = vpop.f32.mrf.mxu2 }
 0x230   : > { %v3174_v38 = vmax.f32 %v3142_v18, 0.0  ;;  %v2447_v20 = vadd.f32 %v2379_v52, %v2148_v42  ;;  %v2677_v28 = vpop.f32.mrf.mxu3 }
 0x231   : > { %v2082_v48 = vpop.f32.mrf.mxu1 }
 0x232   : > { %v3923_v35 = vpack.c.bf16 %v3174_v38, %v3173_v33  ;;  %v2745_v57 = vadd.f32 %v2677_v28, %v2447_v20  ;;  %v2149_v17 = vadd.f32 %v2082_v48, %v4564_v29  ;;  %v1935_v48 = vld [vmem:[#allocation2 + $0x172] sm:$0xff] }
 0x233   : > { %v2977_v60 = vpop.f32.mrf.mxu0  ;;  %v1984_v23 = vpack.c.bf16 %v1935_v48, %v1934_v55 }
 0x234   : > { %3995 = vst [vmem:[%s4659_s10 + $0x18] sm:$0xff] %v3923_v35   ;;  %v3043_v11 = vadd.f32 %v2975_v3, %v2745_v57  ;;  %v2829_v35 = vld [vmem:[#allocation2 + $0x182] sm:$0xff] }
 0x236   : > { %v3143_v25 = vadd.f32 %v4649_v24, %v3043_v11 }
 0x237   : > { %v2381_v36 = vpop.f32.mrf.mxu2 }
 0x238   : > { %v2448_v19 = vadd.f32 %v2381_v36, %v2149_v17  ;;  %v2679_v62 = vpop.f32.mrf.mxu3  ;;  %v3175_v12 = vmax.f32 %v3143_v25, 0.0 }
 0x239   : > { %v2085_v45 = vpop.f32.mrf.mxu1 }
 0x23a   : > { %v2746_v7 = vadd.f32 %v2679_v62, %v2448_v19  ;;  %v2150_v3 = vadd.f32 %v2085_v45, %v4567_v5 }
 0x23b   : > { %v2980_v4 = vpop.f32.mrf.mxu0 }
 0x23c   : > { %v3044_v22 = vadd.f32 %v2977_v60, %v2746_v7  ;;  %2124 = vmatmul.bf16.gmra.mxu1 %v1983_v59  ;;  %2423 = vmatmul.bf16.gmra.mxu2 %v2282_v43  ;;  %v2830_v60 = vld [vmem:[#allocation2 + $0x18a] sm:$0xff] }
 0x23d   : > { %2721 = vmatmul.bf16.gmra.mxu3 %v2580_v1  ;;  %v2879_v17 = vpack.c.bf16 %v2830_v60, %v2829_v35 }
 0x23e   : > { %3019 = vmatmul.bf16.gmra.mxu0 %v4579_v14  ;;  %v3144_v29 = vadd.f32 %v4649_v24, %v3044_v22 }
 0x23f   : > { %v2384_v47 = vpop.f32.mrf.mxu2 }
 0x240   : > { %v3176_v18 = vmax.f32 %v3144_v29, 0.0  ;;  %v2449_v42 = vadd.f32 %v2384_v47, %v2150_v3  ;;  %v2682_v52 = vpop.f32.mrf.mxu3  ;;  %v2533_v29 = vld [vmem:[#allocation2 + $0x199] sm:$0xff]  ;;  %v2534_v47 = vld [vmem:[#allocation2 + $0x1a1] sm:$0xff] }
 0x241   : > { %v2087_v33 = vpop.f32.mrf.mxu1 }
 0x242   : > { %v3928_v38 = vpack.c.bf16 %v3176_v18, %v3175_v12  ;;  %v2747_v28 = vadd.f32 %v2682_v52, %v2449_v42  ;;  %v2151_v14 = vadd.f32 %v2087_v33, %v4573_v27  ;;  %v2832_v12 = vld [vmem:[#allocation2 + $0x1a2] sm:$0xff] }
 0x243   : > { %v2982_v20 = vpop.f32.mrf.mxu0 }
 0x244   : > { %3996 = vst [vmem:[%s4659_s10 + $0x20] sm:$0xff] %v3928_v38   ;;  %v3045_v5 = vadd.f32 %v2980_v4, %v2747_v28  ;;  %v2582_v38 = vpack.c.bf16 %v2534_v47, %v2533_v29 }
 0x246   : > { %v3145_v36 = vadd.f32 %v4649_v24, %v3045_v5 }
 0x247   : > { %v2386_v31 = vpop.f32.mrf.mxu2 }
 0x248   : > { %v2450_v57 = vadd.f32 %v2386_v31, %v2151_v14  ;;  %v2684_v26 = vpop.f32.mrf.mxu3  ;;  %v3177_v59 = vmax.f32 %v3145_v36, 0.0 }
 0x249   : > { %v2090_v0 = vpop.f32.mrf.mxu1 }
 0x24a   : > { %v2748_v15 = vadd.f32 %v2684_v26, %v2450_v57  ;;  %v2152_v19 = vadd.f32 %v2090_v0, %v4576_v50 }
 0x24b   : > { %v2985_v49 = vpop.f32.mrf.mxu0 }
 0x24c   : > { %v3046_v11 = vadd.f32 %v2982_v20, %v2748_v15  ;;  %2129 = vmatmul.bf16.gmra.mxu1 %v1984_v23  ;;  %2428 = vmatmul.bf16.gmra.mxu2 %v2283_v10 }
 0x24d   : > { %2726 = vmatmul.bf16.gmra.mxu3 %v4582_v6  ;;  %v2831_v6 = vld [vmem:[#allocation2 + $0x19a] sm:$0xff] }
 0x24e   : > { %3024 = vmatmul.bf16.gmra.mxu0 %v2879_v17  ;;  %v3146_v27 = vadd.f32 %v4649_v24, %v3046_v11  ;;  %v2880_v20 = vpack.c.bf16 %v2832_v12, %v2831_v6 }
 0x24f   : > { %v2389_v62 = vpop.f32.mrf.mxu2 }
 0x250   : > { %v3178_v43 = vmax.f32 %v3146_v27, 0.0  ;;  %v2451_v45 = vadd.f32 %v2389_v62, %v2152_v19  ;;  %v2687_v1 = vpop.f32.mrf.mxu3 }
 0x251   : > { %v2092_v7 = vpop.f32.mrf.mxu1 }
 0x252   : > { %v3933_v4 = vpack.c.bf16 %v3178_v43, %v3177_v59  ;;  %v2749_v22 = vadd.f32 %v2687_v1, %v2451_v45  ;;  %v2153_v3 = vadd.f32 %v2092_v7, %v4585_v21 }
 0x253   : > { %v2987_v25 = vpop.f32.mrf.mxu0 }
 0x254   : > { %3997 = vst [vmem:[%s4659_s10 + $0x28] sm:$0xff] %v3933_v4   ;;  %v3047_v42 = vadd.f32 %v2985_v49, %v2749_v22 }
 0x256   : > { %v3147_v48 = vadd.f32 %v4649_v24, %v3047_v42 }
 0x257   : > { %v2391_v18 = vpop.f32.mrf.mxu2 }
 0x258   : > { %v2452_v52 = vadd.f32 %v2391_v18, %v2153_v3  ;;  %v2689_v50 = vpop.f32.mrf.mxu3  ;;  %v3179_v35 = vmax.f32 %v3147_v48, 0.0 }
 0x259   : > { %v2095_v33 = vpop.f32.mrf.mxu1 }
 0x25a   : > { %v2750_v28 = vadd.f32 %v2689_v50, %v2452_v52  ;;  %v2154_v46 = vadd.f32 %v2095_v33, %v4589_v34 }
 0x25b   : > { %v2990_v55 = vpop.f32.mrf.mxu0 }
 0x25c   : > { %v3048_v44 = vadd.f32 %v2987_v25, %v2750_v28  ;;  %2134 = vmatmul.bf16.gmra.mxu1 %v2879_v17  ;;  %2433 = vmatmul.bf16.gmra.mxu2 %v4680_v53 }
 0x25d   : > { %2731 = vmatmul.bf16.gmra.mxu3 %v2582_v38 }
 0x25e   : > { %3029 = vmatmul.bf16.gmra.mxu0 %v2880_v20  ;;  %v3148_v21 = vadd.f32 %v4649_v24, %v3048_v44 }
 0x25f   : > { %v2394_v14 = vpop.f32.mrf.mxu2 }
 0x260   : > { %v3180_v60 = vmax.f32 %v3148_v21, 0.0  ;;  %v2453_v31 = vadd.f32 %v2394_v14, %v2154_v46  ;;  %v2692_v5 = vpop.f32.mrf.mxu3 }
 0x261   : > { %v2097_v57 = vpop.f32.mrf.mxu1 }
 0x262   : > { %v3938_v26 = vpack.c.bf16 %v3180_v60, %v3179_v35  ;;  %v2751_v10 = vadd.f32 %v2692_v5, %v2453_v31  ;;  %v2155_v0 = vadd.f32 %v2097_v57, %v4592_v8 }
 0x263   : > { %v2992_v23 = vpop.f32.mrf.mxu0 }
 0x264   : > { %3998 = vst [vmem:[%s4659_s10 + $0x30] sm:$0xff] %v3938_v26   ;;  %v3049_v53 = vadd.f32 %v2990_v55, %v2751_v10 }
 0x266   : > { %v3149_v27 = vadd.f32 %v4649_v24, %v3049_v53 }
 0x267   : > { %v2396_v17 = vpop.f32.mrf.mxu2 }
 0x268   : > { %v2454_v15 = vadd.f32 %v2396_v17, %v2155_v0  ;;  %v2694_v49 = vpop.f32.mrf.mxu3  ;;  %v3181_v45 = vmax.f32 %v3149_v27, 0.0 }
 0x269   : > { %v2100_v36 = vpop.f32.mrf.mxu1 }
 0x26a   : > { %v2752_v11 = vadd.f32 %v2694_v49, %v2454_v15  ;;  %v2156_v59 = vadd.f32 %v2100_v36, %v4595_v32 }
 0x26b   : > { %v2995_v34 = vpop.f32.mrf.mxu0 }
 0x26c   : > { %v3050_v19 = vadd.f32 %v2992_v23, %v2752_v11 }
 0x26e   : > { %v3150_v62 = vadd.f32 %v4649_v24, %v3050_v19 }
 0x26f   : > { %v2399_v43 = vpop.f32.mrf.mxu2 }
 0x270   : > { %v3182_v1 = vmax.f32 %v3150_v62, 0.0  ;;  %v2455_v7 = vadd.f32 %v2399_v43, %v2156_v59  ;;  %v2697_v8 = vpop.f32.mrf.mxu3 }
 0x271   : > { %v2102_v4 = vpop.f32.mrf.mxu1 }
 0x272   : > { %v3943_v25 = vpack.c.bf16 %v3182_v1, %v3181_v45  ;;  %v2753_v29 = vadd.f32 %v2697_v8, %v2455_v7  ;;  %v2157_v3 = vadd.f32 %v2102_v4, %v4598_v13 }
 0x273   : > { %v2997_v22 = vpop.f32.mrf.mxu0 }
 0x274   : > { %3999 = vst [vmem:[%s4659_s10 + $0x38] sm:$0xff] %v3943_v25   ;;  %v3051_v6 = vadd.f32 %v2995_v34, %v2753_v29 }
 0x276   : > { %v3151_v50 = vadd.f32 %v4649_v24, %v3051_v6 }
 0x277   : > { %v2401_v47 = vpop.f32.mrf.mxu2 }
 0x278   : > { %v2456_v12 = vadd.f32 %v2401_v47, %v2157_v3  ;;  %v2699_v18 = vpop.f32.mrf.mxu3  ;;  %v3183_v55 = vmax.f32 %v3151_v50, 0.0 }
 0x279   : > { %v2105_v42 = vpop.f32.mrf.mxu1 }
 0x27a   : > { %v2754_v52 = vadd.f32 %v2699_v18, %v2456_v12  ;;  %v2158_v20 = vadd.f32 %v2105_v42, %v4601_v61 }
 0x27b   : > { %v3000_v32 = vpop.f32.mrf.mxu0 }
 0x27c   : > { %v3052_v33 = vadd.f32 %v2997_v22, %v2754_v52 }
 0x27e   : > { %v3152_v38 = vadd.f32 %v4649_v24, %v3052_v33 }
 0x27f   : > { %v2404_v28 = vpop.f32.mrf.mxu2 }
 0x280   : > { %v3184_v48 = vmax.f32 %v3152_v38, 0.0  ;;  %v2457_v44 = vadd.f32 %v2404_v28, %v2158_v20  ;;  %v2702_v13 = vpop.f32.mrf.mxu3 }
 0x281   : > { %v2107_v21 = vpop.f32.mrf.mxu1 }
 0x282   : > { %v3948_v46 = vpack.c.bf16 %v3184_v48, %v3183_v55  ;;  %v2755_v35 = vadd.f32 %v2702_v13, %v2457_v44  ;;  %v2159_v60 = vadd.f32 %v2107_v21, %v4604_v37 }
 0x283   : > { %v3002_v14 = vpop.f32.mrf.mxu0 }
 0x284   : > { %4000 = vst [vmem:[%s4659_s10 + $0x40] sm:$0xff] %v3948_v46   ;;  %v3053_v5 = vadd.f32 %v3000_v32, %v2755_v35 }
 0x286   : > { %v3153_v0 = vadd.f32 %v4649_v24, %v3053_v5 }
 0x287   : > { %v2406_v31 = vpop.f32.mrf.mxu2 }
 0x288   : > { %v2458_v57 = vadd.f32 %v2406_v31, %v2159_v60  ;;  %v2704_v26 = vpop.f32.mrf.mxu3  ;;  %v3185_v36 = vmax.f32 %v3153_v0, 0.0 }
 0x289   : > { %v2110_v23 = vpop.f32.mrf.mxu1 }
 0x28a   : > { %v2756_v10 = vadd.f32 %v2704_v26, %v2458_v57  ;;  %v2160_v15 = vadd.f32 %v2110_v23, %v4607_v51 }
 0x28b   : > { %v3005_v61 = vpop.f32.mrf.mxu0 }
 0x28c   : > { %v3054_v17 = vadd.f32 %v3002_v14, %v2756_v10 }
 0x28e   : > { %v3154_v53 = vadd.f32 %v4649_v24, %v3054_v17 }
 0x28f   : > { %v2409_v49 = vpop.f32.mrf.mxu2 }
 0x290   : > { %v3186_v11 = vmax.f32 %v3154_v53, 0.0  ;;  %v2459_v34 = vadd.f32 %v2409_v49, %v2160_v15  ;;  %v2707_v37 = vpop.f32.mrf.mxu3 }
 0x291   : > { %v2112_v27 = vpop.f32.mrf.mxu1 }
 0x292   : > { %v3953_v19 = vpack.c.bf16 %v3186_v11, %v3185_v36  ;;  %v2757_v59 = vadd.f32 %v2707_v37, %v2459_v34  ;;  %v2161_v43 = vadd.f32 %v2112_v27, %v4610_v56 }
 0x293   : > { %v3007_v62 = vpop.f32.mrf.mxu0 }
 0x294   : > { %4001 = vst [vmem:[%s4659_s10 + $0x48] sm:$0xff] %v3953_v19   ;;  %v3055_v1 = vadd.f32 %v3005_v61, %v2757_v59 }
 0x296   : > { %v3155_v22 = vadd.f32 %v4649_v24, %v3055_v1 }
 0x297   : > { %v2411_v45 = vpop.f32.mrf.mxu2 }
 0x298   : > { %v2460_v7 = vadd.f32 %v2411_v45, %v2161_v43  ;;  %v2709_v8 = vpop.f32.mrf.mxu3  ;;  %v3187_v12 = vmax.f32 %v3155_v22, 0.0 }
 0x299   : > { %v2115_v4 = vpop.f32.mrf.mxu1 }
 0x29a   : > { %v2758_v25 = vadd.f32 %v2709_v8, %v2460_v7  ;;  %v2162_v47 = vadd.f32 %v2115_v4, %v4613_v41 }
 0x29b   : > { %v3010_v51 = vpop.f32.mrf.mxu0 }
 0x29c   : > { %v3056_v29 = vadd.f32 %v3007_v62, %v2758_v25 }
 0x29e   : > { %v3156_v3 = vadd.f32 %v4649_v24, %v3056_v29 }
 0x29f   : > { %v2414_v6 = vpop.f32.mrf.mxu2 }
 0x2a0   : > { %v3188_v18 = vmax.f32 %v3156_v3, 0.0  ;;  %v2461_v42 = vadd.f32 %v2414_v6, %v2162_v47  ;;  %v2712_v56 = vpop.f32.mrf.mxu3 }
 0x2a1   : > { %v2117_v52 = vpop.f32.mrf.mxu1 }
 0x2a2   : > { %v3958_v32 = vpack.c.bf16 %v3188_v18, %v3187_v12  ;;  %v2759_v33 = vadd.f32 %v2712_v56, %v2461_v42  ;;  %v2163_v38 = vadd.f32 %v2117_v52, %v4616_v9 }
 0x2a3   : > { %v3012_v50 = vpop.f32.mrf.mxu0 }
 0x2a4   : > { %4002 = vst [vmem:[%s4659_s10 + $0x50] sm:$0xff] %v3958_v32   ;;  %v3057_v28 = vadd.f32 %v3010_v51, %v2759_v33 }
 0x2a6   : > { %v3157_v21 = vadd.f32 %v4649_v24, %v3057_v28 }
 0x2a7   : > { %v2416_v20 = vpop.f32.mrf.mxu2 }
 0x2a8   : > { %v2462_v55 = vadd.f32 %v2416_v20, %v2163_v38  ;;  %v2714_v48 = vpop.f32.mrf.mxu3  ;;  %v3189_v31 = vmax.f32 %v3157_v21, 0.0 }
 0x2a9   : > { %v2120_v44 = vpop.f32.mrf.mxu1 }
 0x2aa   : > { %v2760_v13 = vadd.f32 %v2714_v48, %v2462_v55  ;;  %v2164_v35 = vadd.f32 %v2120_v44, %v4619_v39 }
 0x2ab   : > { %v3015_v41 = vpop.f32.mrf.mxu0 }
 0x2ac   : > { %v3058_v46 = vadd.f32 %v3012_v50, %v2760_v13 }
 0x2ae   : > { %v3158_v14 = vadd.f32 %v4649_v24, %v3058_v46 }
 0x2af   : > { %v2419_v60 = vpop.f32.mrf.mxu2 }
 0x2b0   : > { %v3190_v5 = vmax.f32 %v3158_v14, 0.0  ;;  %v2463_v57 = vadd.f32 %v2419_v60, %v2164_v35  ;;  %v2717_v9 = vpop.f32.mrf.mxu3 }
 0x2b1   : > { %v2122_v26 = vpop.f32.mrf.mxu1 }
 0x2b2   : > { %v3963_v23 = vpack.c.bf16 %v3190_v5, %v3189_v31  ;;  %v2761_v61 = vadd.f32 %v2717_v9, %v2463_v57  ;;  %v2165_v0 = vadd.f32 %v2122_v26, %v4622_v30 }
 0x2b3   : > { %v3017_v10 = vpop.f32.mrf.mxu0 }
 0x2b4   : > { %4003 = vst [vmem:[%s4659_s10 + $0x58] sm:$0xff] %v3963_v23   ;;  %v3059_v53 = vadd.f32 %v3015_v41, %v2761_v61 }
 0x2b6   : > { %v3159_v34 = vadd.f32 %v4649_v24, %v3059_v53 }
 0x2b7   : > { %v2421_v17 = vpop.f32.mrf.mxu2 }
 0x2b8   : > { %v2464_v15 = vadd.f32 %v2421_v17, %v2165_v0  ;;  %v2719_v49 = vpop.f32.mrf.mxu3  ;;  %v3191_v59 = vmax.f32 %v3159_v34, 0.0 }
 0x2b9   : > { %v2125_v36 = vpop.f32.mrf.mxu1 }
 0x2ba   : > { %v2762_v11 = vadd.f32 %v2719_v49, %v2464_v15  ;;  %v2166_v19 = vadd.f32 %v2125_v36, %v4625_v58 }
 0x2bb   : > { %v3020_v39 = vpop.f32.mrf.mxu0 }
 0x2bc   : > { %v3060_v37 = vadd.f32 %v3017_v10, %v2762_v11 }
 0x2be   : > { %v3160_v27 = vadd.f32 %v4649_v24, %v3060_v37 }
 0x2bf   : > { %v2424_v62 = vpop.f32.mrf.mxu2 }
 0x2c0   : > { %v3192_v43 = vmax.f32 %v3160_v27, 0.0  ;;  %v2465_v45 = vadd.f32 %v2424_v62, %v2166_v19  ;;  %v2722_v30 = vpop.f32.mrf.mxu3 }
 0x2c1   : > { %v2127_v1 = vpop.f32.mrf.mxu1 }
 0x2c2   : > { %v3968_v7 = vpack.c.bf16 %v3192_v43, %v3191_v59  ;;  %v2763_v4 = vadd.f32 %v2722_v30, %v2465_v45  ;;  %v2167_v25 = vadd.f32 %v2127_v1, %v4628_v54 }
 0x2c3   : > { %v3022_v8 = vpop.f32.mrf.mxu0 }
 0x2c4   : > { %4004 = vst [vmem:[%s4659_s10 + $0x60] sm:$0xff] %v3968_v7   ;;  %v3061_v22 = vadd.f32 %v3020_v39, %v2763_v4 }
 0x2c6   : > { %v3161_v58 = vadd.f32 %v4649_v24, %v3061_v22 }
 0x2c7   : > { %v2426_v51 = vpop.f32.mrf.mxu2 }
 0x2c8   : > { %v2466_v29 = vadd.f32 %v2426_v51, %v2167_v25  ;;  %v2724_v3 = vpop.f32.mrf.mxu3  ;;  %v3193_v32 = vmax.f32 %v3161_v58, 0.0 }
 0x2c9   : > { %v2130_v47 = vpop.f32.mrf.mxu1 }
 0x2ca   : > { %v2764_v6 = vadd.f32 %v2724_v3, %v2466_v29  ;;  %v2168_v56 = vadd.f32 %v2130_v47, %v4631_v16 }
 0x2cb   : > { %v3025_v18 = vpop.f32.mrf.mxu0 }
 0x2cc   : > { %v3062_v12 = vadd.f32 %v3022_v8, %v2764_v6 }
 0x2ce   : > { %v3162_v42 = vadd.f32 %v4649_v24, %v3062_v12 }
 0x2cf   : > { %v2429_v52 = vpop.f32.mrf.mxu2 }
 0x2d0   : > { %v3194_v50 = vmax.f32 %v3162_v42, 0.0  ;;  %v2467_v33 = vadd.f32 %v2429_v52, %v2168_v56  ;;  %v2727_v54 = vpop.f32.mrf.mxu3 }
 0x2d1   : > { %v2132_v38 = vpop.f32.mrf.mxu1 }
 0x2d2   : > { %v3973_v20 = vpack.c.bf16 %v3194_v50, %v3193_v32  ;;  %v2765_v28 = vadd.f32 %v2727_v54, %v2467_v33  ;;  %v2169_v55 = vadd.f32 %v2132_v38, %v4634_v40 }
 0x2d3   : > { %v3027_v48 = vpop.f32.mrf.mxu0 }
 0x2d4   : > { %4005 = vst [vmem:[%s4659_s10 + $0x68] sm:$0xff] %v3973_v20   ;;  %v3063_v13 = vadd.f32 %v3025_v18, %v2765_v28 }
 0x2d6   : > { %v3163_v16 = vadd.f32 %v4649_v24, %v3063_v13 }
 0x2d7   : > { %v2431_v44 = vpop.f32.mrf.mxu2 }
 0x2d8   : > { %v2468_v41 = vadd.f32 %v2431_v44, %v2169_v55  ;;  %v2729_v21 = vpop.f32.mrf.mxu3  ;;  %v3195_v57 = vmax.f32 %v3163_v16, 0.0 }
 0x2d9   : > { %v2135_v46 = vpop.f32.mrf.mxu1 }
 0x2da   : > { %v2766_v14 = vadd.f32 %v2729_v21, %v2468_v41  ;;  %v2170_v31 = vadd.f32 %v2135_v46, %v4638_v2 }
 0x2db   : > { %v3030_v23 = vpop.f32.mrf.mxu0 }
 0x2dc   : > { %v3064_v35 = vadd.f32 %v3027_v48, %v2766_v14 }
 0x2de   : > { %v3164_v60 = vadd.f32 %v4649_v24, %v3064_v35 }
 0x2df   : > { %v2434_v5 = vpop.f32.mrf.mxu2 }
 0x2e0   : > { %v3196_v9 = vmax.f32 %v3164_v60, 0.0  ;;  %v2469_v26 = vadd.f32 %v2434_v5, %v2170_v31  ;;  %v2732_v40 = vpop.f32.mrf.mxu3 }
 0x2e1   : > { %v2137_v61 = vpop.f32.mrf.mxu1 }
 0x2e2   : > { %v3978_v10 = vpack.c.bf16 %v3196_v9, %v3195_v57  ;;  %v2767_v0 = vadd.f32 %v2732_v40, %v2469_v26  ;;  %v2171_v17 = vadd.f32 %v2137_v61, %v4641_v63 }
 0x2e3   : > { %v3032_v39 = vpop.f32.mrf.mxu0 }
 0x2e4   : > { %4006 = vst [vmem:[%s4659_s10 + $0x70] sm:$0xff] %v3978_v10   ;;  %v3065_v15 = vadd.f32 %v3030_v23, %v2767_v0 }
 0x2e6   : > { %v3165_v2 = vadd.f32 %v4649_v24, %v3065_v15 }
 0x2e7   : > { %v2436_v53 = vpop.f32.mrf.mxu2 }
 0x2e8   : > { %v2470_v49 = vadd.f32 %v2436_v53, %v2171_v17  ;;  %v2734_v36 = vpop.f32.mrf.mxu3  ;;  %v3197_v27 = vmax.f32 %v3165_v2, 0.0 }
 0x2ea   : > { %v2768_v11 = vadd.f32 %v2734_v36, %v2470_v49 }
 0x2ec   : > { %v3066_v34 = vadd.f32 %v3032_v39, %v2768_v11 }
 0x2ee   : > { %v3166_v37 = vadd.f32 %v4649_v24, %v3066_v34 }
 0x2f0   : > { %v3198_v19 = vmax.f32 %v3166_v37, 0.0 }
 0x2f2   : > { %v3983_v62 = vpack.c.bf16 %v3198_v19, %v3197_v27 }
 0x2f4   : > { %4007 = vst [vmem:[%s4659_s10 + $0x78] sm:$0xff] %v3983_v62  }
 0x2f5 PF: > { %s13_s14 = sadd.s32 1, %s4089_s14   ;;  %s4761_s12 = smov %s4085_s13 }
 0x2f6   : > { %p10_p5 = scmp.ge.s32.totalorder %s13_s14, 4   ;;  %s4762_s13 = smov %s4764_s15 }
 0x2f8   :  { %12 = sbr.rel (!%p10_p5) target bundleno = 2 (0x2), region = 78 }

// kernel: model_and_loss_forward.6
= control target key start
LH: loop header
LB: loop body
LE: loop exit
PB: predicated region body
PF: predicated region fallthrough
CT: control target
= control target key end

     0   :  { %s4371_s15 = smov 0   ;;  %s4373_s16 = smov 0   ;;  %s5028_s0 = inlined_call_operand.vmem [shape: bf16[2,18,18,128], index: 0, kind: input, shape index: {}]   ;;  %s5029_s1 = inlined_call_operand.vmem [shape: bf16[9,128,128], index: 1, kind: input, shape index: {}]   ;;  %s5030_s2 = inlined_call_operand.vmem [shape: f32[1,128], index: 2, kind: input, shape index: {}]   ;;  %s5031_s3 = inlined_call_operand.vmem [shape: bf16[2,16,16,128], index: 3, kind: input, shape index: {}]   ;;  %s5032_s4 = inlined_call_operand.vmem [shape: bf16[2,16,16,128], index: 4, kind: output, shape index: {}]  }
   0x1   :  { %s4375_s17 = smov 0  }
   0x2 LB: > { %s26_s18 = sadd.s32 1, %s4340_s16  ;;  %p3546_p0 = scmp.ge.s32.totalorder %s4344_s17, 1  ;;  %s4344_s17 = sphi %s4375_s17, %s14_s17   ;;  %s4340_s16 = sphi %s4373_s16, %s5034_s16   ;;  %s4336_s15 = sphi %s4371_s15, %s5033_s15  }
   0x3   : > { %p28_p1 = scmp.ge.s32.totalorder %s26_s18, 2  ;;  %p208_p2 = scmp.lt.s32.totalorder %s4344_s17, 3 }
   0x5   : > { %s5036_s18 = smov (%p28_p1, %s26_s18), 0  ;;  %p209_p3 = pnand %p3546_p0, %p208_p2 }
   0x6   : > { %p252_p4 = scmp.lt.s32.totalorder (!%p209_p3), %s4336_s15, 1 }
   0x7   : > { %212 = sbr.rel (%p209_p3) target bundleno = 759 (0x2f7), region = 36 }
   0xc   : > { %v3979_v0 = vld [vmem:[%s5029_s1 + $0x38] sm:$0xff]  ;;  %v3978_v1 = vld [vmem:[%s5029_s1 + $0x30] sm:$0xff]  ;;  %s5038_s15 = smov (!%p252_p4, %s4336_s15), 1  ;;  %v3977_v2 = vld [vmem:[%s5029_s1 + $0x28] sm:$0xff] }
   0xd   : > { %4262 = vmatpush.bf16.msra.mxu1 %v3979_v0  ;;  %4263 = vmatpush.bf16.msra.mxu2 %v3979_v0  ;;  %s4286_s23 = smul.u32 216, %s5038_s15  ;;  %v3976_v11 = vld [vmem:[%s5029_s1 + $0x20] sm:$0xff]  ;;  %v3975_v17 = vld [vmem:[%s5029_s1 + $0x18] sm:$0xff]  ;;  %v3974_v22 = vld [vmem:[%s5029_s1 + $0x10] sm:$0xff]  ;;  %s3970_s19 = sshll.u32 %s5038_s15, 7 }
   0xe   : > { %4264 = vmatpush.bf16.msra.mxu3 %v3979_v0  ;;  %618 = vmatpush.bf16.msra.mxu0 %v3979_v0  ;;  %v3973_v29 = vld [vmem:[%s5029_s1 + $0x8] sm:$0xff]  ;;  %v3972_v34 = vld [vmem:[%s5029_s1] sm:$0xff]  ;;  %v3995_v35 = vld [vmem:[%s5029_s1 + $0xb8] sm:$0xff]  ;;  %s4899_s22 = scalar_lea.vmem %s5031_s3, %s3970_s19  ;;  %s4917_s27 = scalar_lea.vmem %s5032_s4, %s3970_s19 }
   0xf   : > { %s4404_s28 = scalar_lea.vmem %s5028_s0, %s4286_s23  ;;  %v4003_v36 = vld [vmem:[%s5029_s1 + $0xf8] sm:$0xff]  ;;  %v3994_v43 = vld [vmem:[%s5029_s1 + $0xb0] sm:$0xff]  ;;  %v3993_v54 = vld [vmem:[%s5029_s1 + $0xa8] sm:$0xff] }
  0x10   : > { %v4225_v3 = vld [vmem:[%s4404_s28 + $0x30] sm:$0xff]   ;;  %v4227_v4 = vld [vmem:[%s4404_s28 + $0x60] sm:$0xff]   ;;  %v4226_v27 = vld [vmem:[%s4404_s28 + $0x48] sm:$0xff]  }
  0x11   : > { %4265 = vmatpush.bf16.msra.mxu1 %v3978_v1  ;;  %4266 = vmatpush.bf16.msra.mxu2 %v3978_v1  ;;  %v4054_v5 = vunpack.c.l.bf16 %v4225_v3  ;;  %v4055_v6 = vunpack.c.h.bf16 %v4225_v3  ;;  %v4062_v7 = vunpack.c.l.bf16 %v4227_v4  ;;  %v4229_v8 = vld [vmem:[%s4404_s28 + $0x90] sm:$0xff]   ;;  %v4063_v9 = vunpack.c.h.bf16 %v4227_v4  ;;  %v4045_v10 = vld [vmem:[%s4404_s28] sm:$0xff]   ;;  %v3987_v41 = vld [vmem:[%s5029_s1 + $0x78] sm:$0xff] }
  0x12   : > { %4267 = vmatpush.bf16.msra.mxu3 %v3978_v1  ;;  %619 = vmatpush.bf16.msra.mxu0 %v3978_v1  ;;  %v4070_v12 = vunpack.c.l.bf16 %v4229_v8  ;;  %v4071_v13 = vunpack.c.h.bf16 %v4229_v8  ;;  %v4046_v14 = vunpack.c.l.bf16 %v4045_v10  ;;  %v4047_v15 = vunpack.c.h.bf16 %v4045_v10  ;;  %v4414_v16 = vld [vmem:[%s4404_s28 + $0x3c] sm:$0xff]   ;;  %v4420_v18 = vld [vmem:[%s4404_s28 + $0x6c] sm:$0xff]   ;;  %v4490_v58 = vld [vmem:[%s4404_s28 + $0x54] sm:$0xff]  }
  0x13   : > { %400 = vst [vmem:[#allocation2 + $0x60] sm:$0xff] %v4054_v5  ;;  %v349_v19 = vunpack.c.l.bf16 %v4414_v16  ;;  %v350_v20 = vunpack.c.h.bf16 %v4414_v16  ;;  %v4425_v21 = vld [vmem:[%s4404_s28 + $0x9c] sm:$0xff]   ;;  %v361_v23 = vunpack.c.l.bf16 %v4420_v18  ;;  %v362_v24 = vunpack.c.h.bf16 %v4420_v18  ;;  %v4433_v25 = vld [vmem:[%s4404_s28 + $0xc] sm:$0xff]   ;;  %v4519_v5 = vld [vmem:[%s4404_s28 + $0x84] sm:$0xff]  }
  0x14   : > { %401 = vst [vmem:[#allocation2 + $0x68] sm:$0xff] %v4055_v6  ;;  %v373_v26 = vunpack.c.l.bf16 %v4425_v21  ;;  %v374_v28 = vunpack.c.h.bf16 %v4425_v21  ;;  %v337_v30 = vunpack.c.l.bf16 %v4433_v25  ;;  %v4058_v31 = vunpack.c.l.bf16 %v4226_v27  ;;  %v4453_v37 = vld [vmem:[%s4404_s28 + $0x30] sm:$0xff]  ;;  %v4456_v38 = vld [vmem:[%s4404_s28 + $0x60] sm:$0xff]  ;;  %v4011_v42 = vld [vmem:[%s5029_s1 + $0x138] sm:$0xff] }
  0x15   : > { %4268 = vmatpush.bf16.msra.mxu1 %v3977_v2  ;;  %4269 = vmatpush.bf16.msra.mxu2 %v3977_v2  ;;  %412 = vst [vmem:[#allocation2 + $0xc0] sm:$0xff] %v4062_v7  ;;  %v338_v32 = vunpack.c.h.bf16 %v4433_v25  ;;  %v4059_v33 = vunpack.c.h.bf16 %v4226_v27  ;;  %v4313_v39 = vld [vmem:[%s4404_s28 + $0x90] sm:$0xff]  ;;  %v4314_v40 = vld [vmem:[%s4404_s28] sm:$0xff]  ;;  %v4228_v45 = vld [vmem:[%s4404_s28 + $0x78] sm:$0xff]   ;;  %v355_v63 = vunpack.c.l.bf16 %v4490_v58  ;;  %v356_v0 = vunpack.c.h.bf16 %v4490_v58 }
  0x16   : > { %4270 = vmatpush.bf16.msra.mxu3 %v3977_v2  ;;  %620 = vmatpush.bf16.msra.mxu0 %v3977_v2  ;;  %413 = vst [vmem:[#allocation2 + $0xc8] sm:$0xff] %v4063_v9  ;;  %v4002_v44 = vld [vmem:[%s5029_s1 + $0xf0] sm:$0xff]  ;;  %v4230_v46 = vld [vmem:[%s4404_s28 + $0xa8] sm:$0xff]   ;;  %v4066_v47 = vunpack.c.l.bf16 %v4228_v45  ;;  %v4067_v48 = vunpack.c.h.bf16 %v4228_v45  ;;  %v4224_v50 = vld [vmem:[%s4404_s28 + $0x18] sm:$0xff]   ;;  %v367_v7 = vunpack.c.l.bf16 %v4519_v5  ;;  %v368_v10 = vunpack.c.h.bf16 %v4519_v5 }
  0x17   : > { %424 = vst [vmem:[#allocation2 + $0x120] sm:$0xff] %v4070_v12  ;;  %v4074_v49 = vunpack.c.l.bf16 %v4230_v46  ;;  %v3986_v51 = vld [vmem:[%s5029_s1 + $0x70] sm:$0xff]  ;;  %v4075_v53 = vunpack.c.h.bf16 %v4230_v46  ;;  %v4001_v55 = vld [vmem:[%s5029_s1 + $0xe8] sm:$0xff]  ;;  %v4050_v56 = vunpack.c.l.bf16 %v4224_v50  ;;  %v4051_v57 = vunpack.c.h.bf16 %v4224_v50  ;;  %v3992_v61 = vld [vmem:[%s5029_s1 + $0xa0] sm:$0xff] }
  0x18   : > { %425 = vst [vmem:[#allocation2 + $0x128] sm:$0xff] %v4071_v13  ;;  %v4010_v52 = vld [vmem:[%s5029_s1 + $0x130] sm:$0xff]  ;;  %v3985_v59 = vld [vmem:[%s5029_s1 + $0x68] sm:$0xff]  ;;  %v4000_v62 = vld [vmem:[%s5029_s1 + $0xe0] sm:$0xff] }
  0x19   : > { %4271 = vmatpush.bf16.msra.mxu1 %v3976_v11  ;;  %4272 = vmatpush.bf16.msra.mxu2 %v3976_v11  ;;  %388 = vst [vmem:[#allocation2] sm:$0xff] %v4046_v14  ;;  %v4009_v60 = vld [vmem:[%s5029_s1 + $0x128] sm:$0xff]  ;;  %v3984_v1 = vld [vmem:[%s5029_s1 + $0x60] sm:$0xff]  ;;  %v3991_v3 = vld [vmem:[%s5029_s1 + $0x98] sm:$0xff] }
  0x1a   : > { %4273 = vmatpush.bf16.msra.mxu3 %v3976_v11  ;;  %621 = vmatpush.bf16.msra.mxu0 %v3976_v11  ;;  %389 = vst [vmem:[#allocation2 + $0x8] sm:$0xff] %v4047_v15  ;;  %v4008_v2 = vld [vmem:[%s5029_s1 + $0x120] sm:$0xff]  ;;  %v3999_v4 = vld [vmem:[%s5029_s1 + $0xd8] sm:$0xff]  ;;  %v3990_v12 = vld [vmem:[%s5029_s1 + $0x90] sm:$0xff] }
  0x1b   : > { %403 = vst [vmem:[#allocation2 + $0x78] sm:$0xff] %v349_v19  ;;  %v4522_v6 = vld [vmem:[%s4404_s28 + $0xb4] sm:$0xff]   ;;  %v4533_v11 = vld [vmem:[%s4404_s28 + $0x24] sm:$0xff]   ;;  %v288_v45 = vld [vmem:[%s4404_s28 + $0x20] sm:$0x1] }
  0x1c   : > { %404 = vst [vmem:[#allocation2 + $0x80] sm:$0xff] %v350_v20  ;;  %v3983_v8 = vld [vmem:[%s5029_s1 + $0x58] sm:$0xff]  ;;  %v3998_v13 = vld [vmem:[%s5029_s1 + $0xd0] sm:$0xff]  ;;  %v379_v14 = vunpack.c.l.bf16 %v4522_v6  ;;  %v380_v15 = vunpack.c.h.bf16 %v4522_v6  ;;  %v344_v20 = vunpack.c.h.bf16 %v4533_v11  ;;  %v3981_v27 = vld [vmem:[%s5029_s1 + $0x48] sm:$0xff]  ;;  %v342_v46 = vunpack.c.l.bf16 %v288_v45 }
  0x1d   : > { %4274 = vmatpush.bf16.msra.mxu1 %v3975_v17  ;;  %4275 = vmatpush.bf16.msra.mxu2 %v3975_v17  ;;  %415 = vst [vmem:[#allocation2 + $0xd8] sm:$0xff] %v361_v23  ;;  %v4007_v9 = vld [vmem:[%s5029_s1 + $0x118] sm:$0xff]  ;;  %v3982_v19 = vld [vmem:[%s5029_s1 + $0x50] sm:$0xff]  ;;  %v3997_v23 = vld [vmem:[%s5029_s1 + $0xc8] sm:$0xff] }
  0x1e   : > { %4276 = vmatpush.bf16.msra.mxu3 %v3975_v17  ;;  %622 = vmatpush.bf16.msra.mxu0 %v3975_v17  ;;  %416 = vst [vmem:[#allocation2 + $0xe0] sm:$0xff] %v362_v24  ;;  %v343_v17 = vunpack.c.l.bf16 %v4533_v11  ;;  %v282_v24 = vld [vmem:[%s4404_s28 + $0x8] sm:$0x1] }
  0x1f   : > { %427 = vst [vmem:[#allocation2 + $0x138] sm:$0xff] %v373_v26  ;;  %v336_v26 = vunpack.c.l.bf16 %v282_v24 }
  0x20   : > { %428 = vst [vmem:[#allocation2 + $0x140] sm:$0xff] %v374_v28  ;;  %v4005_v28 = vld [vmem:[%s5029_s1 + $0x108] sm:$0xff] }
  0x21   : > { %4277 = vmatpush.bf16.msra.mxu1 %v3974_v22  ;;  %4278 = vmatpush.bf16.msra.mxu2 %v3974_v22  ;;  %391 = vst [vmem:[#allocation2 + $0x18] sm:$0xff] %v337_v30  ;;  %v3988_v30 = vld [vmem:[%s5029_s1 + $0x80] sm:$0xff] }
  0x22   : > { %4279 = vmatpush.bf16.msra.mxu3 %v3974_v22  ;;  %623 = vmatpush.bf16.msra.mxu0 %v3974_v22  ;;  %392 = vst [vmem:[#allocation2 + $0x20] sm:$0xff] %v338_v32  ;;  %v3989_v22 = vld [vmem:[%s5029_s1 + $0x88] sm:$0xff] }
  0x23   : > { %406 = vst [vmem:[#allocation2 + $0x90] sm:$0xff] %v4058_v31  ;;  %v3996_v31 = vld [vmem:[%s5029_s1 + $0xc0] sm:$0xff] }
  0x24   : > { %407 = vst [vmem:[#allocation2 + $0x98] sm:$0xff] %v4059_v33  ;;  %v3980_v33 = vld [vmem:[%s5029_s1 + $0x40] sm:$0xff] }
  0x25   : > { %4280 = vmatpush.bf16.msra.mxu1 %v3973_v29  ;;  %4281 = vmatpush.bf16.msra.mxu2 %v3973_v29  ;;  %418 = vst [vmem:[#allocation2 + $0xf0] sm:$0xff] %v4066_v47  ;;  %v291_v47 = vld [vmem:[%s4404_s28 + $0x2c] sm:$0x1] }
  0x26   : > { %4282 = vmatpush.bf16.msra.mxu3 %v3973_v29  ;;  %624 = vmatpush.bf16.msra.mxu0 %v3973_v29  ;;  %419 = vst [vmem:[#allocation2 + $0xf8] sm:$0xff] %v4067_v48  ;;  %v285_v29 = vld [vmem:[%s4404_s28 + $0x14] sm:$0x1]  ;;  %v345_v48 = vunpack.c.l.bf16 %v291_v47  ;;  %v4016_v47 = vld [vmem:[%s5029_s1 + $0x160] sm:$0xff] }
  0x27   : > { %430 = vst [vmem:[#allocation2 + $0x150] sm:$0xff] %v4074_v49  ;;  %v339_v32 = vunpack.c.l.bf16 %v285_v29  ;;  %v771_v49 = vld [vmem:[#allocation2 + $0x1] sm:$0xff] }
  0x28   : > { %431 = vst [vmem:[#allocation2 + $0x158] sm:$0xff] %v4075_v53 }
  0x29   : > { %4283 = vmatpush.bf16.msra.mxu1 %v3972_v34  ;;  %4284 = vmatpush.bf16.msra.mxu2 %v3972_v34  ;;  %394 = vst [vmem:[#allocation2 + $0x30] sm:$0xff] %v4050_v56  ;;  %v1666_v53 = vld [vmem:[#allocation2 + $0x19] sm:$0xff] }
  0x2a   : > { %4285 = vmatpush.bf16.msra.mxu3 %v3972_v34  ;;  %625 = vmatpush.bf16.msra.mxu0 %v3972_v34  ;;  %395 = vst [vmem:[#allocation2 + $0x38] sm:$0xff] %v4051_v57  ;;  %v4004_v34 = vld [vmem:[%s5029_s1 + $0x100] sm:$0xff] }
  0x2b   : > { %409 = vst [vmem:[#allocation2 + $0xa8] sm:$0xff] %v355_v63 }
  0x2c   : > { %646 = vmatmul.bf16.vlgmr.msra.gmra.mxu1 %v4453_v37  ;;  %666 = vmatmul.bf16.vlgmr.msra.gmra.mxu2 %v4456_v38  ;;  %410 = vst [vmem:[#allocation2 + $0xb0] sm:$0xff] %v356_v0  ;;  %v1071_v0 = vld [vmem:[#allocation2 + $0x1a] sm:$0xff] }
  0x2d   : > { %1214 = vmatpush.bf16.msrb.mxu2 %v3995_v35  ;;  %686 = vmatmul.bf16.vlgmr.msra.gmra.mxu3 %v4313_v39  ;;  %421 = vst [vmem:[#allocation2 + $0x108] sm:$0xff] %v367_v7  ;;  %v4582_v35 = vld [vmem:[%s4404_s28 + $0x48] sm:$0xff]  ;;  %v297_v7 = vld [vmem:[%s4404_s28 + $0x44] sm:$0x1] }
  0x2e   : > { %1513 = vmatpush.bf16.msrb.mxu3 %v4003_v36  ;;  %626 = vmatmul.bf16.vlgmr.msra.gmra.mxu0 %v4314_v40  ;;  %422 = vst [vmem:[#allocation2 + $0x110] sm:$0xff] %v368_v10  ;;  %v4585_v36 = vld [vmem:[%s4404_s28 + $0x78] sm:$0xff]  ;;  %v4317_v39 = vld [vmem:[%s4404_s28 + $0xa8] sm:$0xff] }
  0x2f   : > { %916 = vmatpush.bf16.msrb.mxu1 %v3987_v41  ;;  %1811 = vmatpush.bf16.msrb.mxu0 %v4011_v42  ;;  %433 = vst [vmem:[#allocation2 + $0x168] sm:$0xff] %v379_v14  ;;  %v4318_v40 = vld [vmem:[%s4404_s28 + $0x18] sm:$0xff] }
  0x30   : > { %434 = vst [vmem:[#allocation2 + $0x170] sm:$0xff] %v380_v15  ;;  %v4027_v41 = vld [vmem:[%s5029_s1 + $0x1b8] sm:$0xff] }
  0x31   : > { %1215 = vmatpush.bf16.msrb.mxu2 %v3994_v43  ;;  %397 = vst [vmem:[#allocation2 + $0x48] sm:$0xff] %v343_v17  ;;  %v4035_v42 = vld [vmem:[%s5029_s1 + $0x1f8] sm:$0xff]  ;;  %v4025_v17 = vld [vmem:[%s5029_s1 + $0x1a8] sm:$0xff] }
  0x32   : > { %1514 = vmatpush.bf16.msrb.mxu3 %v4002_v44  ;;  %398 = vst [vmem:[#allocation2 + $0x50] sm:$0xff] %v344_v20  ;;  %v4019_v43 = vld [vmem:[%s5029_s1 + $0x178] sm:$0xff]  ;;  %v4017_v20 = vld [vmem:[%s5029_s1 + $0x168] sm:$0xff] }
  0x33   : > { %917 = vmatpush.bf16.msrb.mxu1 %v3986_v51  ;;  %1812 = vmatpush.bf16.msrb.mxu0 %v4010_v52  ;;  %390 = vst [vmem:[#allocation2 + $0x10] sm:$0x3] %v336_v26  ;;  %v4043_v44 = vld [vmem:[%s5029_s1 + $0x238] sm:$0xff]  ;;  %v1069_v51 = vld [vmem:[#allocation2 + $0x2] sm:$0xff] }
  0x34   : > { %393 = vst [vmem:[#allocation2 + $0x28] sm:$0x3] %v339_v32  ;;  %v1672_v26 = vld [vmem:[#allocation2 + $0x61] sm:$0xff] }
  0x35   : > { %1216 = vmatpush.bf16.msrb.mxu2 %v3993_v54  ;;  %396 = vst [vmem:[#allocation2 + $0x40] sm:$0x3] %v342_v46  ;;  %v1077_v32 = vld [vmem:[#allocation2 + $0x62] sm:$0xff] }
  0x36   : > { %1515 = vmatpush.bf16.msrb.mxu3 %v4001_v55  ;;  %399 = vst [vmem:[#allocation2 + $0x58] sm:$0x3] %v345_v48 }
  0x37   : > { %918 = vmatpush.bf16.msrb.mxu1 %v3985_v59  ;;  %1813 = vmatpush.bf16.msrb.mxu0 %v4009_v60  ;;  %v4026_v59 = vld [vmem:[%s5029_s1 + $0x1b0] sm:$0xff] }
  0x38   : > { %v4034_v60 = vld [vmem:[%s5029_s1 + $0x1f0] sm:$0xff] }
  0x39   : > { %1217 = vmatpush.bf16.msrb.mxu2 %v3992_v61  ;;  %v4018_v61 = vld [vmem:[%s5029_s1 + $0x170] sm:$0xff] }
  0x3a   : > { %1516 = vmatpush.bf16.msrb.mxu3 %v4000_v62  ;;  %v772_v50 = vld [vmem:[#allocation2 + $0x9] sm:$0xff] }
  0x3b   : > { %919 = vmatpush.bf16.msrb.mxu1 %v3984_v1  ;;  %1814 = vmatpush.bf16.msrb.mxu0 %v4008_v2  ;;  %v1070_v52 = vld [vmem:[#allocation2 + $0xa] sm:$0xff]  ;;  %v1667_v54 = vld [vmem:[#allocation2 + $0x21] sm:$0xff]  ;;  %v835_v55 = vpack.c.bf16 %v772_v50, %v771_v49 }
  0x3c   : > { %651 = vmatmul.bf16.gmra.mxu1 %v4414_v16  ;;  %671 = vmatmul.bf16.gmra.mxu2 %v4420_v18  ;;  %v1133_v56 = vpack.c.bf16 %v1070_v52, %v1069_v51  ;;  %v1730_v57 = vpack.c.bf16 %v1667_v54, %v1666_v53  ;;  %v4042_v62 = vld [vmem:[%s5029_s1 + $0x230] sm:$0xff]  ;;  %v1072_v1 = vld [vmem:[#allocation2 + $0x22] sm:$0xff]  ;;  %v1074_v10 = vld [vmem:[#allocation2 + $0x3a] sm:$0xff] }
  0x3d   : > { %1218 = vmatpush.bf16.msrb.mxu2 %v3991_v3  ;;  %691 = vmatmul.bf16.gmra.mxu3 %v4425_v21  ;;  %v4006_v21 = vld [vmem:[%s5029_s1 + $0x110] sm:$0xff]  ;;  %v1669_v3 = vld [vmem:[#allocation2 + $0x39] sm:$0xff]  ;;  %v306_v50 = vld [vmem:[%s4404_s28 + $0x68] sm:$0x1] }
  0x3e   : > { %1517 = vmatpush.bf16.msrb.mxu3 %v3999_v4  ;;  %631 = vmatmul.bf16.gmra.mxu0 %v4433_v25  ;;  %v1668_v2 = vld [vmem:[#allocation2 + $0x31] sm:$0xff]  ;;  %v1134_v4 = vpack.c.bf16 %v1072_v1, %v1071_v0  ;;  %v4040_v49 = vld [vmem:[%s5029_s1 + $0x220] sm:$0xff]  ;;  %v360_v51 = vunpack.c.l.bf16 %v306_v50 }
  0x3f   : > { %920 = vmatpush.bf16.msrb.mxu1 %v3983_v8  ;;  %1815 = vmatpush.bf16.msrb.mxu0 %v4007_v9  ;;  %v351_v8 = vunpack.c.l.bf16 %v297_v7  ;;  %v1073_v9 = vld [vmem:[#allocation2 + $0x32] sm:$0xff]  ;;  %v1079_v52 = vld [vmem:[#allocation2 + $0x7a] sm:$0xff]  ;;  %v1678_v7 = vld [vmem:[#allocation2 + $0xa9] sm:$0xff] }
  0x40   : > { %v1135_v14 = vpack.c.bf16 %v1074_v10, %v1073_v9  ;;  %v1076_v24 = vld [vmem:[#allocation2 + $0x52] sm:$0xff]  ;;  %414 = vst [vmem:[#allocation2 + $0xd0] sm:$0x3] %v360_v51  ;;  %v1085_v50 = vld [vmem:[#allocation2 + $0xc2] sm:$0xff] }
  0x41   : > { %1219 = vmatpush.bf16.msrb.mxu2 %v3990_v12  ;;  %405 = vst [vmem:[#allocation2 + $0x88] sm:$0x3] %v351_v8  ;;  %v1670_v12 = vld [vmem:[#allocation2 + $0x49] sm:$0xff]  ;;  %v1676_v54 = vld [vmem:[#allocation2 + $0x91] sm:$0xff] }
  0x42   : > { %1518 = vmatpush.bf16.msrb.mxu3 %v3998_v13  ;;  %v1671_v13 = vld [vmem:[#allocation2 + $0x51] sm:$0xff] }
  0x43   : > { %921 = vmatpush.bf16.msrb.mxu1 %v3982_v19  ;;  %1816 = vmatpush.bf16.msrb.mxu0 %v4006_v21  ;;  %v1732_v15 = vpack.c.bf16 %v1671_v13, %v1670_v12  ;;  %v4033_v19 = vld [vmem:[%s5029_s1 + $0x1e8] sm:$0xff]  ;;  %v300_v21 = vld [vmem:[%s4404_s28 + $0x50] sm:$0x1] }
  0x45   : > { %1220 = vmatpush.bf16.msrb.mxu2 %v3989_v22  ;;  %v354_v22 = vunpack.c.l.bf16 %v300_v21 }
  0x46   : > { %1519 = vmatpush.bf16.msrb.mxu3 %v3997_v23  ;;  %v1075_v23 = vld [vmem:[#allocation2 + $0x4a] sm:$0xff] }
  0x47   : > { %922 = vmatpush.bf16.msrb.mxu1 %v3981_v27  ;;  %1817 = vmatpush.bf16.msrb.mxu0 %v4005_v28  ;;  %408 = vst [vmem:[#allocation2 + $0xa0] sm:$0x3] %v354_v22  ;;  %v1136_v28 = vpack.c.bf16 %v1076_v24, %v1075_v23  ;;  %v4039_v22 = vld [vmem:[%s5029_s1 + $0x218] sm:$0xff]  ;;  %v312_v23 = vld [vmem:[%s4404_s28 + $0x80] sm:$0x1]  ;;  %v1086_v51 = vld [vmem:[#allocation2 + $0xca] sm:$0xff] }
  0x48   : > { %v1080_v53 = vld [vmem:[#allocation2 + $0x82] sm:$0xff]  ;;  %v366_v24 = vunpack.c.l.bf16 %v312_v23 }
  0x49   : > { %1221 = vmatpush.bf16.msrb.mxu2 %v3988_v30  ;;  %v303_v30 = vld [vmem:[%s4404_s28 + $0x5c] sm:$0x1] }
  0x4a   : > { %1520 = vmatpush.bf16.msrb.mxu3 %v3996_v31  ;;  %v357_v31 = vunpack.c.l.bf16 %v303_v30  ;;  %420 = vst [vmem:[#allocation2 + $0x100] sm:$0x3] %v366_v24 }
  0x4b   : > { %923 = vmatpush.bf16.msrb.mxu1 %v3980_v33  ;;  %1818 = vmatpush.bf16.msrb.mxu0 %v4004_v34  ;;  %v1674_v34 = vld [vmem:[#allocation2 + $0x79] sm:$0xff] }
  0x4c   : > { %656 = vmatmul.bf16.gmra.mxu1 %v4582_v35  ;;  %676 = vmatmul.bf16.gmra.mxu2 %v4585_v36  ;;  %411 = vst [vmem:[#allocation2 + $0xb8] sm:$0x3] %v357_v31 }
  0x4d   : > { %696 = vmatmul.bf16.gmra.mxu3 %v4317_v39  ;;  %2408 = vmatpush.bf16.msra.mxu2 %v4027_v41  ;;  %v1675_v39 = vld [vmem:[#allocation2 + $0x81] sm:$0xff] }
  0x4e   : > { %636 = vmatmul.bf16.gmra.mxu0 %v4318_v40  ;;  %2706 = vmatpush.bf16.msra.mxu3 %v4035_v42  ;;  %v1734_v42 = vpack.c.bf16 %v1675_v39, %v1674_v34 }
  0x4f   : > { %2109 = vmatpush.bf16.msra.mxu1 %v4019_v43  ;;  %3004 = vmatpush.bf16.msra.mxu0 %v4043_v44  ;;  %v4032_v44 = vld [vmem:[%s5029_s1 + $0x1e0] sm:$0xff] }
  0x51   : > { %2409 = vmatpush.bf16.msra.mxu2 %v4026_v59  ;;  %v1138_v59 = vpack.c.bf16 %v1080_v53, %v1079_v52  ;;  %v1682_v52 = vld [vmem:[#allocation2 + $0xd9] sm:$0xff] }
  0x52   : > { %2707 = vmatpush.bf16.msra.mxu3 %v4034_v60 }
  0x53   : > { %2110 = vmatpush.bf16.msra.mxu1 %v4018_v61  ;;  %3005 = vmatpush.bf16.msra.mxu0 %v4042_v62  ;;  %v1679_v8 = vld [vmem:[#allocation2 + $0xb1] sm:$0xff] }
  0x54   : > { %v1736_v13 = vpack.c.bf16 %v1679_v8, %v1678_v7 }
  0x55   : > { %2410 = vmatpush.bf16.msra.mxu2 %v4025_v17  ;;  %v4031_v17 = vld [vmem:[%s5029_s1 + $0x1d8] sm:$0xff] }
  0x56   : > { %2708 = vmatpush.bf16.msra.mxu3 %v4033_v19 }
  0x57   : > { %2111 = vmatpush.bf16.msra.mxu1 %v4017_v20 }
  0x5a   : > { %2709 = vmatpush.bf16.msra.mxu3 %v4032_v44 }
  0x5b   : > { %2112 = vmatpush.bf16.msra.mxu1 %v4016_v47  ;;  %v315_v47 = vld [vmem:[%s4404_s28 + $0x8c] sm:$0x1] }
  0x5c   : > { %661 = vmatmul.bf16.gmra.mxu1 %v4490_v58  ;;  %681 = vmatmul.bf16.gmra.mxu2 %v4519_v5 }
  0x5d   : > { %701 = vmatmul.bf16.gmra.mxu3 %v4522_v6  ;;  %v1731_v6 = vpack.c.bf16 %v1669_v3, %v1668_v2  ;;  %v309_v2 = vld [vmem:[%s4404_s28 + $0x74] sm:$0x1] }
  0x5e   : > { %641 = vmatmul.bf16.gmra.mxu0 %v4533_v11  ;;  %v363_v3 = vunpack.c.l.bf16 %v309_v2  ;;  %2710 = vmatpush.bf16.msra.mxu3 %v4031_v17 }
  0x60   : > { %417 = vst [vmem:[#allocation2 + $0xe8] sm:$0x3] %v363_v3 }
  0x67   : > { %v1683_v53 = vld [vmem:[#allocation2 + $0xe1] sm:$0xff] }
  0x6c   : > { %924 = vmatmul.bf16.vlgmr.msrb.gmra.mxu1 %v835_v55  ;;  %1222 = vmatmul.bf16.vlgmr.msrb.gmra.mxu2 %v1133_v56  ;;  %v1677_v55 = vld [vmem:[#allocation2 + $0x99] sm:$0xff] }
  0x6d   : > { %1521 = vmatmul.bf16.vlgmr.msrb.gmra.mxu3 %v4433_v25  ;;  %v294_v25 = vld [vmem:[%s4404_s28 + $0x38] sm:$0x1]  ;;  %v1735_v61 = vpack.c.bf16 %v1677_v55, %v1676_v54 }
  0x6e   : > { %1819 = vmatmul.bf16.vlgmr.msrb.gmra.mxu0 %v1730_v57  ;;  %v348_v63 = vunpack.c.l.bf16 %v294_v25 }
  0x70   : > { %402 = vst [vmem:[#allocation2 + $0x70] sm:$0x3] %v348_v63 }
  0x77   : > { %v1673_v27 = vld [vmem:[#allocation2 + $0x69] sm:$0xff] }
  0x78   : > { %v1733_v29 = vpack.c.bf16 %v1673_v27, %v1672_v26  ;;  %v1078_v33 = vld [vmem:[#allocation2 + $0x6a] sm:$0xff]  ;;  %v1084_v27 = vld [vmem:[#allocation2 + $0xb2] sm:$0xff] }
  0x79   : > { %v1083_v26 = vld [vmem:[#allocation2 + $0xaa] sm:$0xff] }
  0x7c   : > { %929 = vmatmul.bf16.gmra.mxu1 %v1730_v57  ;;  %1227 = vmatmul.bf16.gmra.mxu2 %v1134_v4  ;;  %v1081_v4 = vld [vmem:[#allocation2 + $0x92] sm:$0xff] }
  0x7d   : > { %1526 = vmatmul.bf16.gmra.mxu3 %v4318_v40  ;;  %v1137_v40 = vpack.c.bf16 %v1078_v33, %v1077_v32  ;;  %v1140_v32 = vpack.c.bf16 %v1084_v27, %v1083_v26  ;;  %v1087_v26 = vld [vmem:[#allocation2 + $0xda] sm:$0xff]  ;;  %v1088_v27 = vld [vmem:[#allocation2 + $0xe2] sm:$0xff] }
  0x7e   : > { %1824 = vmatmul.bf16.gmra.mxu0 %v1731_v6 }
  0x8c   : > { %934 = vmatmul.bf16.gmra.mxu1 %v1731_v6  ;;  %1232 = vmatmul.bf16.gmra.mxu2 %v1135_v14  ;;  %v1082_v6 = vld [vmem:[#allocation2 + $0x9a] sm:$0xff] }
  0x8d   : > { %1531 = vmatmul.bf16.gmra.mxu3 %v4533_v11  ;;  %v4041_v11 = vld [vmem:[%s5029_s1 + $0x228] sm:$0xff] }
  0x8e   : > { %1829 = vmatmul.bf16.gmra.mxu0 %v1732_v15 }
  0x8f   : > { %3006 = vmatpush.bf16.msra.mxu0 %v4041_v11 }
  0x93   : > { %3007 = vmatpush.bf16.msra.mxu0 %v4040_v49  ;;  %v369_v49 = vunpack.c.l.bf16 %v315_v47  ;;  %v4754_v47 = vpack.c.bf16 %v1088_v27, %v1087_v26 }
  0x95   : > { %423 = vst [vmem:[#allocation2 + $0x118] sm:$0x3] %v369_v49 }
  0x97   : > { %3008 = vmatpush.bf16.msra.mxu0 %v4039_v22  ;;  %v318_v22 = vld [vmem:[%s4404_s28 + $0x98] sm:$0x1] }
  0x98   : > { %v372_v23 = vunpack.c.l.bf16 %v318_v22 }
  0x9a   : > { %426 = vst [vmem:[#allocation2 + $0x130] sm:$0x3] %v372_v23 }
  0x9c   : > { %939 = vmatmul.bf16.gmra.mxu1 %v1732_v15  ;;  %1237 = vmatmul.bf16.gmra.mxu2 %v1136_v28  ;;  %v4023_v15 = vld [vmem:[%s5029_s1 + $0x198] sm:$0xff]  ;;  %v1680_v28 = vld [vmem:[#allocation2 + $0xc1] sm:$0xff] }
  0x9d   : > { %1536 = vmatmul.bf16.gmra.mxu3 %v4453_v37  ;;  %v4024_v37 = vld [vmem:[%s5029_s1 + $0x1a0] sm:$0xff] }
  0x9e   : > { %1834 = vmatmul.bf16.gmra.mxu0 %v1733_v29  ;;  %2411 = vmatpush.bf16.msra.mxu2 %v4024_v37 }
  0xa2   : > { %2412 = vmatpush.bf16.msra.mxu2 %v4023_v15 }
  0xa9   : > { %v4640_v41 = vpop.f32.mrf.mxu1 }
  0xab   : > { %v4642_v43 = vpop.f32.mrf.mxu0 }
  0xac   : > { %944 = vmatmul.bf16.gmra.mxu1 %v1733_v29  ;;  %1242 = vmatmul.bf16.gmra.mxu2 %v1137_v40  ;;  %v1681_v29 = vld [vmem:[#allocation2 + $0xc9] sm:$0xff] }
  0xad   : > { %1541 = vmatmul.bf16.gmra.mxu3 %v4414_v16  ;;  %v1737_v34 = vpack.c.bf16 %v1681_v29, %v1680_v28  ;;  %v1684_v28 = vld [vmem:[#allocation2 + $0xf1] sm:$0xff] }
  0xae   : > { %1839 = vmatmul.bf16.gmra.mxu0 %v1734_v42 }
  0xaf   : > { %v4651_v45 = vpop.f32.mrf.mxu2 }
  0xb0   : > { %v4653_v46 = vpop.f32.mrf.mxu3 }
  0xb1   : > { %v4658_v16 = vpop.f32.mrf.mxu1 }
  0xb3   : > { %v4660_v48 = vpop.f32.mrf.mxu0 }
  0xb7   : > { %v4666_v56 = vpop.f32.mrf.mxu2 }
  0xb8   : > { %v4668_v57 = vpop.f32.mrf.mxu3 }
  0xb9   : > { %v4670_v60 = vpop.f32.mrf.mxu1 }
  0xbb   : > { %v4672_v62 = vpop.f32.mrf.mxu0 }
  0xbc   : > { %949 = vmatmul.bf16.gmra.mxu1 %v1734_v42  ;;  %1247 = vmatmul.bf16.gmra.mxu2 %v1138_v59 }
  0xbd   : > { %1546 = vmatmul.bf16.gmra.mxu3 %v4582_v35  ;;  %v1139_v35 = vpack.c.bf16 %v1082_v6, %v1081_v4  ;;  %v4022_v4 = vld [vmem:[%s5029_s1 + $0x190] sm:$0xff] }
  0xbe   : > { %1844 = vmatmul.bf16.gmra.mxu0 %v1735_v61  ;;  %v4030_v6 = vld [vmem:[%s5029_s1 + $0x1d0] sm:$0xff]  ;;  %2413 = vmatpush.bf16.msra.mxu2 %v4022_v4 }
  0xbf   : > { %v4675_v25 = vpop.f32.mrf.mxu2  ;;  %2711 = vmatpush.bf16.msra.mxu3 %v4030_v6 }
  0xc0   : > { %v4677_v63 = vpop.f32.mrf.mxu3 }
  0xc1   : > { %v4679_v0 = vpop.f32.mrf.mxu1 }
  0xc3   : > { %v4681_v1 = vpop.f32.mrf.mxu0 }
  0xc7   : > { %v4684_v9 = vpop.f32.mrf.mxu2 }
  0xc8   : > { %v4686_v10 = vpop.f32.mrf.mxu3 }
  0xc9   : > { %v4688_v12 = vpop.f32.mrf.mxu1 }
  0xcb   : > { %v4690_v14 = vpop.f32.mrf.mxu0 }
  0xcc   : > { %954 = vmatmul.bf16.gmra.mxu1 %v1735_v61  ;;  %1252 = vmatmul.bf16.gmra.mxu2 %v1139_v35  ;;  %v1738_v61 = vpack.c.bf16 %v1683_v53, %v1682_v52 }
  0xcd   : > { %1551 = vmatmul.bf16.gmra.mxu3 %v4490_v58  ;;  %v4015_v58 = vld [vmem:[%s5029_s1 + $0x158] sm:$0xff] }
  0xce   : > { %1849 = vmatmul.bf16.gmra.mxu0 %v1736_v13  ;;  %2113 = vmatpush.bf16.msra.mxu1 %v4015_v58  ;;  %v4038_v58 = vld [vmem:[%s5029_s1 + $0x210] sm:$0xff] }
  0xcf   : > { %v4699_v19 = vpop.f32.mrf.mxu2  ;;  %3009 = vmatpush.bf16.msra.mxu0 %v4038_v58 }
  0xd0   : > { %v4701_v20 = vpop.f32.mrf.mxu3 }
  0xd1   : > { %v4703_v11 = vpop.f32.mrf.mxu1 }
  0xd3   : > { %v4705_v21 = vpop.f32.mrf.mxu0 }
  0xd7   : > { %v4714_v30 = vpop.f32.mrf.mxu2 }
  0xd8   : > { %v4716_v31 = vpop.f32.mrf.mxu3 }
  0xd9   : > { %v4718_v33 = vpop.f32.mrf.mxu1 }
  0xdb   : > { %v4720_v39 = vpop.f32.mrf.mxu0 }
  0xdc   : > { %959 = vmatmul.bf16.gmra.mxu1 %v1736_v13  ;;  %1257 = vmatmul.bf16.gmra.mxu2 %v1140_v32 }
  0xdd   : > { %1556 = vmatmul.bf16.gmra.mxu3 %v4456_v38  ;;  %v1141_v38 = vpack.c.bf16 %v1086_v51, %v1085_v50 }
  0xde   : > { %1854 = vmatmul.bf16.gmra.mxu0 %v1737_v34 }
  0xdf   : > { %v4723_v40 = vpop.f32.mrf.mxu2 }
  0xe0   : > { %v4725_v42 = vpop.f32.mrf.mxu3 }
  0xe1   : > { %v4727_v37 = vpop.f32.mrf.mxu1 }
  0xe3   : > { %v4729_v44 = vpop.f32.mrf.mxu0 }
  0xe7   : > { %v4732_v54 = vpop.f32.mrf.mxu2 }
  0xe8   : > { %v4734_v55 = vpop.f32.mrf.mxu3 }
  0xe9   : > { %v925_v59 = vpop.f32.mrf.mxu1 }
  0xea   : > { %v1005_v2 = vadd.f32 %v925_v59, %v4642_v43 }
  0xeb   : > { %v1820_v3 = vpop.f32.mrf.mxu0 }
  0xec   : > { %964 = vmatmul.bf16.gmra.mxu1 %v1737_v34  ;;  %1262 = vmatmul.bf16.gmra.mxu2 %v1141_v38 }
  0xed   : > { %1561 = vmatmul.bf16.gmra.mxu3 %v4420_v18  ;;  %v4014_v18 = vld [vmem:[%s5029_s1 + $0x150] sm:$0xff] }
  0xee   : > { %1859 = vmatmul.bf16.gmra.mxu0 %v1738_v61  ;;  %2114 = vmatpush.bf16.msra.mxu1 %v4014_v18 }
  0xef   : > { %v1223_v7 = vpop.f32.mrf.mxu2 }
  0xf0   : > { %v1303_v8 = vadd.f32 %v1223_v7, %v1005_v2  ;;  %v1522_v43 = vpop.f32.mrf.mxu3 }
  0xf1   : > { %v927_v35 = vpop.f32.mrf.mxu1 }
  0xf2   : > { %v1602_v13 = vadd.f32 %v1522_v43, %v1303_v8  ;;  %v1006_v15 = vadd.f32 %v927_v35, %v4660_v48  ;;  %v1685_v48 = vld [vmem:[#allocation2 + $0xf9] sm:$0xff]  ;;  %v321_v43 = vld [vmem:[%s4404_s28 + $0xa4] sm:$0x1] }
  0xf3   : > { %v1822_v17 = vpop.f32.mrf.mxu0  ;;  %v1739_v50 = vpack.c.bf16 %v1685_v48, %v1684_v28  ;;  %v375_v35 = vunpack.c.l.bf16 %v321_v43  ;;  %v1688_v43 = vld [vmem:[#allocation2 + $0x121] sm:$0xff] }
  0xf4   : > { %v4752_v24 = vadd.f32 %v1820_v3, %v1602_v13  ;;  %v1090_v13 = vld [vmem:[#allocation2 + $0xfa] sm:$0xff] }
  0xf5   : > { %429 = vst [vmem:[#allocation2 + $0x148] sm:$0x3] %v375_v35  ;;  %v1689_v35 = vld [vmem:[#allocation2 + $0x129] sm:$0xff] }
  0xf7   : > { %v1225_v29 = vpop.f32.mrf.mxu2 }
  0xf8   : > { %v1304_v32 = vadd.f32 %v1225_v29, %v1006_v15  ;;  %v1524_v34 = vpop.f32.mrf.mxu3  ;;  %v1686_v15 = vld [vmem:[#allocation2 + $0x109] sm:$0xff] }
  0xf9   : > { %v930_v49 = vpop.f32.mrf.mxu1  ;;  %v4021_v29 = vld [vmem:[%s5029_s1 + $0x188] sm:$0xff] }
  0xfa   : > { %v1603_v51 = vadd.f32 %v1524_v34, %v1304_v32  ;;  %v1007_v52 = vadd.f32 %v930_v49, %v4672_v62  ;;  %v4029_v32 = vld [vmem:[%s5029_s1 + $0x1c8] sm:$0xff]  ;;  %2414 = vmatpush.bf16.msra.mxu2 %v4021_v29 }
  0xfb   : > { %v1825_v53 = vpop.f32.mrf.mxu0  ;;  %2712 = vmatpush.bf16.msra.mxu3 %v4029_v32 }
  0xfc   : > { %969 = vmatmul.bf16.gmra.mxu1 %v1738_v61  ;;  %1267 = vmatmul.bf16.gmra.mxu2 %v4754_v47  ;;  %v4758_v38 = vadd.f32 %v1822_v17, %v1603_v51  ;;  %v1089_v61 = vld [vmem:[#allocation2 + $0xf2] sm:$0xff] }
  0xfd   : > { %1566 = vmatmul.bf16.gmra.mxu3 %v4585_v36  ;;  %v1687_v17 = vld [vmem:[#allocation2 + $0x111] sm:$0xff]  ;;  %v4765_v22 = vpack.c.bf16 %v1090_v13, %v1089_v61 }
  0xfe   : > { %1864 = vmatmul.bf16.gmra.mxu0 %v1739_v50  ;;  %v1740_v26 = vpack.c.bf16 %v1687_v17, %v1686_v15 }
  0xff   : > { %v1228_v59 = vpop.f32.mrf.mxu2 }
 0x100   : > { %v1305_v2 = vadd.f32 %v1228_v59, %v1007_v52  ;;  %v1527_v3 = vpop.f32.mrf.mxu3  ;;  %v4037_v59 = vld [vmem:[%s5029_s1 + $0x208] sm:$0xff] }
 0x101   : > { %v932_v4 = vpop.f32.mrf.mxu1  ;;  %3010 = vmatpush.bf16.msra.mxu0 %v4037_v59 }
 0x102   : > { %v1604_v6 = vadd.f32 %v1527_v3, %v1305_v2  ;;  %v1008_v7 = vadd.f32 %v932_v4, %v4681_v1  ;;  %v324_v2 = vld [vmem:[%s4404_s28 + $0xb0] sm:$0x1] }
 0x103   : > { %v1827_v8 = vpop.f32.mrf.mxu0  ;;  %v378_v3 = vunpack.c.l.bf16 %v324_v2  ;;  %v1392_v2 = vld [vmem:[#allocation2 + $0x138] sm:$0xff] }
 0x104   : > { %v4763_v62 = vadd.f32 %v1825_v53, %v1604_v6  ;;  %v1091_v6 = vld [vmem:[#allocation2 + $0x10a] sm:$0xff] }
 0x105   : > { %432 = vst [vmem:[#allocation2 + $0x160] sm:$0x3] %v378_v3  ;;  %v1690_v3 = vld [vmem:[#allocation2 + $0x139] sm:$0xff] }
 0x107   : > { %v1230_v18 = vpop.f32.mrf.mxu2 }
 0x108   : > { %v1306_v36 = vadd.f32 %v1230_v18, %v1008_v7  ;;  %v1529_v58 = vpop.f32.mrf.mxu3  ;;  %v1092_v7 = vld [vmem:[#allocation2 + $0x112] sm:$0xff] }
 0x109   : > { %v935_v23 = vpop.f32.mrf.mxu1  ;;  %v4788_v17 = vpack.c.bf16 %v1092_v7, %v1091_v6  ;;  %v1691_v6 = vld [vmem:[#allocation2 + $0x141] sm:$0xff] }
 0x10a   : > { %v1605_v27 = vadd.f32 %v1529_v58, %v1306_v36  ;;  %v1009_v1 = vadd.f32 %v935_v23, %v4690_v14  ;;  %v1741_v58 = vpack.c.bf16 %v1689_v35, %v1688_v43 }
 0x10b   : > { %v1830_v28 = vpop.f32.mrf.mxu0 }
 0x10c   : > { %974 = vmatmul.bf16.gmra.mxu1 %v1739_v50  ;;  %1272 = vmatmul.bf16.gmra.mxu2 %v4765_v22  ;;  %v4769_v48 = vadd.f32 %v1827_v8, %v1605_v27  ;;  %v1390_v8 = vld [vmem:[#allocation2 + $0x120] sm:$0xff] }
 0x10d   : > { %1571 = vmatmul.bf16.gmra.mxu3 %v4519_v5  ;;  %v4013_v5 = vld [vmem:[%s5029_s1 + $0x148] sm:$0xff] }
 0x10e   : > { %1869 = vmatmul.bf16.gmra.mxu0 %v1740_v26  ;;  %2115 = vmatpush.bf16.msra.mxu1 %v4013_v5 }
 0x10f   : > { %v1233_v34 = vpop.f32.mrf.mxu2 }
 0x110   : > { %v1307_v14 = vadd.f32 %v1233_v34, %v1009_v1  ;;  %v1532_v49 = vpop.f32.mrf.mxu3 }
 0x111   : > { %v937_v50 = vpop.f32.mrf.mxu1 }
 0x112   : > { %v1606_v51 = vadd.f32 %v1532_v49, %v1307_v14  ;;  %v1010_v52 = vadd.f32 %v937_v50, %v4705_v21  ;;  %v1391_v21 = vld [vmem:[#allocation2 + $0x128] sm:$0xff] }
 0x113   : > { %v1832_v53 = vpop.f32.mrf.mxu0  ;;  %v1443_v36 = vpack.c.bf16 %v1391_v21, %v1390_v8 }
 0x114   : > { %v4786_v4 = vadd.f32 %v1830_v28, %v1606_v51 }
 0x117   : > { %v1235_v61 = vpop.f32.mrf.mxu2 }
 0x118   : > { %v1308_v13 = vadd.f32 %v1235_v61, %v1010_v52  ;;  %v1534_v15 = vpop.f32.mrf.mxu3  ;;  %v327_v52 = vld [vmem:[%s4404_s28 + $0xbc] sm:$0x1] }
 0x119   : > { %v940_v18 = vpop.f32.mrf.mxu1  ;;  %v381_v5 = vunpack.c.l.bf16 %v327_v52 }
 0x11a   : > { %v1607_v23 = vadd.f32 %v1534_v15, %v1308_v13  ;;  %v1011_v27 = vadd.f32 %v940_v18, %v4720_v39  ;;  %v1093_v39 = vld [vmem:[#allocation2 + $0x122] sm:$0xff]  ;;  %v1742_v13 = vpack.c.bf16 %v1691_v6, %v1690_v3  ;;  %v1394_v3 = vld [vmem:[#allocation2 + $0x150] sm:$0xff] }
 0x11b   : > { %v1835_v1 = vpop.f32.mrf.mxu0  ;;  %435 = vst [vmem:[#allocation2 + $0x178] sm:$0x3] %v381_v5 }
 0x11c   : > { %979 = vmatmul.bf16.gmra.mxu1 %v1740_v26  ;;  %1277 = vmatmul.bf16.gmra.mxu2 %v4788_v17  ;;  %v4792_v28 = vadd.f32 %v1832_v53, %v1607_v23  ;;  %v1094_v26 = vld [vmem:[#allocation2 + $0x12a] sm:$0xff]  ;;  %v1393_v53 = vld [vmem:[#allocation2 + $0x140] sm:$0xff] }
 0x11d   : > { %1576 = vmatmul.bf16.gmra.mxu3 %v1443_v36  ;;  %v1145_v43 = vpack.c.bf16 %v1094_v26, %v1093_v39  ;;  %v1444_v61 = vpack.c.bf16 %v1393_v53, %v1392_v2  ;;  %v4020_v36 = vld [vmem:[%s5029_s1 + $0x180] sm:$0xff] }
 0x11e   : > { %1874 = vmatmul.bf16.gmra.mxu0 %v1741_v58  ;;  %v4028_v23 = vld [vmem:[%s5029_s1 + $0x1c0] sm:$0xff]  ;;  %2415 = vmatpush.bf16.msra.mxu2 %v4020_v36 }
 0x11f   : > { %v1238_v29 = vpop.f32.mrf.mxu2  ;;  %2713 = vmatpush.bf16.msra.mxu3 %v4028_v23  ;;  %v1095_v2 = vld [vmem:[#allocation2 + $0x13a] sm:$0xff]  ;;  %v1096_v53 = vld [vmem:[#allocation2 + $0x142] sm:$0xff] }
 0x120   : > { %v1309_v32 = vadd.f32 %v1238_v29, %v1011_v27  ;;  %v1537_v34 = vpop.f32.mrf.mxu3 }
 0x121   : > { %v942_v14 = vpop.f32.mrf.mxu1 }
 0x122   : > { %v1608_v49 = vadd.f32 %v1537_v34, %v1309_v32  ;;  %v1012_v50 = vadd.f32 %v942_v14, %v4729_v44 }
 0x123   : > { %v1837_v51 = vpop.f32.mrf.mxu0 }
 0x124   : > { %v4796_v59 = vadd.f32 %v1835_v1, %v1608_v49  ;;  %v4012_v49 = vld [vmem:[%s5029_s1 + $0x140] sm:$0xff] }
 0x125   : > { %2116 = vmatpush.bf16.msra.mxu1 %v4012_v49 }
 0x127   : > { %v1240_v7 = vpop.f32.mrf.mxu2 }
 0x128   : > { %v1310_v8 = vadd.f32 %v1240_v7, %v1012_v50  ;;  %v1539_v21 = vpop.f32.mrf.mxu3  ;;  %v4036_v50 = vld [vmem:[%s5029_s1 + $0x200] sm:$0xff]  ;;  %v1395_v7 = vld [vmem:[#allocation2 + $0x158] sm:$0xff] }
 0x129   : > { %v945_v35 = vpop.f32.mrf.mxu1  ;;  %3011 = vmatpush.bf16.msra.mxu0 %v4036_v50  ;;  %v1445_v23 = vpack.c.bf16 %v1395_v7, %v1394_v3 }
 0x12a   : > { %v1609_v44 = vadd.f32 %v1539_v21, %v1310_v8  ;;  %v1013_v27 = vadd.f32 %v945_v35, %v4640_v41  ;;  %v330_v41 = vld [vmem:[%s4404_s28 + $0xc8] sm:$0x1]  ;;  %v1692_v8 = vld [vmem:[#allocation2 + $0x151] sm:$0xff]  ;;  %v1693_v21 = vld [vmem:[#allocation2 + $0x159] sm:$0xff] }
 0x12b   : > { %v1840_v15 = vpop.f32.mrf.mxu0  ;;  %v384_v39 = vunpack.c.l.bf16 %v330_v41  ;;  %v1098_v41 = vld [vmem:[#allocation2 + $0x15a] sm:$0xff] }
 0x12c   : > { %984 = vmatmul.bf16.gmra.mxu1 %v1741_v58  ;;  %1282 = vmatmul.bf16.gmra.mxu2 %v1145_v43  ;;  %v4798_v18 = vadd.f32 %v1837_v51, %v1609_v44  ;;  %v4231_v51 = vld [vmem:[%s4404_s28 + $0xc0] sm:$0xff]   ;;  %v4818_v44 = vpack.c.bf16 %v1096_v53, %v1095_v2  ;;  %v1397_v2 = vld [vmem:[#allocation2 + $0x170] sm:$0xff] }
 0x12d   : > { %1581 = vmatmul.bf16.gmra.mxu3 %v1444_v61  ;;  %v4078_v52 = vunpack.c.l.bf16 %v4231_v51  ;;  %v4079_v5 = vunpack.c.h.bf16 %v4231_v51  ;;  %438 = vst [vmem:[#allocation2 + $0x190] sm:$0x3] %v384_v39  ;;  %v1396_v39 = vld [vmem:[#allocation2 + $0x168] sm:$0xff]  ;;  %v1695_v53 = vld [vmem:[#allocation2 + $0x171] sm:$0xff] }
 0x12e   : > { %1879 = vmatmul.bf16.gmra.mxu0 %v1742_v13 }
 0x12f   : > { %v1243_v1 = vpop.f32.mrf.mxu2  ;;  %436 = vst [vmem:[#allocation2 + $0x180] sm:$0xff] %v4078_v52 }
 0x130   : > { %v1311_v58 = vadd.f32 %v1243_v1, %v1013_v27  ;;  %v1542_v29 = vpop.f32.mrf.mxu3  ;;  %437 = vst [vmem:[#allocation2 + $0x188] sm:$0xff] %v4079_v5  ;;  %v1097_v5 = vld [vmem:[#allocation2 + $0x152] sm:$0xff] }
 0x131   : > { %v947_v32 = vpop.f32.mrf.mxu1 }
 0x132   : > { %v1610_v34 = vadd.f32 %v1542_v29, %v1311_v58  ;;  %v1014_v6 = vadd.f32 %v947_v32, %v4658_v16 }
 0x133   : > { %v1842_v14 = vpop.f32.mrf.mxu0 }
 0x134   : > { %v4815_v26 = vadd.f32 %v1840_v15, %v1610_v34  ;;  %v1743_v15 = vpack.c.bf16 %v1693_v21, %v1692_v8  ;;  %v1446_v21 = vpack.c.bf16 %v1397_v2, %v1396_v39 }
 0x137   : > { %v1245_v43 = vpop.f32.mrf.mxu2 }
 0x138   : > { %v1312_v35 = vadd.f32 %v1245_v43, %v1014_v6  ;;  %v1544_v61 = vpop.f32.mrf.mxu3 }
 0x139   : > { %v950_v36 = vpop.f32.mrf.mxu1 }
 0x13a   : > { %v1611_v27 = vadd.f32 %v1544_v61, %v1312_v35  ;;  %v1015_v16 = vadd.f32 %v950_v36, %v4670_v60  ;;  %v1147_v60 = vpack.c.bf16 %v1098_v41, %v1097_v5  ;;  %v1696_v5 = vld [vmem:[#allocation2 + $0x181] sm:$0xff] }
 0x13b   : > { %v1845_v1 = vpop.f32.mrf.mxu0 }
 0x13c   : > { %989 = vmatmul.bf16.gmra.mxu1 %v1742_v13  ;;  %1287 = vmatmul.bf16.gmra.mxu2 %v4818_v44  ;;  %v4821_v58 = vadd.f32 %v1842_v14, %v1611_v27  ;;  %v1694_v14 = vld [vmem:[#allocation2 + $0x169] sm:$0xff] }
 0x13d   : > { %1586 = vmatmul.bf16.gmra.mxu3 %v1445_v23  ;;  %v1744_v43 = vpack.c.bf16 %v1695_v53, %v1694_v14  ;;  %v4319_v14 = vld [vmem:[%s4404_s28 + $0xc0] sm:$0xff] }
 0x13e   : > { %1884 = vmatmul.bf16.gmra.mxu0 %v1743_v15 }
 0x13f   : > { %v1248_v29 = vpop.f32.mrf.mxu2 }
 0x140   : > { %v1313_v32 = vadd.f32 %v1248_v29, %v1015_v16  ;;  %v1547_v34 = vpop.f32.mrf.mxu3 }
 0x141   : > { %v952_v49 = vpop.f32.mrf.mxu1 }
 0x142   : > { %v1612_v50 = vadd.f32 %v1547_v34, %v1313_v32  ;;  %v1016_v13 = vadd.f32 %v952_v49, %v4679_v0  ;;  %v1099_v49 = vld [vmem:[#allocation2 + $0x16a] sm:$0xff] }
 0x143   : > { %v1847_v51 = vpop.f32.mrf.mxu0 }
 0x144   : > { %v4824_v52 = vadd.f32 %v1845_v1, %v1612_v50  ;;  %v1100_v50 = vld [vmem:[#allocation2 + $0x172] sm:$0xff] }
 0x145   : > { %v1148_v2 = vpack.c.bf16 %v1100_v50, %v1099_v49  ;;  %v2562_v49 = vld [vmem:[#allocation2 + $0x39] sm:$0xff] }
 0x146   : > { %v2859_v50 = vld [vmem:[#allocation2 + $0x32] sm:$0xff] }
 0x147   : > { %v1250_v3 = vpop.f32.mrf.mxu2 }
 0x148   : > { %v1314_v6 = vadd.f32 %v1250_v3, %v1016_v13  ;;  %v1549_v7 = vpop.f32.mrf.mxu3 }
 0x149   : > { %v955_v8 = vpop.f32.mrf.mxu1 }
 0x14a   : > { %v1613_v35 = vadd.f32 %v1549_v7, %v1314_v6  ;;  %v1017_v0 = vadd.f32 %v955_v8, %v4688_v12 }
 0x14b   : > { %v1850_v61 = vpop.f32.mrf.mxu0 }
 0x14c   : > { %994 = vmatmul.bf16.gmra.mxu1 %v1743_v15  ;;  %1292 = vmatmul.bf16.gmra.mxu2 %v1147_v60  ;;  %v4827_v36 = vadd.f32 %v1847_v51, %v1613_v35  ;;  %v1697_v51 = vld [vmem:[#allocation2 + $0x189] sm:$0xff] }
 0x14d   : > { %1591 = vmatmul.bf16.gmra.mxu3 %v1446_v21  ;;  %v1745_v53 = vpack.c.bf16 %v1697_v51, %v1696_v5 }
 0x14e   : > { %1889 = vmatmul.bf16.gmra.mxu0 %v1744_v43 }
 0x14f   : > { %v1253_v23 = vpop.f32.mrf.mxu2 }
 0x150   : > { %v1315_v27 = vadd.f32 %v1253_v23, %v1017_v0  ;;  %v1552_v1 = vpop.f32.mrf.mxu3  ;;  %v1964_v23 = vld [vmem:[#allocation2 + $0x1a] sm:$0xff] }
 0x151   : > { %v957_v16 = vpop.f32.mrf.mxu1 }
 0x152   : > { %v1614_v29 = vadd.f32 %v1552_v1, %v1315_v27  ;;  %v1018_v15 = vadd.f32 %v957_v16, %v4703_v11  ;;  %v1965_v27 = vld [vmem:[#allocation2 + $0x22] sm:$0xff]  ;;  %v2263_v16 = vld [vmem:[#allocation2 + $0x30] sm:$0xff] }
 0x153   : > { %v1852_v32 = vpop.f32.mrf.mxu0 }
 0x154   : > { %v4830_v34 = vadd.f32 %v1850_v61, %v1614_v29  ;;  %v2264_v29 = vld [vmem:[#allocation2 + $0x38] sm:$0xff] }
 0x157   : > { %v1255_v41 = vpop.f32.mrf.mxu2 }
 0x158   : > { %v1316_v39 = vadd.f32 %v1255_v41, %v1018_v15  ;;  %v1554_v13 = vpop.f32.mrf.mxu3  ;;  %v2860_v15 = vld [vmem:[#allocation2 + $0x3a] sm:$0xff]  ;;  %v2028_v41 = vpack.c.bf16 %v1965_v27, %v1964_v23  ;;  %v2265_v23 = vld [vmem:[#allocation2 + $0x48] sm:$0xff]  ;;  %v2266_v27 = vld [vmem:[#allocation2 + $0x50] sm:$0xff] }
 0x159   : > { %v960_v12 = vpop.f32.mrf.mxu1 }
 0x15a   : > { %v1615_v3 = vadd.f32 %v1554_v13, %v1316_v39  ;;  %v1019_v60 = vadd.f32 %v960_v12, %v4718_v33  ;;  %v2327_v39 = vpack.c.bf16 %v2264_v29, %v2263_v16  ;;  %v2923_v12 = vpack.c.bf16 %v2860_v15, %v2859_v50  ;;  %v2563_v16 = vld [vmem:[#allocation2 + $0x49] sm:$0xff] }
 0x15b   : > { %v1855_v6 = vpop.f32.mrf.mxu0 }
 0x15c   : > { %999 = vmatmul.bf16.gmra.mxu1 %v1744_v43  ;;  %1297 = vmatmul.bf16.gmra.mxu2 %v1148_v2  ;;  %v4834_v7 = vadd.f32 %v1852_v32, %v1615_v3  ;;  %v2561_v43 = vld [vmem:[#allocation2 + $0x31] sm:$0xff] }
 0x15d   : > { %1596 = vmatmul.bf16.gmra.mxu3 %v4319_v14  ;;  %v2625_v2 = vpack.c.bf16 %v2562_v49, %v2561_v43  ;;  %v2564_v43 = vld [vmem:[#allocation2 + $0x51] sm:$0xff] }
 0x15e   : > { %1894 = vmatmul.bf16.gmra.mxu0 %v1745_v53 }
 0x15f   : > { %v1258_v11 = vpop.f32.mrf.mxu2 }
 0x160   : > { %v1317_v8 = vadd.f32 %v1258_v11, %v1019_v60  ;;  %v1557_v21 = vpop.f32.mrf.mxu3 }
 0x161   : > { %v962_v35 = vpop.f32.mrf.mxu1 }
 0x162   : > { %v1616_v61 = vadd.f32 %v1557_v21, %v1317_v8  ;;  %v1020_v32 = vadd.f32 %v962_v35, %v4727_v37 }
 0x163   : > { %v1857_v0 = vpop.f32.mrf.mxu0 }
 0x164   : > { %v4837_v1 = vadd.f32 %v1855_v6, %v1616_v61 }
 0x167   : > { %v1260_v5 = vpop.f32.mrf.mxu2 }
 0x168   : > { %v1318_v33 = vadd.f32 %v1260_v5, %v1020_v32  ;;  %v1559_v51 = vpop.f32.mrf.mxu3  ;;  %v2862_v32 = vld [vmem:[#allocation2 + $0x52] sm:$0xff] }
 0x169   : > { %v965_v13 = vpop.f32.mrf.mxu1 }
 0x16a   : > { %v1617_v14 = vadd.f32 %v1559_v51, %v1318_v33  ;;  %v1021_v37 = vadd.f32 %v965_v13, %v4651_v45  ;;  %v2328_v45 = vpack.c.bf16 %v2266_v27, %v2265_v23  ;;  %v2626_v33 = vpack.c.bf16 %v2564_v43, %v2563_v16  ;;  %v2565_v23 = vld [vmem:[#allocation2 + $0x61] sm:$0xff]  ;;  %v2566_v27 = vld [vmem:[#allocation2 + $0x69] sm:$0xff] }
 0x16b   : > { %v1860_v53 = vpop.f32.mrf.mxu0  ;;  %v2864_v16 = vld [vmem:[#allocation2 + $0x6a] sm:$0xff] }
 0x16c   : > { %2117 = vmatmul.bf16.vlgmr.msra.gmra.mxu1 %v2028_v41  ;;  %2416 = vmatmul.bf16.vlgmr.msra.gmra.mxu2 %v2327_v39  ;;  %v4840_v3 = vadd.f32 %v1857_v0, %v1617_v14  ;;  %v2861_v0 = vld [vmem:[#allocation2 + $0x4a] sm:$0xff] }
 0x16d   : > { %2714 = vmatmul.bf16.vlgmr.msra.gmra.mxu3 %v2625_v2  ;;  %v2924_v51 = vpack.c.bf16 %v2862_v32, %v2861_v0 }
 0x16e   : > { %3012 = vmatmul.bf16.vlgmr.msra.gmra.mxu0 %v2923_v12 }
 0x16f   : > { %v1263_v6 = vpop.f32.mrf.mxu2 }
 0x170   : > { %v1319_v60 = vadd.f32 %v1263_v6, %v1021_v37  ;;  %v1562_v11 = vpop.f32.mrf.mxu3 }
 0x171   : > { %v967_v8 = vpop.f32.mrf.mxu1 }
 0x172   : > { %v1618_v21 = vadd.f32 %v1562_v11, %v1319_v60  ;;  %v1022_v29 = vadd.f32 %v967_v8, %v4666_v56  ;;  %v2267_v8 = vld [vmem:[#allocation2 + $0x60] sm:$0xff] }
 0x173   : > { %v1862_v35 = vpop.f32.mrf.mxu0 }
 0x174   : > { %v4843_v61 = vadd.f32 %v1860_v53, %v1618_v21  ;;  %v2268_v21 = vld [vmem:[#allocation2 + $0x68] sm:$0xff] }
 0x177   : > { %v1265_v49 = vpop.f32.mrf.mxu2 }
 0x178   : > { %v1320_v50 = vadd.f32 %v1265_v49, %v1022_v29  ;;  %v1564_v15 = vpop.f32.mrf.mxu3  ;;  %v2627_v49 = vpack.c.bf16 %v2566_v27, %v2565_v23  ;;  %v2866_v23 = vld [vmem:[#allocation2 + $0x82] sm:$0xff] }
 0x179   : > { %v970_v5 = vpop.f32.mrf.mxu1 }
 0x17a   : > { %v1619_v41 = vadd.f32 %v1564_v15, %v1320_v50  ;;  %v1023_v56 = vadd.f32 %v970_v5, %v4675_v25  ;;  %v2329_v25 = vpack.c.bf16 %v2268_v21, %v2267_v8  ;;  %v2567_v8 = vld [vmem:[#allocation2 + $0x79] sm:$0xff]  ;;  %v2568_v21 = vld [vmem:[#allocation2 + $0x81] sm:$0xff] }
 0x17b   : > { %v1865_v39 = vpop.f32.mrf.mxu0 }
 0x17c   : > { %2122 = vmatmul.bf16.gmra.mxu1 %v2923_v12  ;;  %2421 = vmatmul.bf16.gmra.mxu2 %v2328_v45  ;;  %v4846_v13 = vadd.f32 %v1862_v35, %v1619_v41  ;;  %v2863_v35 = vld [vmem:[#allocation2 + $0x62] sm:$0xff] }
 0x17d   : > { %2719 = vmatmul.bf16.gmra.mxu3 %v2626_v33  ;;  %v2925_v50 = vpack.c.bf16 %v2864_v16, %v2863_v35 }
 0x17e   : > { %3017 = vmatmul.bf16.gmra.mxu0 %v2924_v51 }
 0x17f   : > { %v1268_v2 = vpop.f32.mrf.mxu2 }
 0x180   : > { %v1321_v14 = vadd.f32 %v1268_v2, %v1023_v56  ;;  %v1567_v53 = vpop.f32.mrf.mxu3 }
 0x181   : > { %v972_v37 = vpop.f32.mrf.mxu1 }
 0x182   : > { %v1620_v6 = vadd.f32 %v1567_v53, %v1321_v14  ;;  %v1024_v12 = vadd.f32 %v972_v37, %v4684_v9  ;;  %v2269_v37 = vld [vmem:[#allocation2 + $0x78] sm:$0xff] }
 0x183   : > { %v1867_v60 = vpop.f32.mrf.mxu0 }
 0x184   : > { %v4849_v11 = vadd.f32 %v1865_v39, %v1620_v6  ;;  %v2270_v6 = vld [vmem:[#allocation2 + $0x80] sm:$0xff] }
 0x187   : > { %v1270_v29 = vpop.f32.mrf.mxu2 }
 0x188   : > { %v1322_v43 = vadd.f32 %v1270_v29, %v1024_v12  ;;  %v1569_v0 = vpop.f32.mrf.mxu3  ;;  %v2628_v29 = vpack.c.bf16 %v2568_v21, %v2567_v8  ;;  %v2868_v8 = vld [vmem:[#allocation2 + $0x9a] sm:$0xff] }
 0x189   : > { %v975_v32 = vpop.f32.mrf.mxu1 }
 0x18a   : > { %v1621_v15 = vadd.f32 %v1569_v0, %v1322_v43  ;;  %v1025_v9 = vadd.f32 %v975_v32, %v4699_v19  ;;  %v2330_v19 = vpack.c.bf16 %v2270_v6, %v2269_v37  ;;  %v2569_v37 = vld [vmem:[#allocation2 + $0x91] sm:$0xff]  ;;  %v2570_v6 = vld [vmem:[#allocation2 + $0x99] sm:$0xff] }
 0x18b   : > { %v1870_v45 = vpop.f32.mrf.mxu0 }
 0x18c   : > { %2127 = vmatmul.bf16.gmra.mxu1 %v2924_v51  ;;  %2426 = vmatmul.bf16.gmra.mxu2 %v2329_v25  ;;  %v4852_v5 = vadd.f32 %v1867_v60, %v1621_v15  ;;  %v2865_v60 = vld [vmem:[#allocation2 + $0x7a] sm:$0xff] }
 0x18d   : > { %2724 = vmatmul.bf16.gmra.mxu3 %v2627_v49  ;;  %v2926_v43 = vpack.c.bf16 %v2866_v23, %v2865_v60 }
 0x18e   : > { %3022 = vmatmul.bf16.gmra.mxu0 %v2925_v50 }
 0x18f   : > { %v1273_v33 = vpop.f32.mrf.mxu2 }
 0x190   : > { %v1323_v41 = vadd.f32 %v1273_v33, %v1025_v9  ;;  %v1572_v39 = vpop.f32.mrf.mxu3 }
 0x191   : > { %v977_v56 = vpop.f32.mrf.mxu1 }
 0x192   : > { %v1622_v2 = vadd.f32 %v1572_v39, %v1323_v41  ;;  %v1026_v51 = vadd.f32 %v977_v56, %v4714_v30  ;;  %v2271_v56 = vld [vmem:[#allocation2 + $0x90] sm:$0xff] }
 0x193   : > { %v1872_v14 = vpop.f32.mrf.mxu0 }
 0x194   : > { %v4855_v53 = vadd.f32 %v1870_v45, %v1622_v2  ;;  %v2272_v2 = vld [vmem:[#allocation2 + $0x98] sm:$0xff] }
 0x197   : > { %v1275_v12 = vpop.f32.mrf.mxu2 }
 0x198   : > { %v1324_v27 = vadd.f32 %v1275_v12, %v1026_v51  ;;  %v1574_v35 = vpop.f32.mrf.mxu3  ;;  %v2629_v12 = vpack.c.bf16 %v2570_v6, %v2569_v37  ;;  %v2870_v37 = vld [vmem:[#allocation2 + $0xb2] sm:$0xff] }
 0x199   : > { %v980_v16 = vpop.f32.mrf.mxu1 }
 0x19a   : > { %v1623_v0 = vadd.f32 %v1574_v35, %v1324_v27  ;;  %v1027_v30 = vadd.f32 %v980_v16, %v4723_v40  ;;  %v2331_v40 = vpack.c.bf16 %v2272_v2, %v2271_v56  ;;  %v2571_v56 = vld [vmem:[#allocation2 + $0xa9] sm:$0xff]  ;;  %v2572_v2 = vld [vmem:[#allocation2 + $0xb1] sm:$0xff] }
 0x19b   : > { %v1875_v25 = vpop.f32.mrf.mxu0 }
 0x19c   : > { %2132 = vmatmul.bf16.gmra.mxu1 %v2925_v50  ;;  %2431 = vmatmul.bf16.gmra.mxu2 %v2330_v19  ;;  %v4858_v32 = vadd.f32 %v1872_v14, %v1623_v0  ;;  %v2867_v14 = vld [vmem:[#allocation2 + $0x92] sm:$0xff] }
 0x19d   : > { %2729 = vmatmul.bf16.gmra.mxu3 %v2628_v29  ;;  %v2927_v27 = vpack.c.bf16 %v2868_v8, %v2867_v14 }
 0x19e   : > { %3027 = vmatmul.bf16.gmra.mxu0 %v2926_v43 }
 0x19f   : > { %v1278_v49 = vpop.f32.mrf.mxu2 }
 0x1a0   : > { %v1325_v15 = vadd.f32 %v1278_v49, %v1027_v30  ;;  %v1577_v45 = vpop.f32.mrf.mxu3 }
 0x1a1   : > { %v982_v9 = vpop.f32.mrf.mxu1 }
 0x1a2   : > { %v1624_v33 = vadd.f32 %v1577_v45, %v1325_v15  ;;  %v1028_v50 = vadd.f32 %v982_v9, %v4732_v54  ;;  %v2273_v9 = vld [vmem:[#allocation2 + $0xa8] sm:$0xff] }
 0x1a3   : > { %v1877_v41 = vpop.f32.mrf.mxu0 }
 0x1a4   : > { %v4861_v39 = vadd.f32 %v1875_v25, %v1624_v33  ;;  %v2274_v33 = vld [vmem:[#allocation2 + $0xb0] sm:$0xff] }
 0x1a7   : > { %v1280_v51 = vpop.f32.mrf.mxu2 }
 0x1a8   : > { %v1326_v21 = vadd.f32 %v1280_v51, %v1028_v50  ;;  %v1579_v60 = vpop.f32.mrf.mxu3  ;;  %v2630_v51 = vpack.c.bf16 %v2572_v2, %v2571_v56  ;;  %v2872_v56 = vld [vmem:[#allocation2 + $0xca] sm:$0xff] }
 0x1a9   : > { %v985_v23 = vpop.f32.mrf.mxu1 }
 0x1aa   : > { %v1625_v35 = vadd.f32 %v1579_v60, %v1326_v21  ;;  %v1029_v54 = vadd.f32 %v985_v23, %v4653_v46  ;;  %v2332_v46 = vpack.c.bf16 %v2274_v33, %v2273_v9  ;;  %v2573_v9 = vld [vmem:[#allocation2 + $0xc1] sm:$0xff]  ;;  %v2574_v33 = vld [vmem:[#allocation2 + $0xc9] sm:$0xff] }
 0x1ab   : > { %v1880_v19 = vpop.f32.mrf.mxu0 }
 0x1ac   : > { %2137 = vmatmul.bf16.gmra.mxu1 %v2926_v43  ;;  %2436 = vmatmul.bf16.gmra.mxu2 %v2331_v40  ;;  %v4864_v16 = vadd.f32 %v1877_v41, %v1625_v35  ;;  %v2869_v41 = vld [vmem:[#allocation2 + $0xaa] sm:$0xff] }
 0x1ad   : > { %2734 = vmatmul.bf16.gmra.mxu3 %v2629_v12  ;;  %v2928_v21 = vpack.c.bf16 %v2870_v37, %v2869_v41 }
 0x1ae   : > { %3032 = vmatmul.bf16.gmra.mxu0 %v2927_v27 }
 0x1af   : > { %v1283_v29 = vpop.f32.mrf.mxu2 }
 0x1b0   : > { %v1327_v0 = vadd.f32 %v1283_v29, %v1029_v54  ;;  %v1582_v25 = vpop.f32.mrf.mxu3 }
 0x1b1   : > { %v987_v30 = vpop.f32.mrf.mxu1 }
 0x1b2   : > { %v1626_v49 = vadd.f32 %v1582_v25, %v1327_v0  ;;  %v1030_v43 = vadd.f32 %v987_v30, %v4668_v57  ;;  %v2275_v30 = vld [vmem:[#allocation2 + $0xc0] sm:$0xff] }
 0x1b3   : > { %v1882_v15 = vpop.f32.mrf.mxu0 }
 0x1b4   : > { %v4867_v45 = vadd.f32 %v1880_v19, %v1626_v49  ;;  %v2276_v49 = vld [vmem:[#allocation2 + $0xc8] sm:$0xff] }
 0x1b7   : > { %v1285_v50 = vpop.f32.mrf.mxu2 }
 0x1b8   : > { %v1328_v6 = vadd.f32 %v1285_v50, %v1030_v43  ;;  %v1584_v14 = vpop.f32.mrf.mxu3  ;;  %v2631_v50 = vpack.c.bf16 %v2574_v33, %v2573_v9 }
 0x1b9   : > { %v990_v8 = vpop.f32.mrf.mxu1 }
 0x1ba   : > { %v1627_v60 = vadd.f32 %v1584_v14, %v1328_v6  ;;  %v1031_v57 = vadd.f32 %v990_v8, %v4677_v63  ;;  %v2333_v63 = vpack.c.bf16 %v2276_v49, %v2275_v30  ;;  %v2576_v49 = vld [vmem:[#allocation2 + $0xe1] sm:$0xff] }
 0x1bb   : > { %v1885_v40 = vpop.f32.mrf.mxu0 }
 0x1bc   : > { %2142 = vmatmul.bf16.gmra.mxu1 %v2927_v27  ;;  %2441 = vmatmul.bf16.gmra.mxu2 %v2332_v46  ;;  %v4870_v23 = vadd.f32 %v1882_v15, %v1627_v60  ;;  %v2871_v15 = vld [vmem:[#allocation2 + $0xc2] sm:$0xff] }
 0x1bd   : > { %2739 = vmatmul.bf16.gmra.mxu3 %v2630_v51  ;;  %v2929_v6 = vpack.c.bf16 %v2872_v56, %v2871_v15 }
 0x1be   : > { %3037 = vmatmul.bf16.gmra.mxu0 %v2928_v21 }
 0x1bf   : > { %v1288_v12 = vpop.f32.mrf.mxu2 }
 0x1c0   : > { %v1329_v35 = vadd.f32 %v1288_v12, %v1031_v57  ;;  %v1587_v19 = vpop.f32.mrf.mxu3 }
 0x1c1   : > { %v992_v54 = vpop.f32.mrf.mxu1 }
 0x1c2   : > { %v1628_v29 = vadd.f32 %v1587_v19, %v1329_v35  ;;  %v1032_v27 = vadd.f32 %v992_v54, %v4686_v10  ;;  %v2277_v54 = vld [vmem:[#allocation2 + $0xd8] sm:$0xff] }
 0x1c3   : > { %v1887_v0 = vpop.f32.mrf.mxu0 }
 0x1c4   : > { %v4873_v25 = vadd.f32 %v1885_v40, %v1628_v29  ;;  %v2278_v29 = vld [vmem:[#allocation2 + $0xe0] sm:$0xff] }
 0x1c5   : > { %v2334_v33 = vpack.c.bf16 %v2278_v29, %v2277_v54 }
 0x1c7   : > { %v1290_v43 = vpop.f32.mrf.mxu2 }
 0x1c8   : > { %v1330_v2 = vadd.f32 %v1290_v43, %v1032_v27  ;;  %v1589_v41 = vpop.f32.mrf.mxu3 }
 0x1c9   : > { %v995_v37 = vpop.f32.mrf.mxu1 }
 0x1ca   : > { %v1629_v14 = vadd.f32 %v1589_v41, %v1330_v2  ;;  %v1033_v10 = vadd.f32 %v995_v37, %v4701_v20 }
 0x1cb   : > { %v1890_v46 = vpop.f32.mrf.mxu0 }
 0x1cc   : > { %2147 = vmatmul.bf16.gmra.mxu1 %v2928_v21  ;;  %2446 = vmatmul.bf16.gmra.mxu2 %v2333_v63  ;;  %v4876_v8 = vadd.f32 %v1887_v0, %v1629_v14  ;;  %v2575_v21 = vld [vmem:[#allocation2 + $0xd9] sm:$0xff] }
 0x1cd   : > { %2744 = vmatmul.bf16.gmra.mxu3 %v2631_v50  ;;  %v2632_v20 = vpack.c.bf16 %v2576_v49, %v2575_v21 }
 0x1ce   : > { %3042 = vmatmul.bf16.gmra.mxu0 %v2929_v6 }
 0x1cf   : > { %v1293_v51 = vpop.f32.mrf.mxu2 }
 0x1d0   : > { %v1331_v60 = vadd.f32 %v1293_v51, %v1033_v10  ;;  %v1592_v40 = vpop.f32.mrf.mxu3  ;;  %v1980_v10 = vld [vmem:[#allocation2 + $0xda] sm:$0xff] }
 0x1d1   : > { %v997_v57 = vpop.f32.mrf.mxu1 }
 0x1d2   : > { %v1630_v12 = vadd.f32 %v1592_v40, %v1331_v60  ;;  %v1034_v30 = vadd.f32 %v997_v57, %v4716_v31  ;;  %v1981_v60 = vld [vmem:[#allocation2 + $0xe2] sm:$0xff]  ;;  %v2279_v40 = vld [vmem:[#allocation2 + $0xf0] sm:$0xff] }
 0x1d3   : > { %v1892_v35 = vpop.f32.mrf.mxu0 }
 0x1d4   : > { %v4879_v19 = vadd.f32 %v1890_v46, %v1630_v12  ;;  %v2577_v12 = vld [vmem:[#allocation2 + $0xf1] sm:$0xff] }
 0x1d7   : > { %v1295_v0 = vpop.f32.mrf.mxu2 }
 0x1d8   : > { %v1332_v9 = vadd.f32 %v1295_v0, %v1034_v30  ;;  %v1594_v27 = vpop.f32.mrf.mxu3 }
 0x1d9   : > { %v1000_v15 = vpop.f32.mrf.mxu1 }
 0x1da   : > { %v1631_v56 = vadd.f32 %v1594_v27, %v1332_v9  ;;  %v1035_v41 = vadd.f32 %v1000_v15, %v4725_v42  ;;  %v2036_v42 = vpack.c.bf16 %v1981_v60, %v1980_v10  ;;  %v2580_v10 = vld [vmem:[#allocation2 + $0x111] sm:$0xff]  ;;  %v4081_v60 = vld [vmem:[%s4899_s22] sm:$0xff]  }
 0x1db   : > { %v1895_v43 = vpop.f32.mrf.mxu0 }
 0x1dc   : > { %2152 = vmatmul.bf16.gmra.mxu1 %v2929_v6  ;;  %2451 = vmatmul.bf16.gmra.mxu2 %v2334_v33  ;;  %v4882_v2 = vadd.f32 %v1892_v35, %v1631_v56  ;;  %v2280_v6 = vld [vmem:[#allocation2 + $0xf8] sm:$0xff] }
 0x1dd   : > { %2749 = vmatmul.bf16.gmra.mxu3 %v2632_v20  ;;  %v2578_v35 = vld [vmem:[#allocation2 + $0xf9] sm:$0xff]  ;;  %v2335_v30 = vpack.c.bf16 %v2280_v6, %v2279_v40 }
 0x1de   : > { %3047 = vmatmul.bf16.gmra.mxu0 %v4754_v47  ;;  %v2633_v49 = vpack.c.bf16 %v2578_v35, %v2577_v12 }
 0x1df   : > { %v1298_v31 = vpop.f32.mrf.mxu2 }
 0x1e0   : > { %v1333_v63 = vadd.f32 %v1298_v31, %v1035_v41  ;;  %v1597_v37 = vpop.f32.mrf.mxu3  ;;  %v1982_v31 = vld [vmem:[#allocation2 + $0xf2] sm:$0xff] }
 0x1e1   : > { %v1002_v50 = vpop.f32.mrf.mxu1 }
 0x1e2   : > { %v1632_v14 = vadd.f32 %v1597_v37, %v1333_v63  ;;  %v1036_v57 = vadd.f32 %v1002_v50, %v4734_v55  ;;  %v1983_v63 = vld [vmem:[#allocation2 + $0xfa] sm:$0xff]  ;;  %v2281_v37 = vld [vmem:[#allocation2 + $0x108] sm:$0xff] }
 0x1e3   : > { %v1897_v46 = vpop.f32.mrf.mxu0  ;;  %v2037_v12 = vpack.c.bf16 %v1983_v63, %v1982_v31 }
 0x1e4   : > { %v4886_v51 = vadd.f32 %v1895_v43, %v1632_v14 }
 0x1e7   : > { %v1300_v54 = vpop.f32.mrf.mxu2 }
 0x1e8   : > { %v1334_v47 = vadd.f32 %v1300_v54, %v1036_v57  ;;  %v1599_v29 = vpop.f32.mrf.mxu3 }
 0x1e9   : > { %v2118_v21 = vpop.f32.mrf.mxu1 }
 0x1ea   : > { %v1633_v0 = vadd.f32 %v1599_v29, %v1334_v47  ;;  %v2198_v55 = vadd.f32 %v2118_v21, %v4752_v24  ;;  %v4904_v24 = vld [vmem:[%s5030_s2] ss:$0 sm:$0xff] }
 0x1eb   : > { %v3013_v9 = vpop.f32.mrf.mxu0 }
 0x1ec   : > { %2157 = vmatmul.bf16.gmra.mxu1 %v2036_v42  ;;  %2456 = vmatmul.bf16.gmra.mxu2 %v2335_v30  ;;  %v4889_v27 = vadd.f32 %v1897_v46, %v1633_v0  ;;  %v2579_v46 = vld [vmem:[#allocation2 + $0x109] sm:$0xff]  ;;  %v4082_v42 = vunpack.c.l.bf16 %v4081_v60  ;;  %v4083_v0 = vunpack.c.h.bf16 %v4081_v60 }
 0x1ed   : > { %2754 = vmatmul.bf16.gmra.mxu3 %v2633_v49  ;;  %v2634_v47 = vpack.c.bf16 %v2580_v10, %v2579_v46  ;;  %v2581_v46 = vld [vmem:[#allocation2 + $0x121] sm:$0xff] }
 0x1ee   : > { %3052 = vmatmul.bf16.gmra.mxu0 %v4765_v22  ;;  %v2282_v22 = vld [vmem:[#allocation2 + $0x110] sm:$0xff] }
 0x1ef   : > { %v2417_v33 = vpop.f32.mrf.mxu2  ;;  %v2336_v35 = vpack.c.bf16 %v2282_v22, %v2281_v37  ;;  %v1984_v22 = vld [vmem:[#allocation2 + $0x10a] sm:$0xff] }
 0x1f0   : > { %v2497_v15 = vadd.f32 %v2417_v33, %v2198_v55  ;;  %v2715_v20 = vpop.f32.mrf.mxu3 }
 0x1f1   : > { %v2120_v56 = vpop.f32.mrf.mxu1 }
 0x1f2   : > { %v2795_v43 = vadd.f32 %v2715_v20, %v2497_v15  ;;  %v2199_v14 = vadd.f32 %v2120_v56, %v4758_v38 }
 0x1f3   : > { %v3015_v41 = vpop.f32.mrf.mxu0 }
 0x1f4   : > { %v3093_v50 = vadd.f32 %v3013_v9, %v2795_v43 }
 0x1f6   : > { %v3193_v29 = vadd.f32 %v4904_v24, %v3093_v50  ;;  %v2283_v50 = vld [vmem:[#allocation2 + $0x120] sm:$0xff] }
 0x1f7   : > { %v2419_v40 = vpop.f32.mrf.mxu2 }
 0x1f8   : > { %v2498_v6 = vadd.f32 %v2419_v40, %v2199_v14  ;;  %v2717_v57 = vpop.f32.mrf.mxu3  ;;  %v3289_v38 = vadd.f32 %v4082_v42, %v3193_v29  ;;  %v2284_v14 = vld [vmem:[#allocation2 + $0x128] sm:$0xff] }
 0x1f9   : > { %v2123_v54 = vpop.f32.mrf.mxu1  ;;  %v2582_v40 = vld [vmem:[#allocation2 + $0x129] sm:$0xff]  ;;  %v2337_v42 = vpack.c.bf16 %v2284_v14, %v2283_v50 }
 0x1fa   : > { %v2796_v30 = vadd.f32 %v2717_v57, %v2498_v6  ;;  %v2200_v55 = vadd.f32 %v2123_v54, %v4763_v62  ;;  %v3321_v31 = vmax.f32 %v3289_v38, 0.0  ;;  %v1985_v62 = vld [vmem:[#allocation2 + $0x112] sm:$0xff]  ;;  %v2879_v6 = vld [vmem:[#allocation2 + $0x122] sm:$0xff]  ;;  %v2880_v57 = vld [vmem:[#allocation2 + $0x12a] sm:$0xff] }
 0x1fb   : > { %v3018_v21 = vpop.f32.mrf.mxu0  ;;  %v2038_v29 = vpack.c.bf16 %v1985_v62, %v1984_v22 }
 0x1fc   : > { %v3094_v49 = vadd.f32 %v3015_v41, %v2796_v30  ;;  %2162 = vmatmul.bf16.gmra.mxu1 %v2037_v12  ;;  %2461 = vmatmul.bf16.gmra.mxu2 %v2336_v35  ;;  %v4232_v12 = vld [vmem:[%s4899_s22 + $0x8] sm:$0xff]  }
 0x1fd   : > { %2759 = vmatmul.bf16.gmra.mxu3 %v2634_v47 }
 0x1fe   : > { %3057 = vmatmul.bf16.gmra.mxu0 %v4788_v17  ;;  %v3194_v9 = vadd.f32 %v4904_v24, %v3094_v49  ;;  %v2635_v49 = vpack.c.bf16 %v2582_v40, %v2581_v46  ;;  %v2285_v46 = vld [vmem:[#allocation2 + $0x138] sm:$0xff] }
 0x1ff   : > { %v2422_v33 = vpop.f32.mrf.mxu2 }
 0x200   : > { %v3290_v15 = vadd.f32 %v4083_v0, %v3194_v9  ;;  %v2499_v20 = vadd.f32 %v2422_v33, %v2200_v55  ;;  %v2720_v56 = vpop.f32.mrf.mxu3  ;;  %v2933_v0 = vpack.c.bf16 %v2880_v57, %v2879_v6  ;;  %v4086_v9 = vunpack.c.l.bf16 %v4232_v12  ;;  %v2583_v6 = vld [vmem:[#allocation2 + $0x139] sm:$0xff]  ;;  %v2584_v57 = vld [vmem:[#allocation2 + $0x141] sm:$0xff] }
 0x201   : > { %v2125_v43 = vpop.f32.mrf.mxu1 }
 0x202   : > { %v3322_v63 = vmax.f32 %v3290_v15, 0.0  ;;  %v2797_v41 = vadd.f32 %v2720_v56, %v2499_v20  ;;  %v2201_v60 = vadd.f32 %v2125_v43, %v4769_v48  ;;  %v4087_v15 = vunpack.c.h.bf16 %v4232_v12 }
 0x203   : > { %v3020_v37 = vpop.f32.mrf.mxu0 }
 0x204   : > { %v4147_v17 = vpack.c.bf16 %v3322_v63, %v3321_v31  ;;  %v3095_v10 = vadd.f32 %v3018_v21, %v2797_v41 }
 0x206   : > { %4148 = vst [vmem:[%s4917_s27] sm:$0xff] %v4147_v17   ;;  %v3195_v38 = vadd.f32 %v4904_v24, %v3095_v10  ;;  %v2286_v10 = vld [vmem:[#allocation2 + $0x140] sm:$0xff] }
 0x207   : > { %v2424_v35 = vpop.f32.mrf.mxu2 }
 0x208   : > { %v2500_v54 = vadd.f32 %v2424_v35, %v2201_v60  ;;  %v2722_v47 = vpop.f32.mrf.mxu3  ;;  %v3291_v48 = vadd.f32 %v4086_v9, %v3195_v38 }
 0x209   : > { %v2128_v30 = vpop.f32.mrf.mxu1 }
 0x20a   : > { %v2798_v55 = vadd.f32 %v2722_v47, %v2500_v54  ;;  %v2202_v56 = vadd.f32 %v2128_v30, %v4786_v4  ;;  %v3323_v22 = vmax.f32 %v3291_v48, 0.0  ;;  %v4233_v4 = vld [vmem:[%s4899_s22 + $0x10] sm:$0xff]   ;;  %v2338_v47 = vpack.c.bf16 %v2286_v10, %v2285_v46  ;;  %v2586_v10 = vld [vmem:[#allocation2 + $0x159] sm:$0xff] }
 0x20b   : > { %v3023_v33 = vpop.f32.mrf.mxu0 }
 0x20c   : > { %v3096_v21 = vadd.f32 %v3020_v37, %v2798_v55  ;;  %2167 = vmatmul.bf16.gmra.mxu1 %v2038_v29  ;;  %2466 = vmatmul.bf16.gmra.mxu2 %v2337_v42  ;;  %v2636_v42 = vpack.c.bf16 %v2584_v57, %v2583_v6  ;;  %v4234_v6 = vld [vmem:[%s4899_s22 + $0x18] sm:$0xff]  }
 0x20d   : > { %2764 = vmatmul.bf16.gmra.mxu3 %v2635_v49  ;;  %v4090_v49 = vunpack.c.l.bf16 %v4233_v4 }
 0x20e   : > { %3062 = vmatmul.bf16.gmra.mxu0 %v2933_v0  ;;  %v3196_v20 = vadd.f32 %v4904_v24, %v3096_v21  ;;  %v4091_v21 = vunpack.c.h.bf16 %v4233_v4 }
 0x20f   : > { %v2427_v43 = vpop.f32.mrf.mxu2 }
 0x210   : > { %v3292_v31 = vadd.f32 %v4087_v15, %v3196_v20  ;;  %v2501_v63 = vadd.f32 %v2427_v43, %v2202_v56  ;;  %v2725_v41 = vpop.f32.mrf.mxu3 }
 0x211   : > { %v2130_v17 = vpop.f32.mrf.mxu1 }
 0x212   : > { %v3324_v62 = vmax.f32 %v3292_v31, 0.0  ;;  %v2799_v37 = vadd.f32 %v2725_v41, %v2501_v63  ;;  %v2203_v40 = vadd.f32 %v2130_v17, %v4792_v28 }
 0x213   : > { %v3025_v50 = vpop.f32.mrf.mxu0 }
 0x214   : > { %v4152_v14 = vpack.c.bf16 %v3324_v62, %v3323_v22  ;;  %v3097_v60 = vadd.f32 %v3023_v33, %v2799_v37  ;;  %v1988_v62 = vld [vmem:[#allocation2 + $0x13a] sm:$0xff]  ;;  %v1989_v37 = vld [vmem:[#allocation2 + $0x142] sm:$0xff] }
 0x216   : > { %4247 = vst [vmem:[%s4917_s27 + $0x8] sm:$0xff] %v4152_v14   ;;  %v3197_v30 = vadd.f32 %v4904_v24, %v3097_v60  ;;  %v2585_v14 = vld [vmem:[#allocation2 + $0x151] sm:$0xff] }
 0x217   : > { %v2429_v12 = vpop.f32.mrf.mxu2  ;;  %v2883_v60 = vld [vmem:[#allocation2 + $0x152] sm:$0xff] }
 0x218   : > { %v2502_v35 = vadd.f32 %v2429_v12, %v2203_v40  ;;  %v2727_v54 = vpop.f32.mrf.mxu3  ;;  %v3293_v28 = vadd.f32 %v4090_v49, %v3197_v30  ;;  %v2884_v40 = vld [vmem:[#allocation2 + $0x15a] sm:$0xff]  ;;  %v4094_v49 = vunpack.c.l.bf16 %v4234_v6 }
 0x219   : > { %v2133_v29 = vpop.f32.mrf.mxu1 }
 0x21a   : > { %v2800_v38 = vadd.f32 %v2727_v54, %v2502_v35  ;;  %v2204_v15 = vadd.f32 %v2133_v29, %v4796_v59  ;;  %v3325_v63 = vmax.f32 %v3293_v28, 0.0  ;;  %v2040_v35 = vpack.c.bf16 %v1989_v37, %v1988_v62 }
 0x21b   : > { %v3028_v9 = vpop.f32.mrf.mxu0  ;;  %v2637_v29 = vpack.c.bf16 %v2586_v10, %v2585_v14  ;;  %v2290_v14 = vld [vmem:[#allocation2 + $0x170] sm:$0xff] }
 0x21c   : > { %v3098_v55 = vadd.f32 %v3025_v50, %v2800_v38  ;;  %2172 = vmatmul.bf16.gmra.mxu1 %v2933_v0  ;;  %2471 = vmatmul.bf16.gmra.mxu2 %v2338_v47  ;;  %v2288_v50 = vld [vmem:[#allocation2 + $0x158] sm:$0xff] }
 0x21d   : > { %2769 = vmatmul.bf16.gmra.mxu3 %v2636_v42  ;;  %v2935_v42 = vpack.c.bf16 %v2884_v40, %v2883_v60  ;;  %v2588_v60 = vld [vmem:[#allocation2 + $0x171] sm:$0xff] }
 0x21e   : > { %3067 = vmatmul.bf16.gmra.mxu0 %v4818_v44  ;;  %v3198_v33 = vadd.f32 %v4904_v24, %v3098_v55  ;;  %v2287_v44 = vld [vmem:[#allocation2 + $0x150] sm:$0xff]  ;;  %v4095_v55 = vunpack.c.h.bf16 %v4234_v6 }
 0x21f   : > { %v2432_v48 = vpop.f32.mrf.mxu2  ;;  %v2339_v54 = vpack.c.bf16 %v2288_v50, %v2287_v44  ;;  %v2289_v50 = vld [vmem:[#allocation2 + $0x168] sm:$0xff]  ;;  %v2886_v6 = vld [vmem:[#allocation2 + $0x172] sm:$0xff] }
 0x220   : > { %v3294_v20 = vadd.f32 %v4091_v21, %v3198_v33  ;;  %v2503_v56 = vadd.f32 %v2432_v48, %v2204_v15  ;;  %v2730_v43 = vpop.f32.mrf.mxu3  ;;  %v2885_v40 = vld [vmem:[#allocation2 + $0x16a] sm:$0xff] }
 0x221   : > { %v2135_v31 = vpop.f32.mrf.mxu1 }
 0x222   : > { %v3326_v41 = vmax.f32 %v3294_v20, 0.0  ;;  %v2801_v17 = vadd.f32 %v2730_v43, %v2503_v56  ;;  %v2205_v59 = vadd.f32 %v2135_v31, %v4798_v18  ;;  %v4939_v43 = vld [vmem:[%s4404_s28 + $0xcc] sm:$0xff]   ;;  %v333_v31 = vld [vmem:[%s4404_s28 + $0xd4] sm:$0x1] }
 0x223   : > { %v3030_v0 = vpop.f32.mrf.mxu0 }
 0x224   : > { %v4157_v22 = vpack.c.bf16 %v3326_v41, %v3325_v63  ;;  %v3099_v46 = vadd.f32 %v3028_v9, %v2801_v17  ;;  %v385_v41 = vunpack.c.l.bf16 %v4939_v43  ;;  %v386_v17 = vunpack.c.h.bf16 %v4939_v43 }
 0x226   : > { %4248 = vst [vmem:[%s4917_s27 + $0x10] sm:$0xff] %v4157_v22   ;;  %v3199_v30 = vadd.f32 %v4904_v24, %v3099_v46  ;;  %v2587_v46 = vld [vmem:[#allocation2 + $0x169] sm:$0xff] }
 0x227   : > { %v2434_v57 = vpop.f32.mrf.mxu2  ;;  %439 = vst [vmem:[#allocation2 + $0x198] sm:$0xff] %v385_v41 }
 0x228   : > { %v2504_v4 = vadd.f32 %v2434_v57, %v2205_v59  ;;  %v2732_v12 = vpop.f32.mrf.mxu3  ;;  %v3295_v21 = vadd.f32 %v4094_v49, %v3199_v30  ;;  %440 = vst [vmem:[#allocation2 + $0x1a0] sm:$0xff] %v386_v17  ;;  %v4235_v57 = vld [vmem:[%s4899_s22 + $0x20] sm:$0xff]   ;;  %v2936_v30 = vpack.c.bf16 %v2886_v6, %v2885_v40 }
 0x229   : > { %v2138_v47 = vpop.f32.mrf.mxu1 }
 0x22a   : > { %v2802_v38 = vadd.f32 %v2732_v12, %v2504_v4  ;;  %v2206_v33 = vadd.f32 %v2138_v47, %v4815_v26  ;;  %v3327_v22 = vmax.f32 %v3295_v21, 0.0 }
 0x22b   : > { %v3033_v9 = vpop.f32.mrf.mxu0 }
 0x22c   : > { %v3100_v18 = vadd.f32 %v3030_v0, %v2802_v38  ;;  %2177 = vmatmul.bf16.gmra.mxu1 %v2040_v35  ;;  %2476 = vmatmul.bf16.gmra.mxu2 %v2339_v54  ;;  %v387_v0 = vunpack.c.l.bf16 %v333_v31  ;;  %v2340_v54 = vpack.c.bf16 %v2290_v14, %v2289_v50  ;;  %v4098_v38 = vunpack.c.l.bf16 %v4235_v57  ;;  %v2590_v50 = vld [vmem:[#allocation2 + $0x189] sm:$0xff] }
 0x22d   : > { %2774 = vmatmul.bf16.gmra.mxu3 %v2637_v29  ;;  %v2638_v29 = vpack.c.bf16 %v2588_v60, %v2587_v46  ;;  %v2888_v14 = vld [vmem:[#allocation2 + $0x18a] sm:$0xff] }
 0x22e   : > { %3072 = vmatmul.bf16.gmra.mxu0 %v2935_v42  ;;  %v3200_v28 = vadd.f32 %v4904_v24, %v3100_v18  ;;  %441 = vst [vmem:[#allocation2 + $0x1a8] sm:$0x3] %v387_v0  ;;  %v4236_v46 = vld [vmem:[%s4899_s22 + $0x28] sm:$0xff]  }
 0x22f   : > { %v2437_v15 = vpop.f32.mrf.mxu2 }
 0x230   : > { %v3296_v48 = vadd.f32 %v4095_v55, %v3200_v28  ;;  %v2505_v20 = vadd.f32 %v2437_v15, %v2206_v33  ;;  %v2735_v56 = vpop.f32.mrf.mxu3 }
 0x231   : > { %v2140_v63 = vpop.f32.mrf.mxu1 }
 0x232   : > { %v3328_v62 = vmax.f32 %v3296_v48, 0.0  ;;  %v2803_v37 = vadd.f32 %v2735_v56, %v2505_v20  ;;  %v2207_v10 = vadd.f32 %v2140_v63, %v4821_v58 }
 0x233   : > { %v3035_v44 = vpop.f32.mrf.mxu0 }
 0x234   : > { %v4162_v26 = vpack.c.bf16 %v3328_v62, %v3327_v22  ;;  %v3101_v59 = vadd.f32 %v3033_v9, %v2803_v37  ;;  %v4099_v9 = vunpack.c.h.bf16 %v4235_v57  ;;  %v2291_v22 = vld [vmem:[#allocation2 + $0x180] sm:$0xff]  ;;  %v2292_v62 = vld [vmem:[#allocation2 + $0x188] sm:$0xff] }
 0x235   : > { %v2589_v37 = vld [vmem:[#allocation2 + $0x181] sm:$0xff]  ;;  %v2341_v40 = vpack.c.bf16 %v2292_v62, %v2291_v22 }
 0x236   : > { %4249 = vst [vmem:[%s4917_s27 + $0x18] sm:$0xff] %v4162_v26   ;;  %v3201_v49 = vadd.f32 %v4904_v24, %v3101_v59  ;;  %v2639_v57 = vpack.c.bf16 %v2590_v50, %v2589_v37 }
 0x237   : > { %v2439_v4 = vpop.f32.mrf.mxu2 }
 0x238   : > { %v2506_v12 = vadd.f32 %v2439_v4, %v2207_v10  ;;  %v2737_v35 = vpop.f32.mrf.mxu3  ;;  %v3297_v58 = vadd.f32 %v4098_v38, %v3201_v49  ;;  %v4103_v49 = vunpack.c.h.bf16 %v4236_v46 }
 0x239   : > { %v2143_v47 = vpop.f32.mrf.mxu1 }
 0x23a   : > { %v2804_v18 = vadd.f32 %v2737_v35, %v2506_v12  ;;  %v2208_v33 = vadd.f32 %v2143_v47, %v4824_v52  ;;  %v3329_v63 = vmax.f32 %v3297_v58, 0.0  ;;  %v2887_v52 = vld [vmem:[#allocation2 + $0x182] sm:$0xff]  ;;  %v4102_v35 = vunpack.c.l.bf16 %v4236_v46 }
 0x23b   : > { %v3038_v55 = vpop.f32.mrf.mxu0  ;;  %v2937_v4 = vpack.c.bf16 %v2888_v14, %v2887_v52 }
 0x23c   : > { %v3102_v21 = vadd.f32 %v3035_v44, %v2804_v18  ;;  %2182 = vmatmul.bf16.gmra.mxu1 %v2935_v42  ;;  %2481 = vmatmul.bf16.gmra.mxu2 %v2340_v54 }
 0x23d   : > { %2779 = vmatmul.bf16.gmra.mxu3 %v2638_v29 }
 0x23e   : > { %3077 = vmatmul.bf16.gmra.mxu0 %v2936_v30  ;;  %v3202_v28 = vadd.f32 %v4904_v24, %v3102_v21 }
 0x23f   : > { %v2442_v15 = vpop.f32.mrf.mxu2 }
 0x240   : > { %v3298_v48 = vadd.f32 %v4099_v9, %v3202_v28  ;;  %v2507_v20 = vadd.f32 %v2442_v15, %v2208_v33  ;;  %v2740_v56 = vpop.f32.mrf.mxu3 }
 0x241   : > { %v2145_v31 = vpop.f32.mrf.mxu1 }
 0x242   : > { %v3330_v41 = vmax.f32 %v3298_v48, 0.0  ;;  %v2805_v17 = vadd.f32 %v2740_v56, %v2507_v20  ;;  %v2209_v26 = vadd.f32 %v2145_v31, %v4827_v36  ;;  %v2591_v56 = vld [vmem:[#allocation2 + $0x199] sm:$0xff] }
 0x243   : > { %v3040_v0 = vpop.f32.mrf.mxu0 }
 0x244   : > { %v4167_v42 = vpack.c.bf16 %v3330_v41, %v3329_v63  ;;  %v3103_v44 = vadd.f32 %v3038_v55, %v2805_v17  ;;  %v2592_v41 = vld [vmem:[#allocation2 + $0x1a1] sm:$0xff] }
 0x245   : > { %v2889_v17 = vld [vmem:[#allocation2 + $0x19a] sm:$0xff] }
 0x246   : > { %4250 = vst [vmem:[%s4917_s27 + $0x20] sm:$0xff] %v4167_v42   ;;  %v3203_v12 = vadd.f32 %v4904_v24, %v3103_v44  ;;  %v2640_v44 = vpack.c.bf16 %v2592_v41, %v2591_v56 }
 0x247   : > { %v2444_v59 = vpop.f32.mrf.mxu2 }
 0x248   : > { %v2508_v10 = vadd.f32 %v2444_v59, %v2209_v26  ;;  %v2742_v60 = vpop.f32.mrf.mxu3  ;;  %v3299_v36 = vadd.f32 %v4102_v35, %v3203_v12 }
 0x249   : > { %v2148_v6 = vpop.f32.mrf.mxu1 }
 0x24a   : > { %v2806_v54 = vadd.f32 %v2742_v60, %v2508_v10  ;;  %v2210_v18 = vadd.f32 %v2148_v6, %v4830_v34  ;;  %v3331_v33 = vmax.f32 %v3299_v36, 0.0  ;;  %v4237_v34 = vld [vmem:[%s4899_s22 + $0x30] sm:$0xff]  }
 0x24b   : > { %v3043_v47 = vpop.f32.mrf.mxu0  ;;  %v4106_v52 = vunpack.c.l.bf16 %v4237_v34  ;;  %v4107_v10 = vunpack.c.h.bf16 %v4237_v34 }
 0x24c   : > { %v3104_v29 = vadd.f32 %v3040_v0, %v2806_v54  ;;  %2187 = vmatmul.bf16.gmra.mxu1 %v2936_v30  ;;  %2486 = vmatmul.bf16.gmra.mxu2 %v2341_v40  ;;  %v2890_v0 = vld [vmem:[#allocation2 + $0x1a2] sm:$0xff] }
 0x24d   : > { %2784 = vmatmul.bf16.gmra.mxu3 %v2639_v57  ;;  %v2938_v26 = vpack.c.bf16 %v2890_v0, %v2889_v17 }
 0x24e   : > { %3082 = vmatmul.bf16.gmra.mxu0 %v2937_v4  ;;  %v3204_v38 = vadd.f32 %v4904_v24, %v3104_v29 }
 0x24f   : > { %v2447_v55 = vpop.f32.mrf.mxu2 }
 0x250   : > { %v3300_v21 = vadd.f32 %v4103_v49, %v3204_v38  ;;  %v2509_v9 = vadd.f32 %v2447_v55, %v2210_v18  ;;  %v2745_v58 = vpop.f32.mrf.mxu3  ;;  %v4238_v18 = vld [vmem:[%s4899_s22 + $0x38] sm:$0xff]  }
 0x251   : > { %v2150_v28 = vpop.f32.mrf.mxu1 }
 0x252   : > { %v3332_v15 = vmax.f32 %v3300_v21, 0.0  ;;  %v2807_v48 = vadd.f32 %v2745_v58, %v2509_v9  ;;  %v2211_v63 = vadd.f32 %v2150_v28, %v4834_v7  ;;  %v4110_v28 = vunpack.c.l.bf16 %v4238_v18 }
 0x253   : > { %v3045_v20 = vpop.f32.mrf.mxu0 }
 0x254   : > { %v4172_v30 = vpack.c.bf16 %v3332_v15, %v3331_v33  ;;  %v3105_v31 = vadd.f32 %v3043_v47, %v2807_v48 }
 0x256   : > { %4251 = vst [vmem:[%s4917_s27 + $0x28] sm:$0xff] %v4172_v30   ;;  %v3205_v50 = vadd.f32 %v4904_v24, %v3105_v31 }
 0x257   : > { %v2449_v42 = vpop.f32.mrf.mxu2 }
 0x258   : > { %v2510_v22 = vadd.f32 %v2449_v42, %v2211_v63  ;;  %v2747_v62 = vpop.f32.mrf.mxu3  ;;  %v3301_v7 = vadd.f32 %v4106_v52, %v3205_v50  ;;  %v4239_v50 = vld [vmem:[%s4899_s22 + $0x40] sm:$0xff]  }
 0x259   : > { %v2153_v37 = vpop.f32.mrf.mxu1 }
 0x25a   : > { %v2808_v14 = vadd.f32 %v2747_v62, %v2510_v22  ;;  %v2212_v40 = vadd.f32 %v2153_v37, %v4837_v1  ;;  %v3333_v47 = vmax.f32 %v3301_v7, 0.0 }
 0x25b   : > { %v3048_v46 = vpop.f32.mrf.mxu0 }
 0x25c   : > { %v3106_v59 = vadd.f32 %v3045_v20, %v2808_v14  ;;  %2192 = vmatmul.bf16.gmra.mxu1 %v2937_v4  ;;  %2491 = vmatmul.bf16.gmra.mxu2 %v4939_v43  ;;  %v4111_v20 = vunpack.c.h.bf16 %v4238_v18 }
 0x25d   : > { %2789 = vmatmul.bf16.gmra.mxu3 %v2640_v44 }
 0x25e   : > { %3087 = vmatmul.bf16.gmra.mxu0 %v2938_v26  ;;  %v3206_v60 = vadd.f32 %v4904_v24, %v3106_v59 }
 0x25f   : > { %v2452_v6 = vpop.f32.mrf.mxu2 }
 0x260   : > { %v3302_v57 = vadd.f32 %v4107_v10, %v3206_v60  ;;  %v2511_v12 = vadd.f32 %v2452_v6, %v2212_v40  ;;  %v2750_v35 = vpop.f32.mrf.mxu3  ;;  %v4114_v10 = vunpack.c.l.bf16 %v4239_v50  ;;  %v4115_v6 = vunpack.c.h.bf16 %v4239_v50 }
 0x261   : > { %v2155_v54 = vpop.f32.mrf.mxu1 }
 0x262   : > { %v3334_v29 = vmax.f32 %v3302_v57, 0.0  ;;  %v2809_v49 = vadd.f32 %v2750_v35, %v2511_v12  ;;  %v2213_v38 = vadd.f32 %v2155_v54, %v4840_v3 }
 0x263   : > { %v3050_v4 = vpop.f32.mrf.mxu0 }
 0x264   : > { %v4177_v36 = vpack.c.bf16 %v3334_v29, %v3333_v47  ;;  %v3107_v43 = vadd.f32 %v3048_v46, %v2809_v49 }
 0x266   : > { %4252 = vst [vmem:[%s4917_s27 + $0x30] sm:$0xff] %v4177_v36   ;;  %v3207_v1 = vadd.f32 %v4904_v24, %v3107_v43 }
 0x267   : > { %v2454_v55 = vpop.f32.mrf.mxu2 }
 0x268   : > { %v2512_v21 = vadd.f32 %v2454_v55, %v2213_v38  ;;  %v2752_v9 = vpop.f32.mrf.mxu3  ;;  %v3303_v30 = vadd.f32 %v4110_v28, %v3207_v1 }
 0x269   : > { %v2158_v58 = vpop.f32.mrf.mxu1 }
 0x26a   : > { %v2810_v33 = vadd.f32 %v2752_v9, %v2512_v21  ;;  %v2214_v31 = vadd.f32 %v2158_v58, %v4843_v61  ;;  %v3335_v34 = vmax.f32 %v3303_v30, 0.0  ;;  %v4240_v9 = vld [vmem:[%s4899_s22 + $0x48] sm:$0xff]  }
 0x26b   : > { %v3053_v15 = vpop.f32.mrf.mxu0 }
 0x26c   : > { %v3108_v48 = vadd.f32 %v3050_v4, %v2810_v33 }
 0x26e   : > { %v3208_v56 = vadd.f32 %v4904_v24, %v3108_v48 }
 0x26f   : > { %v2457_v3 = vpop.f32.mrf.mxu2 }
 0x270   : > { %v3304_v63 = vadd.f32 %v4111_v20, %v3208_v56  ;;  %v2513_v41 = vadd.f32 %v2457_v3, %v2214_v31  ;;  %v2755_v17 = vpop.f32.mrf.mxu3  ;;  %v4119_v56 = vunpack.c.h.bf16 %v4240_v9 }
 0x271   : > { %v2160_v0 = vpop.f32.mrf.mxu1 }
 0x272   : > { %v3336_v42 = vmax.f32 %v3304_v63, 0.0  ;;  %v2811_v22 = vadd.f32 %v2755_v17, %v2513_v41  ;;  %v2215_v26 = vadd.f32 %v2160_v0, %v4846_v13 }
 0x273   : > { %v3055_v62 = vpop.f32.mrf.mxu0 }
 0x274   : > { %v4182_v37 = vpack.c.bf16 %v3336_v42, %v3335_v34  ;;  %v3109_v44 = vadd.f32 %v3053_v15, %v2811_v22  ;;  %v4118_v15 = vunpack.c.l.bf16 %v4240_v9 }
 0x276   : > { %4253 = vst [vmem:[%s4917_s27 + $0x38] sm:$0xff] %v4182_v37   ;;  %v3209_v61 = vadd.f32 %v4904_v24, %v3109_v44 }
 0x277   : > { %v2459_v52 = vpop.f32.mrf.mxu2 }
 0x278   : > { %v2514_v14 = vadd.f32 %v2459_v52, %v2215_v26  ;;  %v2757_v46 = vpop.f32.mrf.mxu3  ;;  %v3305_v57 = vadd.f32 %v4114_v10, %v3209_v61  ;;  %v4241_v52 = vld [vmem:[%s4899_s22 + $0x50] sm:$0xff]  }
 0x279   : > { %v2163_v59 = vpop.f32.mrf.mxu1  ;;  %v4122_v10 = vunpack.c.l.bf16 %v4241_v52 }
 0x27a   : > { %v2812_v7 = vadd.f32 %v2757_v46, %v2514_v14  ;;  %v2216_v35 = vadd.f32 %v2163_v59, %v4849_v11  ;;  %v3337_v4 = vmax.f32 %v3305_v57, 0.0 }
 0x27b   : > { %v3058_v60 = vpop.f32.mrf.mxu0 }
 0x27c   : > { %v3110_v40 = vadd.f32 %v3055_v62, %v2812_v7 }
 0x27e   : > { %v3210_v12 = vadd.f32 %v4904_v24, %v3110_v40 }
 0x27f   : > { %v2462_v13 = vpop.f32.mrf.mxu2 }
 0x280   : > { %v3306_v54 = vadd.f32 %v4115_v6, %v3210_v12  ;;  %v2515_v47 = vadd.f32 %v2462_v13, %v2216_v35  ;;  %v2760_v29 = vpop.f32.mrf.mxu3  ;;  %v4123_v6 = vunpack.c.h.bf16 %v4241_v52 }
 0x281   : > { %v2165_v49 = vpop.f32.mrf.mxu1 }
 0x282   : > { %v3338_v36 = vmax.f32 %v3306_v54, 0.0  ;;  %v2813_v43 = vadd.f32 %v2760_v29, %v2515_v47  ;;  %v2217_v21 = vadd.f32 %v2165_v49, %v4852_v5 }
 0x283   : > { %v3060_v38 = vpop.f32.mrf.mxu0 }
 0x284   : > { %v4187_v18 = vpack.c.bf16 %v3338_v36, %v3337_v4  ;;  %v3111_v55 = vadd.f32 %v3058_v60, %v2813_v43 }
 0x286   : > { %4254 = vst [vmem:[%s4917_s27 + $0x40] sm:$0xff] %v4187_v18   ;;  %v3211_v11 = vadd.f32 %v4904_v24, %v3111_v55 }
 0x287   : > { %v2464_v58 = vpop.f32.mrf.mxu2 }
 0x288   : > { %v2516_v1 = vadd.f32 %v2464_v58, %v2217_v21  ;;  %v2762_v28 = vpop.f32.mrf.mxu3  ;;  %v3307_v31 = vadd.f32 %v4118_v15, %v3211_v11  ;;  %v4242_v21 = vld [vmem:[%s4899_s22 + $0x58] sm:$0xff]  }
 0x289   : > { %v2168_v33 = vpop.f32.mrf.mxu1 }
 0x28a   : > { %v2814_v48 = vadd.f32 %v2762_v28, %v2516_v1  ;;  %v2218_v63 = vadd.f32 %v2168_v33, %v4855_v53  ;;  %v3339_v42 = vmax.f32 %v3307_v31, 0.0  ;;  %v4126_v33 = vunpack.c.l.bf16 %v4242_v21 }
 0x28b   : > { %v3063_v20 = vpop.f32.mrf.mxu0 }
 0x28c   : > { %v3112_v30 = vadd.f32 %v3060_v38, %v2814_v48 }
 0x28e   : > { %v3212_v3 = vadd.f32 %v4904_v24, %v3112_v30 }
 0x28f   : > { %v2467_v5 = vpop.f32.mrf.mxu2 }
 0x290   : > { %v3308_v41 = vadd.f32 %v4119_v56, %v3212_v3  ;;  %v2517_v17 = vadd.f32 %v2467_v5, %v2218_v63  ;;  %v2765_v0 = vpop.f32.mrf.mxu3 }
 0x291   : > { %v2170_v34 = vpop.f32.mrf.mxu1 }
 0x292   : > { %v3340_v22 = vmax.f32 %v3308_v41, 0.0  ;;  %v2815_v62 = vadd.f32 %v2765_v0, %v2517_v17  ;;  %v2219_v50 = vadd.f32 %v2170_v34, %v4858_v32 }
 0x293   : > { %v3065_v37 = vpop.f32.mrf.mxu0 }
 0x294   : > { %v4192_v44 = vpack.c.bf16 %v3340_v22, %v3339_v42  ;;  %v3113_v26 = vadd.f32 %v3063_v20, %v2815_v62  ;;  %v4127_v20 = vunpack.c.h.bf16 %v4242_v21 }
 0x296   : > { %4255 = vst [vmem:[%s4917_s27 + $0x48] sm:$0xff] %v4192_v44   ;;  %v3213_v53 = vadd.f32 %v4904_v24, %v3113_v26  ;;  %v4243_v44 = vld [vmem:[%s4899_s22 + $0x60] sm:$0xff]  }
 0x297   : > { %v2469_v14 = vpop.f32.mrf.mxu2 }
 0x298   : > { %v2518_v46 = vadd.f32 %v2469_v14, %v2219_v50  ;;  %v2767_v59 = vpop.f32.mrf.mxu3  ;;  %v3309_v57 = vadd.f32 %v4122_v10, %v3213_v53  ;;  %v4131_v10 = vunpack.c.h.bf16 %v4243_v44 }
 0x299   : > { %v2173_v61 = vpop.f32.mrf.mxu1 }
 0x29a   : > { %v2816_v7 = vadd.f32 %v2767_v59, %v2518_v46  ;;  %v2220_v35 = vadd.f32 %v2173_v61, %v4861_v39  ;;  %v3341_v49 = vmax.f32 %v3309_v57, 0.0  ;;  %v4130_v46 = vunpack.c.l.bf16 %v4243_v44 }
 0x29b   : > { %v3068_v60 = vpop.f32.mrf.mxu0 }
 0x29c   : > { %v3114_v40 = vadd.f32 %v3065_v37, %v2816_v7 }
 0x29e   : > { %v3214_v12 = vadd.f32 %v4904_v24, %v3114_v40 }
 0x29f   : > { %v2472_v32 = vpop.f32.mrf.mxu2 }
 0x2a0   : > { %v3310_v13 = vadd.f32 %v4123_v6, %v3214_v12  ;;  %v2519_v54 = vadd.f32 %v2472_v32, %v2220_v35  ;;  %v2770_v47 = vpop.f32.mrf.mxu3 }
 0x2a1   : > { %v2175_v29 = vpop.f32.mrf.mxu1 }
 0x2a2   : > { %v3342_v4 = vmax.f32 %v3310_v13, 0.0  ;;  %v2817_v36 = vadd.f32 %v2770_v47, %v2519_v54  ;;  %v2221_v55 = vadd.f32 %v2175_v29, %v4864_v16 }
 0x2a3   : > { %v3070_v43 = vpop.f32.mrf.mxu0 }
 0x2a4   : > { %v4197_v38 = vpack.c.bf16 %v3342_v4, %v3341_v49  ;;  %v3115_v18 = vadd.f32 %v3068_v60, %v2817_v36  ;;  %v4244_v36 = vld [vmem:[%s4899_s22 + $0x68] sm:$0xff]  }
 0x2a5   : > { %v4134_v21 = vunpack.c.l.bf16 %v4244_v36 }
 0x2a6   : > { %4256 = vst [vmem:[%s4917_s27 + $0x50] sm:$0xff] %v4197_v38   ;;  %v3215_v39 = vadd.f32 %v4904_v24, %v3115_v18 }
 0x2a7   : > { %v2474_v9 = vpop.f32.mrf.mxu2 }
 0x2a8   : > { %v2520_v58 = vadd.f32 %v2474_v9, %v2221_v55  ;;  %v2772_v1 = vpop.f32.mrf.mxu3  ;;  %v3311_v30 = vadd.f32 %v4126_v33, %v3215_v39 }
 0x2a9   : > { %v2178_v28 = vpop.f32.mrf.mxu1 }
 0x2aa   : > { %v2818_v11 = vadd.f32 %v2772_v1, %v2520_v58  ;;  %v2222_v31 = vadd.f32 %v2178_v28, %v4867_v45  ;;  %v3343_v17 = vmax.f32 %v3311_v30, 0.0  ;;  %v4135_v1 = vunpack.c.h.bf16 %v4244_v36  ;;  %v4321_v36 = vld [vmem:[%s5030_s2] ss:$0 sm:$0xff] }
 0x2ab   : > { %v3073_v15 = vpop.f32.mrf.mxu0 }
 0x2ac   : > { %v3116_v48 = vadd.f32 %v3070_v43, %v2818_v11 }
 0x2ae   : > { %v3216_v56 = vadd.f32 %v4904_v24, %v3116_v48 }
 0x2af   : > { %v2477_v16 = vpop.f32.mrf.mxu2 }
 0x2b0   : > { %v3312_v3 = vadd.f32 %v4127_v20, %v3216_v56  ;;  %v2521_v63 = vadd.f32 %v2477_v16, %v2222_v31  ;;  %v2775_v5 = vpop.f32.mrf.mxu3 }
 0x2b1   : > { %v2180_v41 = vpop.f32.mrf.mxu1 }
 0x2b2   : > { %v3344_v0 = vmax.f32 %v3312_v3, 0.0  ;;  %v2819_v34 = vadd.f32 %v2775_v5, %v2521_v63  ;;  %v2223_v37 = vadd.f32 %v2180_v41, %v4870_v23  ;;  %v4245_v41 = vld [vmem:[%s4899_s22 + $0x70] sm:$0xff]  }
 0x2b3   : > { %v3075_v42 = vpop.f32.mrf.mxu0 }
 0x2b4   : > { %v4202_v22 = vpack.c.bf16 %v3344_v0, %v3343_v17  ;;  %v3117_v62 = vadd.f32 %v3073_v15, %v2819_v34 }
 0x2b6   : > { %4257 = vst [vmem:[%s4917_s27 + $0x58] sm:$0xff] %v4202_v22   ;;  %v3217_v45 = vadd.f32 %v4904_v24, %v3117_v62  ;;  %v4138_v62 = vunpack.c.l.bf16 %v4245_v41 }
 0x2b7   : > { %v2479_v26 = vpop.f32.mrf.mxu2 }
 0x2b8   : > { %v2522_v50 = vadd.f32 %v2479_v26, %v2223_v37  ;;  %v2777_v52 = vpop.f32.mrf.mxu3  ;;  %v3313_v7 = vadd.f32 %v4130_v46, %v3217_v45  ;;  %v4139_v26 = vunpack.c.h.bf16 %v4245_v41 }
 0x2b9   : > { %v2183_v14 = vpop.f32.mrf.mxu1 }
 0x2ba   : > { %v2820_v59 = vadd.f32 %v2777_v52, %v2522_v50  ;;  %v2224_v40 = vadd.f32 %v2183_v14, %v4873_v25  ;;  %v3345_v32 = vmax.f32 %v3313_v7, 0.0 }
 0x2bb   : > { %v3078_v61 = vpop.f32.mrf.mxu0 }
 0x2bc   : > { %v3118_v53 = vadd.f32 %v3075_v42, %v2820_v59 }
 0x2be   : > { %v3218_v60 = vadd.f32 %v4904_v24, %v3118_v53 }
 0x2bf   : > { %v2482_v23 = vpop.f32.mrf.mxu2 }
 0x2c0   : > { %v3314_v6 = vadd.f32 %v4131_v10, %v3218_v60  ;;  %v2523_v57 = vadd.f32 %v2482_v23, %v2224_v40  ;;  %v2780_v12 = vpop.f32.mrf.mxu3 }
 0x2c1   : > { %v2185_v35 = vpop.f32.mrf.mxu1 }
 0x2c2   : > { %v3346_v13 = vmax.f32 %v3314_v6, 0.0  ;;  %v2821_v54 = vadd.f32 %v2780_v12, %v2523_v57  ;;  %v2225_v4 = vadd.f32 %v2185_v35, %v4876_v8  ;;  %v4246_v57 = vld [vmem:[%s4899_s22 + $0x78] sm:$0xff]  }
 0x2c3   : > { %v3080_v47 = vpop.f32.mrf.mxu0 }
 0x2c4   : > { %v4207_v29 = vpack.c.bf16 %v3346_v13, %v3345_v32  ;;  %v3119_v49 = vadd.f32 %v3078_v61, %v2821_v54  ;;  %v4142_v13 = vunpack.c.l.bf16 %v4246_v57 }
 0x2c6   : > { %4258 = vst [vmem:[%s4917_s27 + $0x60] sm:$0xff] %v4207_v29   ;;  %v3219_v25 = vadd.f32 %v4904_v24, %v3119_v49  ;;  %v4143_v49 = vunpack.c.h.bf16 %v4246_v57 }
 0x2c7   : > { %v2484_v43 = vpop.f32.mrf.mxu2 }
 0x2c8   : > { %v2524_v38 = vadd.f32 %v2484_v43, %v2225_v4  ;;  %v2782_v18 = vpop.f32.mrf.mxu3  ;;  %v3315_v39 = vadd.f32 %v4134_v21, %v3219_v25 }
 0x2c9   : > { %v2188_v55 = vpop.f32.mrf.mxu1 }
 0x2ca   : > { %v2822_v9 = vadd.f32 %v2782_v18, %v2524_v38  ;;  %v2226_v11 = vadd.f32 %v2188_v55, %v4879_v19  ;;  %v3347_v56 = vmax.f32 %v3315_v39, 0.0 }
 0x2cb   : > { %v3083_v28 = vpop.f32.mrf.mxu0 }
 0x2cc   : > { %v3120_v58 = vadd.f32 %v3080_v47, %v2822_v9 }
 0x2ce   : > { %v3220_v33 = vadd.f32 %v4904_v24, %v3120_v58 }
 0x2cf   : > { %v2487_v8 = vpop.f32.mrf.mxu2 }
 0x2d0   : > { %v3316_v15 = vadd.f32 %v4135_v1, %v3220_v33  ;;  %v2525_v48 = vadd.f32 %v2487_v8, %v2226_v11  ;;  %v2785_v20 = vpop.f32.mrf.mxu3 }
 0x2d1   : > { %v2190_v30 = vpop.f32.mrf.mxu1 }
 0x2d2   : > { %v3348_v31 = vmax.f32 %v3316_v15, 0.0  ;;  %v2823_v16 = vadd.f32 %v2785_v20, %v2525_v48  ;;  %v2227_v5 = vadd.f32 %v2190_v30, %v4882_v2 }
 0x2d3   : > { %v3085_v17 = vpop.f32.mrf.mxu0 }
 0x2d4   : > { %v4212_v3 = vpack.c.bf16 %v3348_v31, %v3347_v56  ;;  %v3121_v63 = vadd.f32 %v3083_v28, %v2823_v16 }
 0x2d6   : > { %4259 = vst [vmem:[%s4917_s27 + $0x68] sm:$0xff] %v4212_v3   ;;  %v3221_v19 = vadd.f32 %v4904_v24, %v3121_v63 }
 0x2d7   : > { %v2489_v0 = vpop.f32.mrf.mxu2 }
 0x2d8   : > { %v2526_v34 = vadd.f32 %v2489_v0, %v2227_v5  ;;  %v2787_v42 = vpop.f32.mrf.mxu3  ;;  %v3317_v50 = vadd.f32 %v4138_v62, %v3221_v19 }
 0x2d9   : > { %v2193_v22 = vpop.f32.mrf.mxu1 }
 0x2da   : > { %v2824_v37 = vadd.f32 %v2787_v42, %v2526_v34  ;;  %v2228_v14 = vadd.f32 %v2193_v22, %v4886_v51  ;;  %v3349_v53 = vmax.f32 %v3317_v50, 0.0 }
 0x2db   : > { %v3088_v61 = vpop.f32.mrf.mxu0 }
 0x2dc   : > { %v3122_v44 = vadd.f32 %v3085_v17, %v2824_v37 }
 0x2de   : > { %v3222_v52 = vadd.f32 %v4904_v24, %v3122_v44 }
 0x2df   : > { %v2492_v2 = vpop.f32.mrf.mxu2 }
 0x2e0   : > { %v3318_v45 = vadd.f32 %v4139_v26, %v3222_v52  ;;  %v2527_v46 = vadd.f32 %v2492_v2, %v2228_v14  ;;  %v2790_v59 = vpop.f32.mrf.mxu3 }
 0x2e1   : > { %v2195_v60 = vpop.f32.mrf.mxu1 }
 0x2e2   : > { %v3350_v10 = vmax.f32 %v3318_v45, 0.0  ;;  %v2825_v7 = vadd.f32 %v2790_v59, %v2527_v46  ;;  %v2229_v6 = vadd.f32 %v2195_v60, %v4889_v27 }
 0x2e3   : > { %v3090_v47 = vpop.f32.mrf.mxu0 }
 0x2e4   : > { %v4217_v40 = vpack.c.bf16 %v3350_v10, %v3349_v53  ;;  %v3123_v23 = vadd.f32 %v3088_v61, %v2825_v7 }
 0x2e6   : > { %4260 = vst [vmem:[%s4917_s27 + $0x70] sm:$0xff] %v4217_v40   ;;  %v3223_v51 = vadd.f32 %v4904_v24, %v3123_v23 }
 0x2e7   : > { %v2494_v12 = vpop.f32.mrf.mxu2 }
 0x2e8   : > { %v2528_v35 = vadd.f32 %v2494_v12, %v2229_v6  ;;  %v2792_v32 = vpop.f32.mrf.mxu3  ;;  %v3319_v4 = vadd.f32 %v4142_v13, %v3223_v51 }
 0x2ea   : > { %v2826_v54 = vadd.f32 %v2792_v32, %v2528_v35  ;;  %v3351_v27 = vmax.f32 %v3319_v4, 0.0 }
 0x2ec   : > { %v3124_v29 = vadd.f32 %v3090_v47, %v2826_v54 }
 0x2ee   : > { %v3224_v43 = vadd.f32 %v4321_v36, %v3124_v29 }
 0x2f0   : > { %v3320_v38 = vadd.f32 %v4143_v49, %v3224_v43 }
 0x2f2   : > { %v3352_v18 = vmax.f32 %v3320_v38, 0.0 }
 0x2f4   : > { %v4222_v55 = vpack.c.bf16 %v3352_v18, %v3351_v27 }
 0x2f6   : > { %4261 = vst [vmem:[%s4917_s27 + $0x78] sm:$0xff] %v4222_v55  }
 0x2f7 PF: > { %s14_s17 = sadd.s32 1, %s4344_s17   ;;  %s5033_s15 = smov %s4340_s16 }
 0x2f8   : > { %p11_p5 = scmp.ge.s32.totalorder %s14_s17, 4   ;;  %s5034_s16 = smov %s5036_s18 }
 0x2fa   :  { %13 = sbr.rel (!%p11_p5) target bundleno = 2 (0x2), region = 85 }

</bundles_post_ra>
